<compile_context>
chip_gen: v7x
topology: tpu7x:2x2x1
jax: 0.10.0
libtpu: 0.0.40
codegen_flags: <defaults>
</compile_context>

<pallas_src>
import functools

import jax
import jax.numpy as jnp
import numpy as np
from jax.experimental import pallas as pl
from jax.experimental.pallas import tpu as pltpu


# ----------------------------------------------------------------------------
# Fused SEBasicBlock kernel (one grid step = Nb images, chunked internally)
# ----------------------------------------------------------------------------
def _se_basic_block_kernel(x_ref, w1_ref, w2_ref, b1_ref, b2_ref,
                           fc1_ref, fc2_ref, o_ref, xpad_ref, *, nb_inner):
    # x_ref:    (Nb, H, W, C) f32 input block
    # w1/w2:    (9, C, C) per-tap conv weights (compute dtype), BN scale pre-folded
    # b1/b2:    (1, C) folded BatchNorm bias (f32)
    # fc1/fc2:  (C, Chid) / (Chid, C) SE weights (f32)
    # o_ref:    (Nb, H, W, C) f32 output block
    # xpad_ref: (nb_inner, H+2, W+2, C) compute-dtype zero-halo scratch
    Nb, H, W, C = x_ref.shape
    cdt = xpad_ref.dtype
    n_chunks = Nb // nb_inner
    mc = nb_inner * H * W                          # matmul rows per inner chunk

    # Zero only the halo frame; the interior is fully overwritten by every chunk.
    # Done every grid step on purpose: a program_id==0 guard is unsafe on v7x
    # megacore (core 1 never executes step 0).
    zrow = jnp.zeros((nb_inner, 1, W + 2, C), cdt)
    zcol = jnp.zeros((nb_inner, H + 2, 1, C), cdt)
    xpad_ref[:, 0:1, :, :] = zrow
    xpad_ref[:, H + 1:H + 2, :, :] = zrow
    xpad_ref[:, :, 0:1, :] = zcol
    xpad_ref[:, :, W + 1:W + 2, :] = zcol

    def conv3x3(w_ref, bias_ref, relu):
        # Nine per-tap (mc, C) @ (C, C) MXU matmuls accumulated in f32 vregs.
        acc = jnp.zeros((mc, C), jnp.float32)
        for dh in range(3):
            for dw in range(3):
                patch = xpad_ref[:, dh:dh + H, dw:dw + W, :].reshape(mc, C)
                acc = acc + jnp.dot(patch, w_ref[3 * dh + dw],
                                    preferred_element_type=jnp.float32)
        y = acc + bias_ref[...]                     # folded BN bias
        return jnp.maximum(y, 0.0) if relu else y

    # Static (unrolled) chunk loop: bounds the live accumulator to mc*C f32.
    for c in range(n_chunks):
        i0 = c * nb_inner
        x_blk = x_ref[i0:i0 + nb_inner]                             # (nb, H, W, C) f32

        # Stage the chunk interior into the zero-halo padded scratch.
        xpad_ref[:, 1:H + 1, 1:W + 1, :] = x_blk.astype(cdt)

        # conv1 + (folded) bn1 + relu, written back into the same padded scratch
        # (halo is still zero, so conv2 reuses it directly).
        a1 = conv3x3(w1_ref, b1_ref, relu=True)                     # (mc, C) f32
        xpad_ref[:, 1:H + 1, 1:W + 1, :] = a1.reshape(nb_inner, H, W, C).astype(cdt)

        # conv2 + (folded) bn2
        a2 = conv3x3(w2_ref, b2_ref, relu=False)                    # (mc, C) f32
        a2_3d = a2.reshape(nb_inner, H * W, C)

        # SE: global average pool -> fc1 -> relu -> fc2 -> sigmoid (tiny, f32).
        pooled = jnp.mean(a2_3d, axis=1)                            # (nb, C)
        h = jnp.maximum(
            jnp.dot(pooled, fc1_ref[...], preferred_element_type=jnp.float32), 0.0)
        s = jax.nn.sigmoid(
            jnp.dot(h, fc2_ref[...], preferred_element_type=jnp.float32))   # (nb, C)

        # Channel scaling + residual add + final ReLU.
        resid = x_blk.reshape(nb_inner, H * W, C)
        y = jnp.maximum(a2_3d * s[:, None, :] + resid, 0.0)
        o_ref[i0:i0 + nb_inner] = y.reshape(nb_inner, H, W, C).astype(o_ref.dtype)


# ----------------------------------------------------------------------------
# Wrapper
# ----------------------------------------------------------------------------
def fold_bn(gamma, beta, mean, var, eps=1e-5):
    scale = (gamma / jnp.sqrt(var + eps)).astype(jnp.float32)
    bias = (beta - mean * scale).astype(jnp.float32)
    return scale, bias


def _pick_batch_block(N, H, W, target_rows=4096):
    # Largest divisor Nb of N with Nb*H*W <= target_rows, preferring a grid of
    # >= 2 steps so the "parallel" axis can shard across v7x's two TensorCores.
    rows = max(1, H * W)
    divs = [d for d in range(1, N + 1) if N % d == 0]
    fit = [d for d in divs if d * rows <= target_rows] or [divs[0]]
    multi = [d for d in fit if N // d >= 2]
    return max(multi) if multi else max(fit)


def se_basic_block(x, params, *, compute_dtype=jnp.bfloat16,
                   batch_block=None, inner_rows=512):
    N, H, W, C = x.shape
    Chid = params["fc1"].shape[-1]
    Nb = batch_block if batch_block is not None else _pick_batch_block(N, H, W)
    assert N % Nb == 0

    # Fold BN (running stats) to per-channel scale/bias, then fold the scale into
    # the conv weights in f32 before the compute-dtype cast.
    s1, b1 = fold_bn(*params["bn1"])
    s2, b2 = fold_bn(*params["bn2"])
    w1 = (params["conv1"].astype(jnp.float32) * s1[None, None, :]).astype(compute_dtype)
    w2 = (params["conv2"].astype(jnp.float32) * s2[None, None, :]).astype(compute_dtype)
    b1 = b1.reshape(1, C)
    b2 = b2.reshape(1, C)
    fc1 = params["fc1"].astype(jnp.float32)
    fc2 = params["fc2"].astype(jnp.float32)

    # Images per inner chunk: keep each chunk's f32 accumulator (rows x C) small
    # enough to stay in vregs instead of spilling.
    nb_inner = max(1, min(Nb, inner_rows // max(1, H * W)))
    while Nb % nb_inner:
        nb_inner -= 1

    wdt = jnp.dtype(compute_dtype).itemsize
    # Explicit VMEM budget (covers v5e's 16 MiB scoped default; capped well below
    # v7x's 64 MiB physical VMEM).
    step_bytes = (2 * 2 * Nb * H * W * C * 4                      # x + out, 2x buffered
                  + nb_inner * (H + 2) * (W + 2) * C * wdt        # padded scratch
                  + 2 * (2 * 9 * C * C * wdt + 4 * C * 4 + 2 * C * Chid * 4))
    vmem_limit = int(min(max(2 * step_bytes, 32 * 1024 * 1024), 64 * 1024 * 1024))

    cost = pl.CostEstimate(
        flops=4 * N * H * W * 9 * C * C + 4 * N * C * Chid,
        transcendentals=N * C,
        bytes_accessed=(2 * N * H * W * C * 4            # x in + out
                        + 2 * 9 * C * C * wdt            # conv weights
                        + 2 * C * Chid * 4 + 4 * C * 4), # SE weights + BN biases
    )

    kernel = functools.partial(_se_basic_block_kernel, nb_inner=nb_inner)
    return pl.pallas_call(
        kernel,
        out_shape=jax.ShapeDtypeStruct((N, H, W, C), jnp.float32),
        grid=(N // Nb,),
        in_specs=[
            pl.BlockSpec((Nb, H, W, C), lambda n: (n, 0, 0, 0)),   # x
            pl.BlockSpec((9, C, C), lambda n: (0, 0, 0)),          # conv1 taps (bn1 folded)
            pl.BlockSpec((9, C, C), lambda n: (0, 0, 0)),          # conv2 taps (bn2 folded)
            pl.BlockSpec((1, C), lambda n: (0, 0)),                # bn1 bias
            pl.BlockSpec((1, C), lambda n: (0, 0)),                # bn2 bias
            pl.BlockSpec((C, Chid), lambda n: (0, 0)),             # SE fc1
            pl.BlockSpec((Chid, C), lambda n: (0, 0)),             # SE fc2
        ],
        out_specs=pl.BlockSpec((Nb, H, W, C), lambda n: (n, 0, 0, 0)),
        scratch_shapes=[
            pltpu.VMEM((nb_inner, H + 2, W + 2, C), compute_dtype),  # padded activations
        ],
        compiler_params=pltpu.CompilerParams(
            dimension_semantics=("parallel",),
            vmem_limit_bytes=vmem_limit,
        ),
        cost_estimate=cost,
    )(x, w1, w2, b1, b2, fc1, fc2)


# ----------------------------------------------------------------------------
# Pure-JAX reference for correctness check
# ----------------------------------------------------------------------------
def ref_block(x, params):
    def conv(a, w):
        w4 = w.reshape(3, 3, a.shape[-1], -1)
        return jax.lax.conv_general_dilated(
            a, w4, (1, 1), ((1, 1), (1, 1)),
            dimension_numbers=("NHWC", "HWIO", "NHWC"))

    def bn(a, g, b, m, v, eps=1e-5):
        return (a - m) / jnp.sqrt(v + eps) * g + b

    out = jax.nn.relu(bn(conv(x, params["conv1"]), *params["bn1"]))
    out = bn(conv(out, params["conv2"]), *params["bn2"])
    pooled = out.mean(axis=(1, 2))                      # (N, C)
    h = jax.nn.relu(pooled @ params["fc1"])
    s = jax.nn.sigmoid(h @ params["fc2"])
    out = out * s[:, None, None, :] + x
    return jax.nn.relu(out)


if __name__ == "__main__":
    key = jax.random.PRNGKey(0)
    N, H, W, C = 8, 8, 8, 32       # inplanes == planes, stride=1, downsample=None
    reduction = 16
    Chid = C // reduction

    ks = jax.random.split(key, 10)
    x = jax.random.normal(ks[0], (N, H, W, C), jnp.float32)

    params = {
        "conv1": jax.random.normal(ks[1], (9, C, C), jnp.float32) * 0.1,
        "conv2": jax.random.normal(ks[2], (9, C, C), jnp.float32) * 0.1,
        "bn1": (
            jnp.abs(jax.random.normal(ks[3], (C,), jnp.float32)) + 0.5,        # gamma
            jax.random.normal(ks[4], (C,), jnp.float32) * 0.1,                 # beta
            jax.random.normal(ks[5], (C,), jnp.float32) * 0.1,                 # running_mean
            jnp.abs(jax.random.normal(ks[6], (C,), jnp.float32)) * 0.1 + 1.0,  # running_var
        ),
        "bn2": (
            jnp.ones((C,), jnp.float32),
            jnp.zeros((C,), jnp.float32),
            jnp.zeros((C,), jnp.float32),
            jnp.ones((C,), jnp.float32),
        ),
        # fc1: Linear(C -> C//r, bias=False) stored transposed as (C, Chid)
        "fc1": jax.random.normal(ks[7], (C, Chid), jnp.float32) * 0.2,
        # fc2: Linear(C//r -> C, bias=False) stored transposed as (Chid, C)
        "fc2": jax.random.normal(ks[8], (Chid, C), jnp.float32) * 0.2,
    }

    ref = jax.block_until_ready(ref_block(x, params))

    # 1) f32 matmul path, auto block picking (2-step grid): tight correctness check.
    out_f32 = jax.block_until_ready(
        se_basic_block(x, params, compute_dtype=jnp.float32))
    assert out_f32.shape == (N, H, W, C)
    np.testing.assert_allclose(np.asarray(out_f32), np.asarray(ref),
                               rtol=1e-4, atol=2e-4)

    # 2) f32 path with a whole-batch block and two inner chunks (exercises the
    #    unrolled chunk loop that bounds vreg pressure at large per-step blocks).
    out_chunk = jax.block_until_ready(
        se_basic_block(x, params, compute_dtype=jnp.float32,
                       batch_block=N, inner_rows=256))
    np.testing.assert_allclose(np.asarray(out_chunk), np.asarray(ref),
                               rtol=1e-4, atol=2e-4)

    # 3) default bf16 path (bf16 MXU operands, f32 accumulate + f32 epilogue).
    out_bf16 = jax.block_until_ready(se_basic_block(x, params))
    err = float(np.max(np.abs(np.asarray(out_bf16) - np.asarray(ref))))
    scale = float(np.max(np.abs(np.asarray(ref)))) + 1e-6
    assert err / scale < 5e-2, f"bf16 path error too large: {err / scale:.3e}"

    print("KERNEL_OK")
</pallas_src>

<mosaic_0001>
module attributes {stable_mosaic.version = 11 : i64} {
  func.func @_se_basic_block_kernel(%arg0: i32, %arg1: memref<4x8x8x32xf32, #tpu.memory_space<vmem>>, %arg2: memref<9x32x32xf32, #tpu.memory_space<vmem>>, %arg3: memref<9x32x32xf32, #tpu.memory_space<vmem>>, %arg4: memref<1x32xf32, #tpu.memory_space<vmem>>, %arg5: memref<1x32xf32, #tpu.memory_space<vmem>>, %arg6: memref<32x2xf32, #tpu.memory_space<vmem>>, %arg7: memref<2x32xf32, #tpu.memory_space<vmem>>, %arg8: memref<4x8x8x32xf32, #tpu.memory_space<vmem>>, %arg9: memref<4x10x10x32xf32, #tpu.memory_space<vmem>>) attributes {dimension_semantics = [#tpu.dimension_semantics<parallel>], iteration_bounds = array<i64: 2>, scalar_prefetch = 0 : i64, scratch_operands = 1 : i64, tpu.core_type = #tpu.core_type<tc>, window_params = [{transform_indices = @transform_0, window_bounds = array<i64: 4, 8, 8, 32>}, {pipeline_mode = #tpu.pipeline_mode<synchronous>, transform_indices = @transform_1, window_bounds = array<i64: 9, 32, 32>}, {pipeline_mode = #tpu.pipeline_mode<synchronous>, transform_indices = @transform_2, window_bounds = array<i64: 9, 32, 32>}, {pipeline_mode = #tpu.pipeline_mode<synchronous>, transform_indices = @transform_3, window_bounds = array<i64: 1, 32>}, {pipeline_mode = #tpu.pipeline_mode<synchronous>, transform_indices = @transform_4, window_bounds = array<i64: 1, 32>}, {pipeline_mode = #tpu.pipeline_mode<synchronous>, transform_indices = @transform_5, window_bounds = array<i64: 32, 2>}, {pipeline_mode = #tpu.pipeline_mode<synchronous>, transform_indices = @transform_6, window_bounds = array<i64: 2, 32>}, {transform_indices = @transform_7, window_bounds = array<i64: 4, 8, 8, 32>}]} {
    %cst = arith.constant 0.000000e+00 : f32
    %0 = vector.broadcast %cst : f32 to vector<4x1x10x32xf32>
    %cst_0 = arith.constant 0.000000e+00 : f32
    %1 = vector.broadcast %cst_0 : f32 to vector<4x10x1x32xf32>
    %c0 = arith.constant 0 : index
    %c0_1 = arith.constant 0 : index
    %c0_2 = arith.constant 0 : index
    %c0_3 = arith.constant 0 : index
    %2 = vector.load %arg9[%c0, %c0_1, %c0_2, %c0_3] : memref<4x10x10x32xf32, #tpu.memory_space<vmem>>, vector<4x1x10x32xf32>
    tpu.vector_store %arg9[%c0, %c0_1, %c0_2, %c0_3], %0 {strides = array<i32>} : memref<4x10x10x32xf32, #tpu.memory_space<vmem>>, vector<4x1x10x32xf32>,
    %c0_4 = arith.constant 0 : index
    %c9 = arith.constant 9 : index
    %c0_5 = arith.constant 0 : index
    %c0_6 = arith.constant 0 : index
    %3 = vector.load %arg9[%c0_4, %c9, %c0_5, %c0_6] : memref<4x10x10x32xf32, #tpu.memory_space<vmem>>, vector<4x1x10x32xf32>
    tpu.vector_store %arg9[%c0_4, %c9, %c0_5, %c0_6], %0 {strides = array<i32>} : memref<4x10x10x32xf32, #tpu.memory_space<vmem>>, vector<4x1x10x32xf32>,
    %c0_7 = arith.constant 0 : index
    %c0_8 = arith.constant 0 : index
    %c0_9 = arith.constant 0 : index
    %c0_10 = arith.constant 0 : index
    %4 = vector.load %arg9[%c0_7, %c0_8, %c0_9, %c0_10] : memref<4x10x10x32xf32, #tpu.memory_space<vmem>>, vector<4x10x1x32xf32>
    tpu.vector_store %arg9[%c0_7, %c0_8, %c0_9, %c0_10], %1 {strides = array<i32>} : memref<4x10x10x32xf32, #tpu.memory_space<vmem>>, vector<4x10x1x32xf32>,
    %c0_11 = arith.constant 0 : index
    %c0_12 = arith.constant 0 : index
    %c9_13 = arith.constant 9 : index
    %c0_14 = arith.constant 0 : index
    %5 = vector.load %arg9[%c0_11, %c0_12, %c9_13, %c0_14] : memref<4x10x10x32xf32, #tpu.memory_space<vmem>>, vector<4x10x1x32xf32>
    tpu.vector_store %arg9[%c0_11, %c0_12, %c9_13, %c0_14], %1 {strides = array<i32>} : memref<4x10x10x32xf32, #tpu.memory_space<vmem>>, vector<4x10x1x32xf32>,
    %c0_15 = arith.constant 0 : index
    %c0_16 = arith.constant 0 : index
    %c0_17 = arith.constant 0 : index
    %c0_18 = arith.constant 0 : index
    %6 = vector.load %arg1[%c0_15, %c0_16, %c0_17, %c0_18] : memref<4x8x8x32xf32, #tpu.memory_space<vmem>>, vector<4x8x8x32xf32>
    %c0_19 = arith.constant 0 : index
    %c1 = arith.constant 1 : index
    %c1_20 = arith.constant 1 : index
    %c0_21 = arith.constant 0 : index
    %7 = vector.load %arg9[%c0_19, %c1, %c1_20, %c0_21] : memref<4x10x10x32xf32, #tpu.memory_space<vmem>>, vector<4x8x8x32xf32>
    tpu.vector_store %arg9[%c0_19, %c1, %c1_20, %c0_21], %6 {strides = array<i32>} : memref<4x10x10x32xf32, #tpu.memory_space<vmem>>, vector<4x8x8x32xf32>,
    %cst_22 = arith.constant 0.000000e+00 : f32
    %8 = vector.broadcast %cst_22 : f32 to vector<256x32xf32>
    %c0_23 = arith.constant 0 : index
    %c0_24 = arith.constant 0 : index
    %c0_25 = arith.constant 0 : index
    %c0_26 = arith.constant 0 : index
    %9 = vector.load %arg9[%c0_23, %c0_24, %c0_25, %c0_26] : memref<4x10x10x32xf32, #tpu.memory_space<vmem>>, vector<4x8x8x32xf32>
    %10 = vector.shape_cast %9 : vector<4x8x8x32xf32> to vector<256x32xf32>
    %c0_27 = arith.constant 0 : index
    %c0_28 = arith.constant 0 : index
    %c0_29 = arith.constant 0 : index
    %11 = vector.load %arg2[%c0_27, %c0_28, %c0_29] : memref<9x32x32xf32, #tpu.memory_space<vmem>>, vector<1x32x32xf32>
    %12 = vector.shape_cast %11 : vector<1x32x32xf32> to vector<32x32xf32>
    %cst_30 = arith.constant dense<0.000000e+00> : vector<256x32xf32>
    %13 = tpu.matmul %10, %12, %cst_30 {dimension_numbers = #tpu.dot_dimension_numbers<[1], [0], [0], [1], [0, 0, 1, 1], [], []>} : vector<256x32xf32>, vector<32x32xf32>, vector<256x32xf32> -> vector<256x32xf32>
    %14 = arith.addf %8, %13 : vector<256x32xf32>
    %c0_31 = arith.constant 0 : index
    %c0_32 = arith.constant 0 : index
    %c1_33 = arith.constant 1 : index
    %c0_34 = arith.constant 0 : index
    %15 = vector.load %arg9[%c0_31, %c0_32, %c1_33, %c0_34] : memref<4x10x10x32xf32, #tpu.memory_space<vmem>>, vector<4x8x8x32xf32>
    %16 = vector.shape_cast %15 : vector<4x8x8x32xf32> to vector<256x32xf32>
    %c1_35 = arith.constant 1 : index
    %c0_36 = arith.constant 0 : index
    %c0_37 = arith.constant 0 : index
    %17 = vector.load %arg2[%c1_35, %c0_36, %c0_37] : memref<9x32x32xf32, #tpu.memory_space<vmem>>, vector<1x32x32xf32>
    %18 = vector.shape_cast %17 : vector<1x32x32xf32> to vector<32x32xf32>
    %cst_38 = arith.constant dense<0.000000e+00> : vector<256x32xf32>
    %19 = tpu.matmul %16, %18, %cst_38 {dimension_numbers = #tpu.dot_dimension_numbers<[1], [0], [0], [1], [0, 0, 1, 1], [], []>} : vector<256x32xf32>, vector<32x32xf32>, vector<256x32xf32> -> vector<256x32xf32>
    %20 = arith.addf %14, %19 : vector<256x32xf32>
    %c0_39 = arith.constant 0 : index
    %c0_40 = arith.constant 0 : index
    %c2 = arith.constant 2 : index
    %c0_41 = arith.constant 0 : index
    %21 = vector.load %arg9[%c0_39, %c0_40, %c2, %c0_41] : memref<4x10x10x32xf32, #tpu.memory_space<vmem>>, vector<4x8x8x32xf32>
    %22 = vector.shape_cast %21 : vector<4x8x8x32xf32> to vector<256x32xf32>
    %c2_42 = arith.constant 2 : index
    %c0_43 = arith.constant 0 : index
    %c0_44 = arith.constant 0 : index
    %23 = vector.load %arg2[%c2_42, %c0_43, %c0_44] : memref<9x32x32xf32, #tpu.memory_space<vmem>>, vector<1x32x32xf32>
    %24 = vector.shape_cast %23 : vector<1x32x32xf32> to vector<32x32xf32>
    %cst_45 = arith.constant dense<0.000000e+00> : vector<256x32xf32>
    %25 = tpu.matmul %22, %24, %cst_45 {dimension_numbers = #tpu.dot_dimension_numbers<[1], [0], [0], [1], [0, 0, 1, 1], [], []>} : vector<256x32xf32>, vector<32x32xf32>, vector<256x32xf32> -> vector<256x32xf32>
    %26 = arith.addf %20, %25 : vector<256x32xf32>
    %c0_46 = arith.constant 0 : index
    %c1_47 = arith.constant 1 : index
    %c0_48 = arith.constant 0 : index
    %c0_49 = arith.constant 0 : index
    %27 = vector.load %arg9[%c0_46, %c1_47, %c0_48, %c0_49] : memref<4x10x10x32xf32, #tpu.memory_space<vmem>>, vector<4x8x8x32xf32>
    %28 = vector.shape_cast %27 : vector<4x8x8x32xf32> to vector<256x32xf32>
    %c3 = arith.constant 3 : index
    %c0_50 = arith.constant 0 : index
    %c0_51 = arith.constant 0 : index
    %29 = vector.load %arg2[%c3, %c0_50, %c0_51] : memref<9x32x32xf32, #tpu.memory_space<vmem>>, vector<1x32x32xf32>
    %30 = vector.shape_cast %29 : vector<1x32x32xf32> to vector<32x32xf32>
    %cst_52 = arith.constant dense<0.000000e+00> : vector<256x32xf32>
    %31 = tpu.matmul %28, %30, %cst_52 {dimension_numbers = #tpu.dot_dimension_numbers<[1], [0], [0], [1], [0, 0, 1, 1], [], []>} : vector<256x32xf32>, vector<32x32xf32>, vector<256x32xf32> -> vector<256x32xf32>
    %32 = arith.addf %26, %31 : vector<256x32xf32>
    %c0_53 = arith.constant 0 : index
    %c1_54 = arith.constant 1 : index
    %c1_55 = arith.constant 1 : index
    %c0_56 = arith.constant 0 : index
    %33 = vector.load %arg9[%c0_53, %c1_54, %c1_55, %c0_56] : memref<4x10x10x32xf32, #tpu.memory_space<vmem>>, vector<4x8x8x32xf32>
    %34 = vector.shape_cast %33 : vector<4x8x8x32xf32> to vector<256x32xf32>
    %c4 = arith.constant 4 : index
    %c0_57 = arith.constant 0 : index
    %c0_58 = arith.constant 0 : index
    %35 = vector.load %arg2[%c4, %c0_57, %c0_58] : memref<9x32x32xf32, #tpu.memory_space<vmem>>, vector<1x32x32xf32>
    %36 = vector.shape_cast %35 : vector<1x32x32xf32> to vector<32x32xf32>
    %cst_59 = arith.constant dense<0.000000e+00> : vector<256x32xf32>
    %37 = tpu.matmul %34, %36, %cst_59 {dimension_numbers = #tpu.dot_dimension_numbers<[1], [0], [0], [1], [0, 0, 1, 1], [], []>} : vector<256x32xf32>, vector<32x32xf32>, vector<256x32xf32> -> vector<256x32xf32>
    %38 = arith.addf %32, %37 : vector<256x32xf32>
    %c0_60 = arith.constant 0 : index
    %c1_61 = arith.constant 1 : index
    %c2_62 = arith.constant 2 : index
    %c0_63 = arith.constant 0 : index
    %39 = vector.load %arg9[%c0_60, %c1_61, %c2_62, %c0_63] : memref<4x10x10x32xf32, #tpu.memory_space<vmem>>, vector<4x8x8x32xf32>
    %40 = vector.shape_cast %39 : vector<4x8x8x32xf32> to vector<256x32xf32>
    %c5 = arith.constant 5 : index
    %c0_64 = arith.constant 0 : index
    %c0_65 = arith.constant 0 : index
    %41 = vector.load %arg2[%c5, %c0_64, %c0_65] : memref<9x32x32xf32, #tpu.memory_space<vmem>>, vector<1x32x32xf32>
    %42 = vector.shape_cast %41 : vector<1x32x32xf32> to vector<32x32xf32>
    %cst_66 = arith.constant dense<0.000000e+00> : vector<256x32xf32>
    %43 = tpu.matmul %40, %42, %cst_66 {dimension_numbers = #tpu.dot_dimension_numbers<[1], [0], [0], [1], [0, 0, 1, 1], [], []>} : vector<256x32xf32>, vector<32x32xf32>, vector<256x32xf32> -> vector<256x32xf32>
    %44 = arith.addf %38, %43 : vector<256x32xf32>
    %c0_67 = arith.constant 0 : index
    %c2_68 = arith.constant 2 : index
    %c0_69 = arith.constant 0 : index
    %c0_70 = arith.constant 0 : index
    %45 = vector.load %arg9[%c0_67, %c2_68, %c0_69, %c0_70] : memref<4x10x10x32xf32, #tpu.memory_space<vmem>>, vector<4x8x8x32xf32>
    %46 = vector.shape_cast %45 : vector<4x8x8x32xf32> to vector<256x32xf32>
    %c6 = arith.constant 6 : index
    %c0_71 = arith.constant 0 : index
    %c0_72 = arith.constant 0 : index
    %47 = vector.load %arg2[%c6, %c0_71, %c0_72] : memref<9x32x32xf32, #tpu.memory_space<vmem>>, vector<1x32x32xf32>
    %48 = vector.shape_cast %47 : vector<1x32x32xf32> to vector<32x32xf32>
    %cst_73 = arith.constant dense<0.000000e+00> : vector<256x32xf32>
    %49 = tpu.matmul %46, %48, %cst_73 {dimension_numbers = #tpu.dot_dimension_numbers<[1], [0], [0], [1], [0, 0, 1, 1], [], []>} : vector<256x32xf32>, vector<32x32xf32>, vector<256x32xf32> -> vector<256x32xf32>
    %50 = arith.addf %44, %49 : vector<256x32xf32>
    %c0_74 = arith.constant 0 : index
    %c2_75 = arith.constant 2 : index
    %c1_76 = arith.constant 1 : index
    %c0_77 = arith.constant 0 : index
    %51 = vector.load %arg9[%c0_74, %c2_75, %c1_76, %c0_77] : memref<4x10x10x32xf32, #tpu.memory_space<vmem>>, vector<4x8x8x32xf32>
    %52 = vector.shape_cast %51 : vector<4x8x8x32xf32> to vector<256x32xf32>
    %c7 = arith.constant 7 : index
    %c0_78 = arith.constant 0 : index
    %c0_79 = arith.constant 0 : index
    %53 = vector.load %arg2[%c7, %c0_78, %c0_79] : memref<9x32x32xf32, #tpu.memory_space<vmem>>, vector<1x32x32xf32>
    %54 = vector.shape_cast %53 : vector<1x32x32xf32> to vector<32x32xf32>
    %cst_80 = arith.constant dense<0.000000e+00> : vector<256x32xf32>
    %55 = tpu.matmul %52, %54, %cst_80 {dimension_numbers = #tpu.dot_dimension_numbers<[1], [0], [0], [1], [0, 0, 1, 1], [], []>} : vector<256x32xf32>, vector<32x32xf32>, vector<256x32xf32> -> vector<256x32xf32>
    %56 = arith.addf %50, %55 : vector<256x32xf32>
    %c0_81 = arith.constant 0 : index
    %c2_82 = arith.constant 2 : index
    %c2_83 = arith.constant 2 : index
    %c0_84 = arith.constant 0 : index
    %57 = vector.load %arg9[%c0_81, %c2_82, %c2_83, %c0_84] : memref<4x10x10x32xf32, #tpu.memory_space<vmem>>, vector<4x8x8x32xf32>
    %58 = vector.shape_cast %57 : vector<4x8x8x32xf32> to vector<256x32xf32>
    %c8 = arith.constant 8 : index
    %c0_85 = arith.constant 0 : index
    %c0_86 = arith.constant 0 : index
    %59 = vector.load %arg2[%c8, %c0_85, %c0_86] : memref<9x32x32xf32, #tpu.memory_space<vmem>>, vector<1x32x32xf32>
    %60 = vector.shape_cast %59 : vector<1x32x32xf32> to vector<32x32xf32>
    %cst_87 = arith.constant dense<0.000000e+00> : vector<256x32xf32>
    %61 = tpu.matmul %58, %60, %cst_87 {dimension_numbers = #tpu.dot_dimension_numbers<[1], [0], [0], [1], [0, 0, 1, 1], [], []>} : vector<256x32xf32>, vector<32x32xf32>, vector<256x32xf32> -> vector<256x32xf32>
    %62 = arith.addf %56, %61 : vector<256x32xf32>
    %c0_88 = arith.constant 0 : index
    %c0_89 = arith.constant 0 : index
    %63 = vector.load %arg4[%c0_88, %c0_89] : memref<1x32xf32, #tpu.memory_space<vmem>>, vector<1x32xf32>
    %64 = vector.broadcast %63 : vector<1x32xf32> to vector<256x32xf32>
    %65 = arith.addf %62, %64 : vector<256x32xf32>
    %cst_90 = arith.constant 0.000000e+00 : f32
    %66 = vector.broadcast %cst_90 : f32 to vector<256x32xf32>
    %67 = arith.maximumf %65, %66 : vector<256x32xf32>
    %68 = vector.shape_cast %67 : vector<256x32xf32> to vector<4x8x8x32xf32>
    %c0_91 = arith.constant 0 : index
    %c1_92 = arith.constant 1 : index
    %c1_93 = arith.constant 1 : index
    %c0_94 = arith.constant 0 : index
    %69 = vector.load %arg9[%c0_91, %c1_92, %c1_93, %c0_94] : memref<4x10x10x32xf32, #tpu.memory_space<vmem>>, vector<4x8x8x32xf32>
    tpu.vector_store %arg9[%c0_91, %c1_92, %c1_93, %c0_94], %68 {strides = array<i32>} : memref<4x10x10x32xf32, #tpu.memory_space<vmem>>, vector<4x8x8x32xf32>,
    %cst_95 = arith.constant 0.000000e+00 : f32
    %70 = vector.broadcast %cst_95 : f32 to vector<256x32xf32>
    %c0_96 = arith.constant 0 : index
    %c0_97 = arith.constant 0 : index
    %c0_98 = arith.constant 0 : index
    %c0_99 = arith.constant 0 : index
    %71 = vector.load %arg9[%c0_96, %c0_97, %c0_98, %c0_99] : memref<4x10x10x32xf32, #tpu.memory_space<vmem>>, vector<4x8x8x32xf32>
    %72 = vector.shape_cast %71 : vector<4x8x8x32xf32> to vector<256x32xf32>
    %c0_100 = arith.constant 0 : index
    %c0_101 = arith.constant 0 : index
    %c0_102 = arith.constant 0 : index
    %73 = vector.load %arg3[%c0_100, %c0_101, %c0_102] : memref<9x32x32xf32, #tpu.memory_space<vmem>>, vector<1x32x32xf32>
    %74 = vector.shape_cast %73 : vector<1x32x32xf32> to vector<32x32xf32>
    %cst_103 = arith.constant dense<0.000000e+00> : vector<256x32xf32>
    %75 = tpu.matmul %72, %74, %cst_103 {dimension_numbers = #tpu.dot_dimension_numbers<[1], [0], [0], [1], [0, 0, 1, 1], [], []>} : vector<256x32xf32>, vector<32x32xf32>, vector<256x32xf32> -> vector<256x32xf32>
    %76 = arith.addf %70, %75 : vector<256x32xf32>
    %c0_104 = arith.constant 0 : index
    %c0_105 = arith.constant 0 : index
    %c1_106 = arith.constant 1 : index
    %c0_107 = arith.constant 0 : index
    %77 = vector.load %arg9[%c0_104, %c0_105, %c1_106, %c0_107] : memref<4x10x10x32xf32, #tpu.memory_space<vmem>>, vector<4x8x8x32xf32>
    %78 = vector.shape_cast %77 : vector<4x8x8x32xf32> to vector<256x32xf32>
    %c1_108 = arith.constant 1 : index
    %c0_109 = arith.constant 0 : index
    %c0_110 = arith.constant 0 : index
    %79 = vector.load %arg3[%c1_108, %c0_109, %c0_110] : memref<9x32x32xf32, #tpu.memory_space<vmem>>, vector<1x32x32xf32>
    %80 = vector.shape_cast %79 : vector<1x32x32xf32> to vector<32x32xf32>
    %cst_111 = arith.constant dense<0.000000e+00> : vector<256x32xf32>
    %81 = tpu.matmul %78, %80, %cst_111 {dimension_numbers = #tpu.dot_dimension_numbers<[1], [0], [0], [1], [0, 0, 1, 1], [], []>} : vector<256x32xf32>, vector<32x32xf32>, vector<256x32xf32> -> vector<256x32xf32>
    %82 = arith.addf %76, %81 : vector<256x32xf32>
    %c0_112 = arith.constant 0 : index
    %c0_113 = arith.constant 0 : index
    %c2_114 = arith.constant 2 : index
    %c0_115 = arith.constant 0 : index
    %83 = vector.load %arg9[%c0_112, %c0_113, %c2_114, %c0_115] : memref<4x10x10x32xf32, #tpu.memory_space<vmem>>, vector<4x8x8x32xf32>
    %84 = vector.shape_cast %83 : vector<4x8x8x32xf32> to vector<256x32xf32>
    %c2_116 = arith.constant 2 : index
    %c0_117 = arith.constant 0 : index
    %c0_118 = arith.constant 0 : index
    %85 = vector.load %arg3[%c2_116, %c0_117, %c0_118] : memref<9x32x32xf32, #tpu.memory_space<vmem>>, vector<1x32x32xf32>
    %86 = vector.shape_cast %85 : vector<1x32x32xf32> to vector<32x32xf32>
    %cst_119 = arith.constant dense<0.000000e+00> : vector<256x32xf32>
    %87 = tpu.matmul %84, %86, %cst_119 {dimension_numbers = #tpu.dot_dimension_numbers<[1], [0], [0], [1], [0, 0, 1, 1], [], []>} : vector<256x32xf32>, vector<32x32xf32>, vector<256x32xf32> -> vector<256x32xf32>
    %88 = arith.addf %82, %87 : vector<256x32xf32>
    %c0_120 = arith.constant 0 : index
    %c1_121 = arith.constant 1 : index
    %c0_122 = arith.constant 0 : index
    %c0_123 = arith.constant 0 : index
    %89 = vector.load %arg9[%c0_120, %c1_121, %c0_122, %c0_123] : memref<4x10x10x32xf32, #tpu.memory_space<vmem>>, vector<4x8x8x32xf32>
    %90 = vector.shape_cast %89 : vector<4x8x8x32xf32> to vector<256x32xf32>
    %c3_124 = arith.constant 3 : index
    %c0_125 = arith.constant 0 : index
    %c0_126 = arith.constant 0 : index
    %91 = vector.load %arg3[%c3_124, %c0_125, %c0_126] : memref<9x32x32xf32, #tpu.memory_space<vmem>>, vector<1x32x32xf32>
    %92 = vector.shape_cast %91 : vector<1x32x32xf32> to vector<32x32xf32>
    %cst_127 = arith.constant dense<0.000000e+00> : vector<256x32xf32>
    %93 = tpu.matmul %90, %92, %cst_127 {dimension_numbers = #tpu.dot_dimension_numbers<[1], [0], [0], [1], [0, 0, 1, 1], [], []>} : vector<256x32xf32>, vector<32x32xf32>, vector<256x32xf32> -> vector<256x32xf32>
    %94 = arith.addf %88, %93 : vector<256x32xf32>
    %c0_128 = arith.constant 0 : index
    %c1_129 = arith.constant 1 : index
    %c1_130 = arith.constant 1 : index
    %c0_131 = arith.constant 0 : index
    %95 = vector.load %arg9[%c0_128, %c1_129, %c1_130, %c0_131] : memref<4x10x10x32xf32, #tpu.memory_space<vmem>>, vector<4x8x8x32xf32>
    %96 = vector.shape_cast %95 : vector<4x8x8x32xf32> to vector<256x32xf32>
    %c4_132 = arith.constant 4 : index
    %c0_133 = arith.constant 0 : index
    %c0_134 = arith.constant 0 : index
    %97 = vector.load %arg3[%c4_132, %c0_133, %c0_134] : memref<9x32x32xf32, #tpu.memory_space<vmem>>, vector<1x32x32xf32>
    %98 = vector.shape_cast %97 : vector<1x32x32xf32> to vector<32x32xf32>
    %cst_135 = arith.constant dense<0.000000e+00> : vector<256x32xf32>
    %99 = tpu.matmul %96, %98, %cst_135 {dimension_numbers = #tpu.dot_dimension_numbers<[1], [0], [0], [1], [0, 0, 1, 1], [], []>} : vector<256x32xf32>, vector<32x32xf32>, vector<256x32xf32> -> vector<256x32xf32>
    %100 = arith.addf %94, %99 : vector<256x32xf32>
    %c0_136 = arith.constant 0 : index
    %c1_137 = arith.constant 1 : index
    %c2_138 = arith.constant 2 : index
    %c0_139 = arith.constant 0 : index
    %101 = vector.load %arg9[%c0_136, %c1_137, %c2_138, %c0_139] : memref<4x10x10x32xf32, #tpu.memory_space<vmem>>, vector<4x8x8x32xf32>
    %102 = vector.shape_cast %101 : vector<4x8x8x32xf32> to vector<256x32xf32>
    %c5_140 = arith.constant 5 : index
    %c0_141 = arith.constant 0 : index
    %c0_142 = arith.constant 0 : index
    %103 = vector.load %arg3[%c5_140, %c0_141, %c0_142] : memref<9x32x32xf32, #tpu.memory_space<vmem>>, vector<1x32x32xf32>
    %104 = vector.shape_cast %103 : vector<1x32x32xf32> to vector<32x32xf32>
    %cst_143 = arith.constant dense<0.000000e+00> : vector<256x32xf32>
    %105 = tpu.matmul %102, %104, %cst_143 {dimension_numbers = #tpu.dot_dimension_numbers<[1], [0], [0], [1], [0, 0, 1, 1], [], []>} : vector<256x32xf32>, vector<32x32xf32>, vector<256x32xf32> -> vector<256x32xf32>
    %106 = arith.addf %100, %105 : vector<256x32xf32>
    %c0_144 = arith.constant 0 : index
    %c2_145 = arith.constant 2 : index
    %c0_146 = arith.constant 0 : index
    %c0_147 = arith.constant 0 : index
    %107 = vector.load %arg9[%c0_144, %c2_145, %c0_146, %c0_147] : memref<4x10x10x32xf32, #tpu.memory_space<vmem>>, vector<4x8x8x32xf32>
    %108 = vector.shape_cast %107 : vector<4x8x8x32xf32> to vector<256x32xf32>
    %c6_148 = arith.constant 6 : index
    %c0_149 = arith.constant 0 : index
    %c0_150 = arith.constant 0 : index
    %109 = vector.load %arg3[%c6_148, %c0_149, %c0_150] : memref<9x32x32xf32, #tpu.memory_space<vmem>>, vector<1x32x32xf32>
    %110 = vector.shape_cast %109 : vector<1x32x32xf32> to vector<32x32xf32>
    %cst_151 = arith.constant dense<0.000000e+00> : vector<256x32xf32>
    %111 = tpu.matmul %108, %110, %cst_151 {dimension_numbers = #tpu.dot_dimension_numbers<[1], [0], [0], [1], [0, 0, 1, 1], [], []>} : vector<256x32xf32>, vector<32x32xf32>, vector<256x32xf32> -> vector<256x32xf32>
    %112 = arith.addf %106, %111 : vector<256x32xf32>
    %c0_152 = arith.constant 0 : index
    %c2_153 = arith.constant 2 : index
    %c1_154 = arith.constant 1 : index
    %c0_155 = arith.constant 0 : index
    %113 = vector.load %arg9[%c0_152, %c2_153, %c1_154, %c0_155] : memref<4x10x10x32xf32, #tpu.memory_space<vmem>>, vector<4x8x8x32xf32>
    %114 = vector.shape_cast %113 : vector<4x8x8x32xf32> to vector<256x32xf32>
    %c7_156 = arith.constant 7 : index
    %c0_157 = arith.constant 0 : index
    %c0_158 = arith.constant 0 : index
    %115 = vector.load %arg3[%c7_156, %c0_157, %c0_158] : memref<9x32x32xf32, #tpu.memory_space<vmem>>, vector<1x32x32xf32>
    %116 = vector.shape_cast %115 : vector<1x32x32xf32> to vector<32x32xf32>
    %cst_159 = arith.constant dense<0.000000e+00> : vector<256x32xf32>
    %117 = tpu.matmul %114, %116, %cst_159 {dimension_numbers = #tpu.dot_dimension_numbers<[1], [0], [0], [1], [0, 0, 1, 1], [], []>} : vector<256x32xf32>, vector<32x32xf32>, vector<256x32xf32> -> vector<256x32xf32>
    %118 = arith.addf %112, %117 : vector<256x32xf32>
    %c0_160 = arith.constant 0 : index
    %c2_161 = arith.constant 2 : index
    %c2_162 = arith.constant 2 : index
    %c0_163 = arith.constant 0 : index
    %119 = vector.load %arg9[%c0_160, %c2_161, %c2_162, %c0_163] : memref<4x10x10x32xf32, #tpu.memory_space<vmem>>, vector<4x8x8x32xf32>
    %120 = vector.shape_cast %119 : vector<4x8x8x32xf32> to vector<256x32xf32>
    %c8_164 = arith.constant 8 : index
    %c0_165 = arith.constant 0 : index
    %c0_166 = arith.constant 0 : index
    %121 = vector.load %arg3[%c8_164, %c0_165, %c0_166] : memref<9x32x32xf32, #tpu.memory_space<vmem>>, vector<1x32x32xf32>
    %122 = vector.shape_cast %121 : vector<1x32x32xf32> to vector<32x32xf32>
    %cst_167 = arith.constant dense<0.000000e+00> : vector<256x32xf32>
    %123 = tpu.matmul %120, %122, %cst_167 {dimension_numbers = #tpu.dot_dimension_numbers<[1], [0], [0], [1], [0, 0, 1, 1], [], []>} : vector<256x32xf32>, vector<32x32xf32>, vector<256x32xf32> -> vector<256x32xf32>
    %124 = arith.addf %118, %123 : vector<256x32xf32>
    %c0_168 = arith.constant 0 : index
    %c0_169 = arith.constant 0 : index
    %125 = vector.load %arg5[%c0_168, %c0_169] : memref<1x32xf32, #tpu.memory_space<vmem>>, vector<1x32xf32>
    %126 = vector.broadcast %125 : vector<1x32xf32> to vector<256x32xf32>
    %127 = arith.addf %124, %126 : vector<256x32xf32>
    %128 = vector.shape_cast %127 : vector<256x32xf32> to vector<4x64x32xf32>
    %cst_170 = arith.constant dense<0.000000e+00> : vector<4x32xf32>
    %129 = vector.multi_reduction <add>, %128, %cst_170 [1] : vector<4x64x32xf32> to vector<4x32xf32>
    %cst_171 = arith.constant 6.400000e+01 : f32
    %130 = vector.broadcast %cst_171 : f32 to vector<4x32xf32>
    %131 = arith.divf %129, %130 : vector<4x32xf32>
    %c0_172 = arith.constant 0 : index
    %c0_173 = arith.constant 0 : index
    %132 = vector.load %arg6[%c0_172, %c0_173] : memref<32x2xf32, #tpu.memory_space<vmem>>, vector<32x2xf32>
    %cst_174 = arith.constant dense<0.000000e+00> : vector<4x2xf32>
    %133 = tpu.matmul %131, %132, %cst_174 {dimension_numbers = #tpu.dot_dimension_numbers<[1], [0], [0], [1], [0, 0, 1, 1], [], []>} : vector<4x32xf32>, vector<32x2xf32>, vector<4x2xf32> -> vector<4x2xf32>
    %cst_175 = arith.constant 0.000000e+00 : f32
    %134 = vector.broadcast %cst_175 : f32 to vector<4x2xf32>
    %135 = arith.maximumf %133, %134 : vector<4x2xf32>
    %c0_176 = arith.constant 0 : index
    %c0_177 = arith.constant 0 : index
    %136 = vector.load %arg7[%c0_176, %c0_177] : memref<2x32xf32, #tpu.memory_space<vmem>>, vector<2x32xf32>
    %cst_178 = arith.constant dense<0.000000e+00> : vector<4x32xf32>
    %137 = tpu.matmul %135, %136, %cst_178 {dimension_numbers = #tpu.dot_dimension_numbers<[1], [0], [0], [1], [0, 0, 1, 1], [], []>} : vector<4x2xf32>, vector<2x32xf32>, vector<4x32xf32> -> vector<4x32xf32>
    %138 = arith.negf %137 : vector<4x32xf32>
    %139 = math.exp %138 : vector<4x32xf32>
    %cst_179 = arith.constant 1.000000e+00 : f32
    %140 = vector.broadcast %cst_179 : f32 to vector<4x32xf32>
    %141 = arith.addf %140, %139 : vector<4x32xf32>
    %142 = arith.divf %140, %141 : vector<4x32xf32>
    %143 = vector.shape_cast %6 : vector<4x8x8x32xf32> to vector<4x64x32xf32>
    %144 = vector.shape_cast %142 : vector<4x32xf32> to vector<4x1x32xf32>
    %145 = vector.broadcast %144 : vector<4x1x32xf32> to vector<4x64x32xf32>
    %146 = arith.mulf %128, %145 : vector<4x64x32xf32>
    %147 = arith.addf %146, %143 : vector<4x64x32xf32>
    %cst_180 = arith.constant 0.000000e+00 : f32
    %148 = vector.broadcast %cst_180 : f32 to vector<4x64x32xf32>
    %149 = arith.maximumf %147, %148 : vector<4x64x32xf32>
    %150 = vector.shape_cast %149 : vector<4x64x32xf32> to vector<4x8x8x32xf32>
    %c0_181 = arith.constant 0 : index
    %c0_182 = arith.constant 0 : index
    %c0_183 = arith.constant 0 : index
    %c0_184 = arith.constant 0 : index
    %151 = vector.load %arg8[%c0_181, %c0_182, %c0_183, %c0_184] : memref<4x8x8x32xf32, #tpu.memory_space<vmem>>, vector<4x8x8x32xf32>
    tpu.vector_store %arg8[%c0_181, %c0_182, %c0_183, %c0_184], %150 {strides = array<i32>} : memref<4x8x8x32xf32, #tpu.memory_space<vmem>>, vector<4x8x8x32xf32>,
    return
  }
  func.func @transform_0(%arg0: i32) -> (i32, i32, i32, i32) {
    %c0_i32 = arith.constant 0 : i32
    %c0_i32_0 = arith.constant 0 : i32
    %c0_i32_1 = arith.constant 0 : i32
    %c0_i32_2 = arith.constant 0 : i32
    return %arg0, %c0_i32, %c0_i32_0, %c0_i32_1 : i32, i32, i32, i32
  }
  func.func @transform_1(%arg0: i32) -> (i32, i32, i32) {
    %c0_i32 = arith.constant 0 : i32
    %c0_i32_0 = arith.constant 0 : i32
    %c0_i32_1 = arith.constant 0 : i32
    %c0_i32_2 = arith.constant 0 : i32
    return %c0_i32, %c0_i32_0, %c0_i32_1 : i32, i32, i32
  }
  func.func @transform_2(%arg0: i32) -> (i32, i32, i32) {
    %c0_i32 = arith.constant 0 : i32
    %c0_i32_0 = arith.constant 0 : i32
    %c0_i32_1 = arith.constant 0 : i32
    %c0_i32_2 = arith.constant 0 : i32
    return %c0_i32, %c0_i32_0, %c0_i32_1 : i32, i32, i32
  }
  func.func @transform_3(%arg0: i32) -> (i32, i32) {
    %c0_i32 = arith.constant 0 : i32
    %c0_i32_0 = arith.constant 0 : i32
    %c0_i32_1 = arith.constant 0 : i32
    return %c0_i32, %c0_i32_0 : i32, i32
  }
  func.func @transform_4(%arg0: i32) -> (i32, i32) {
    %c0_i32 = arith.constant 0 : i32
    %c0_i32_0 = arith.constant 0 : i32
    %c0_i32_1 = arith.constant 0 : i32
    return %c0_i32, %c0_i32_0 : i32, i32
  }
  func.func @transform_5(%arg0: i32) -> (i32, i32) {
    %c0_i32 = arith.constant 0 : i32
    %c0_i32_0 = arith.constant 0 : i32
    %c0_i32_1 = arith.constant 0 : i32
    return %c0_i32, %c0_i32_0 : i32, i32
  }
  func.func @transform_6(%arg0: i32) -> (i32, i32) {
    %c0_i32 = arith.constant 0 : i32
    %c0_i32_0 = arith.constant 0 : i32
    %c0_i32_1 = arith.constant 0 : i32
    return %c0_i32, %c0_i32_0 : i32, i32
  }
  func.func @transform_7(%arg0: i32) -> (i32, i32, i32, i32) {
    %c0_i32 = arith.constant 0 : i32
    %c0_i32_0 = arith.constant 0 : i32
    %c0_i32_1 = arith.constant 0 : i32
    %c0_i32_2 = arith.constant 0 : i32
    return %arg0, %c0_i32, %c0_i32_0, %c0_i32_1 : i32, i32, i32, i32
  }
}

</mosaic_0001>

<bundles_post_ra>
// kernel: tpu_custom_call.1
= control target key start
LH: loop header
LB: loop body
LE: loop exit
PB: predicated region body
PF: predicated region fallthrough
CT: control target
= control target key end

     0   :  { %12 = vsyncpa [#allocation4], 0  ;;  %s13800_s0 = inlined_call_operand.hbm [shape: f32[8,8,8,32], index: 0, kind: input, shape index: {}]   ;;  %s13801_s1 = inlined_call_operand.hbm [shape: f32[9,32,32], index: 1, kind: input, shape index: {}]   ;;  %s13802_s2 = inlined_call_operand.hbm [shape: f32[9,32,32], index: 2, kind: input, shape index: {}]   ;;  %s13803_s3 = inlined_call_operand.vmem [shape: f32[1,32], index: 3, kind: input, shape index: {}]   ;;  %s13804_s4 = inlined_call_operand.vmem [shape: f32[1,32], index: 4, kind: input, shape index: {}]   ;;  %s13805_s5 = inlined_call_operand.vmem [shape: f32[32,2], index: 5, kind: input, shape index: {}]   ;;  %s13806_s6 = inlined_call_operand.vmem [shape: f32[2,32], index: 6, kind: input, shape index: {}]   ;;  %s13807_s7 = inlined_call_operand.hbm [shape: f32[8,8,8,32], index: 7, kind: output, shape index: {}]  }
   0x1   :  { %14 = vsyncpa [#allocation4 + $0x1], 0 }
   0x2   :  { %15 = vsyncpa [#allocation7], 0 }
   0x3   :  { %16 = vsyncpa [#allocation5], 0 }
   0x4   :  { %18 = vsyncpa [#allocation5 + $0x1], 0  ;;  %s11304_s24 = smov 0   ;;  %s11306_s25 = smov 0  }
   0x5   :  { %s11308_s26 = smov 0   ;;  %s11310_s27 = smov 0  }
   0x6 LB: > { %s11325_s28 = sadd.s32 4294967295, %s11250_s27   ;;  %s8068_s29 = sadd.s32 4294967294, %s11250_s27   ;;  %s11250_s27 = sphi %s11310_s27, %s14142_s27   ;;  %s11246_s26 = sphi %s11308_s26, %s14141_s26   ;;  %s11242_s25 = sphi %s11306_s25, %s14140_s25   ;;  %s11238_s24 = sphi %s11304_s24, %s14139_s24  }
   0x7   : > { %p44_p0 = scmp.ne.s32.totalorder %s11242_s25, %s11238_s24  ;;  %p13808_p1 = scmp.eq.s32.totalorder %s11325_s28, 0 }
   0x8   : > { %p200_p3 = scmp.eq.s32.totalorder %s8068_s29, 1  ;;  %p8069_p5 = scmp.ge.s32.totalorder %s11250_s27, 1 }
   0x9   : > { %p11334_p4 = por %p13808_p1, %p44_p0  ;;  %p207_p7 = scmp.lt.s32.totalorder %s11250_s27, 3 }
   0xa   : > { %p11339_p6 = por %p200_p3, %p44_p0  ;;  %s11252_s10 = smov [#allocation6]  }
   0xb   : > { %s13944_s30 = scalar_select %p11334_p4, 1, 0 }
   0xc   : > { %s13945_s8 = scalar_select %p11339_p6, 1, 0 }
   0xd   : > { %p11344_p8 = pnand %p8069_p5, %p207_p7  ;;  %s219_s11 = sshll.u32 %s11252_s10, 4  ;;  %s11348_s11 = int_to_ptr.vmem [resolvable:$true] %s219_s11 }
   0xe   : > { %s11253_s13 = smov [#allocation8]   ;;  %s11094_s17 = scalar_lea.hbm %s13801_s1, 4608 }
   0xf   : > { %p11027_p9 = pneg %p11344_p8  ;;  %s232_s14 = sshll.u32 %s11253_s13, 4  ;;  %s11359_s14 = int_to_ptr.vmem [resolvable:$true] %s232_s14 }
  0x10   : > { %p11095_p12 = scmp.ne.s32.totalorder %s13801_s1, %s11094_s17  ;;  %p11101_p5 = scmp.lt.u32.totalorder %s11094_s17, %s13801_s1 }
  0x11   : > { %p11355_p11 = pnand %p11027_p9, %p13808_p1 }
  0x13   : > { %p11096_p13 = pneg %p11355_p11 }
  0x15   : > { %p11097_p0 = pnand %p11096_p13, %p11095_p12 }
  0x17   : > { %p11098_p3 = pneg %p11097_p0 }
  0x19   : > { %p11103_p7 = pnand %p11101_p5, %p11098_p3 }
  0x1b   : > { %11106 = shalt.err (!%p11103_p7)
}
  0x1c   : > { %s11107_s22 = scalar_lea.vmem %s11348_s11, 4608  ;;  %p11115_p2 = scmp.lt.s32.totalorder %s11348_s11, %s11348_s11 }
  0x1d   : > { %p11108_p9 = scmp.ne.s32.totalorder %s11348_s11, %s11107_s22  ;;  %p11116_p12 = scmp.lt.s32.totalorder %s11107_s22, %s11107_s22 }
  0x1f   : > { %p11110_p10 = pnand %p11108_p9, %p11096_p13  ;;  %p11117_p0 = por %p11116_p12, %p11115_p2 }
  0x21   : > { %p11111_p1 = pneg %p11110_p10 }
  0x23   : > { %p11118_p6 = pnand %p11117_p0, %p11111_p1 }
  0x25   : > { %11121 = shalt.err (!%p11118_p6)
}
  0x26   : > { %s13809_s23 = smov 128   ;;  %s11255_s29 = smov 8  }
  0x27   : > { %11030 = dma.hbm_to_vmem [thread:$0]  (!%p11355_p11), %s13801_s1, 4608, %s11348_s11, [#allocation7], %s13809_s23, %s13809_s23, %s11255_s29  }
  0x28   : > { %s11122_s17 = scalar_lea.hbm %s13802_s2, 4608 }
  0x29   : > { %p11123_p1 = scmp.ne.s32.totalorder %s13802_s2, %s11122_s17  ;;  %p11129_p10 = scmp.lt.u32.totalorder %s11122_s17, %s13802_s2 }
  0x2b   : > { %p11125_p2 = pnand %p11123_p1, %p11096_p13 }
  0x2d   : > { %p11126_p6 = pneg %p11125_p2 }
  0x2f   : > { %p11131_p3 = pnand %p11129_p10, %p11126_p6 }
  0x31   : > { %11134 = shalt.err (!%p11131_p3)
}
  0x32   : > { %s11135_s11 = scalar_lea.vmem %s11359_s14, 4608  ;;  %p11143_p12 = scmp.lt.s32.totalorder %s11359_s14, %s11359_s14 }
  0x33   : > { %p11136_p5 = scmp.ne.s32.totalorder %s11359_s14, %s11135_s11  ;;  %p11144_p0 = scmp.lt.s32.totalorder %s11135_s11, %s11135_s11 }
  0x35   : > { %p11138_p7 = pnand %p11136_p5, %p11096_p13  ;;  %p11145_p1 = por %p11144_p0, %p11143_p12 }
  0x37   : > { %p11139_p9 = pneg %p11138_p7 }
  0x39   : > { %p11146_p2 = pnand %p11145_p1, %p11139_p9 }
  0x3b   : > { %11149 = shalt.err (!%p11146_p2)
}
  0x3c   : > { %11033 = dma.hbm_to_vmem [thread:$0]  (!%p11355_p11), %s13802_s2, 4608, %s11359_s14, [#allocation7], %s13809_s23, %s13809_s23, %s11255_s29  }
  0x3d   : > { %s11420_s12 = sadd.s32 1, %s11250_s27   ;;  %s31_s13 = sadd.s32 1, %s11246_s26 }
  0x3e   : > { %s28_s15 = ssub.s32 %s11250_s27, %s11420_s12  ;;  %p38_p13 = scmp.ne.s32.totalorder %s11246_s26, %s11242_s25 }
  0x3f   : > { %p29_p6 = scmp.eq.s32.totalorder %s28_s15, 0  ;;  %p39_p10 = scmp.eq.s32.totalorder %s11250_s27, 0 }
  0x40   : > { %p13948_p3 = scmp.eq.s32.totalorder %s11325_s28, 1  ;;  %p11044_p7 = scmp.lt.s32.totalorder %s11250_s27, 2 }
  0x41   : > { %s11436_s17 = scalar_select %p29_p6, %s11246_s26, %s31_s13  }
  0x42   : > { %p11430_p5 = por %p13948_p3, %p38_p13  ;;  %p40_p9 = por %p39_p10, %p38_p13 }
  0x43   : > { %s258_s18 = sand.u32 1, %s11246_s26   ;;  %s8671_s14 = sshll.u32 %s11250_s27, 12 }
  0x44   : > { %s13949_s16 = scalar_select %p11430_p5, 1, 0 }
  0x45   : > { %s8073_s19 = sshll.u32 %s258_s18, 8  ;;  %s11443_s11 = scalar_lea.hbm %s13800_s0, %s8671_s14 }
  0x46   : > { %s262_s22 = scalar_lea.vmem [#allocation3], %s8073_s19  ;;  %p11447_p11 = pnand %p11044_p7, %p40_p9 }
  0x47   : > { %s270_s10 = sshll.u32 %s262_s22, 4  ;;  %s11451_s15 = scalar_lea.sflag [#allocation4], %s258_s18  ;;  %s11445_s10 = int_to_ptr.vmem [resolvable:$true] %s270_s10 }
  0x48   : > { %s11150_s23 = scalar_lea.hbm %s11443_s11, 4096  ;;  %p11152_p0 = pneg %p11447_p11 }
  0x49   : > { %p11151_p12 = scmp.ne.s32.totalorder %s11443_s11, %s11150_s23  ;;  %s11155_s20 = scalar_lea.hbm %s13800_s0, 8192 }
  0x4a   : > { %p11156_p13 = scmp.lt.u32.totalorder %s11443_s11, %s13800_s0  ;;  %p11157_p6 = scmp.lt.u32.totalorder %s11155_s20, %s11150_s23 }
  0x4b   : > { %p11153_p1 = pnand %p11152_p0, %p11151_p12  ;;  %p11159_p3 = scmp.lt.u32.totalorder %s11150_s23, %s11443_s11 }
  0x4c   : > { %p11158_p10 = por %p11157_p6, %p11156_p13 }
  0x4d   : > { %p11154_p2 = pneg %p11153_p1 }
  0x4e   : > { %p11160_p7 = por %p11159_p3, %p11158_p10 }
  0x50   : > { %p11161_p9 = pnand %p11160_p7, %p11154_p2 }
  0x52   : > { %11164 = shalt.err (!%p11161_p9)
}
  0x53   : > { %s11165_s18 = scalar_lea.vmem %s11445_s10, 4096  ;;  %s11256_s19 = smov [#allocation3]  }
  0x54   : > { %p11166_p12 = scmp.ne.s32.totalorder %s11445_s10, %s11165_s18  ;;  %s11170_s14 = sshll.u32 %s11256_s19, 4  ;;  %s11171_s14 = int_to_ptr.vmem [resolvable:$false] %s11170_s14 }
  0x55   : > { %s11172_s21 = scalar_lea.vmem %s11171_s14, 8192  ;;  %p11173_p4 = scmp.lt.s32.totalorder %s11445_s10, %s11171_s14 }
  0x56   : > { %p11168_p1 = pnand %p11166_p12, %p11152_p0  ;;  %p11174_p13 = scmp.lt.s32.totalorder %s11172_s21, %s11165_s18 }
  0x58   : > { %p11169_p5 = pneg %p11168_p1  ;;  %p11175_p6 = por %p11174_p13, %p11173_p4 }
  0x5a   : > { %p11176_p10 = pnand %p11175_p6, %p11169_p5 }
  0x5c   : > { %11179 = shalt.err (!%p11176_p10)
}
  0x5d   : > { %s13951_s23 = smov 128   ;;  %282 = sbr.rel (%p11344_p8) target bundleno = 2216 (0x8a8), region = 48 }
  0x5e   : > { %11037 = dma.hbm_to_vmem [thread:$0]  (!%p11447_p11), %s11443_s11, 4096, %s11445_s10, %s11451_s15, %s13951_s23, %s13951_s23, %s11255_s29  }
  0x64   : > { %s11485_s20 = sand.u32 1, %s11242_s25   ;;  %p13952_p4 = scmp.ne.s32.totalorder %s13944_s30, 0 }
  0x65   : > { %s8078_s22 = sshll.u32 %s11485_s20, 8  ;;  %s285_s18 = scalar_lea.sflag [#allocation4], %s11485_s20 }
  0x66   : > { %s11491_s13 = scalar_lea.vmem [#allocation3], %s8078_s22 }
  0x67   : > { %11225 = dma.done.wait (%p13952_p4), %s285_s18, 4096  }
  0x68   : > { %11227 = vsyncadd (%p13952_p4), %s285_s18, 4294963200  ;;  %p13953_p5 = scmp.eq.s32.totalorder %s11325_s28, 0 }
  0x6a   : > { %11229 = dma.done.wait (%p13953_p5), [#allocation7], 9216   ;;  %p13954_p8 = pmov %p13953_p5 }
  0x6b   : > { %vm329_vm0 = vcmask 261120   ;;  %vm331_vm1 = vcmask 254976   ;;  %vm348_vm2 = vcmask 253952   ;;  %v13812_v0 = vmov 0.0   ;;  %v563_v1 = vld [vmem:[#allocation6 + $0x20] sm:$0xff]  ;;  %v564_v2 = vld [vmem:[#allocation6 + $0x28] sm:$0xff] }
  0x6c   : > { %11231 = vsyncadd (%p13954_p8), [#allocation7], 4294958080  ;;  %330 = vst.msk [vmem:[#allocation2] sm:$0xff] %vm329_vm0, %v13812_v0  ;;  %v565_v3 = vld [vmem:[#allocation6 + $0x30] sm:$0xff]  ;;  %v10353_v4 = vpack.c.bf16 %v564_v2, %v563_v1  ;;  %v566_v5 = vld [vmem:[#allocation6 + $0x38] sm:$0xff]  ;;  %vm11259_vm3 = vmmov 0  }
  0x6d   : > { %332 = vst.msk [vmem:[#allocation2 + $0x8] sm:$0x3] %vm331_vm1, %v13812_v0  ;;  %334 = vst.msk [vmem:[#allocation2 + $0xa8] sm:$0x3] %vm331_vm1, %v13812_v0  ;;  %v11694_v7 = vld [vmem:[%s11491_s13] sm:$0xff]  ;;  %v10357_v8 = vpack.c.bf16 %v566_v5, %v565_v3  ;;  %v527_v10 = vld [vmem:[#allocation6 + $0x8] sm:$0xff] }
  0x6e   : > { %333 = vst.msk [vmem:[#allocation2 + $0xa0] sm:$0xff] %vm329_vm0, %v13812_v0  ;;  %335 = vst.msk [vmem:[#allocation2 + $0x140] sm:$0xff] %vm329_vm0, %v13812_v0  ;;  %v526_v9 = vld [vmem:[#allocation6] sm:$0xff]  ;;  %v11700_v11 = vld [vmem:[%s11491_s13 + $0x8] sm:$0xff]  ;;  %10354 = vmatprep.subr.bf16.mxu0 %v10353_v4  ;;  %vm7708_vm4 = vcmask 1041408   ;;  %vm7624_vm5 = vcmask 1041409  }
  0x6f   : > { %336 = vst.msk [vmem:[#allocation2 + $0x148] sm:$0x3] %vm331_vm1, %v13812_v0  ;;  %338 = vst.msk [vmem:[#allocation2 + $0x1e8] sm:$0x3] %vm331_vm1, %v13812_v0  ;;  %v11705_v12 = vld [vmem:[%s11491_s13 + $0x10] sm:$0xff]  ;;  %v11708_v13 = vld [vmem:[%s11491_s13 + $0x18] sm:$0xff]  ;;  %10356 = vmatpush3.bf16.msra.mxu0 %v10353_v4  ;;  %v10361_v17 = vpack.c.bf16 %v527_v10, %v526_v9 }
  0x70   : > { %337 = vst.msk [vmem:[#allocation2 + $0x1e0] sm:$0xff] %vm329_vm0, %v13812_v0  ;;  %340 = vst.msk [vmem:[#allocation2 + $0x90] sm:$0xff] %vm329_vm0, %v13812_v0  ;;  %v11711_v14 = vld [vmem:[%s11491_s13 + $0x20] sm:$0xff]  ;;  %v11720_v15 = vld [vmem:[%s11491_s13 + $0x28] sm:$0xff]  ;;  %10358 = vmatprep.subr.bf16.mxu0 %v10357_v8  ;;  %vm7626_vm6 = vcmask 1042434   ;;  %vm7628_vm7 = vcmask 1043459  }
  0x71   : > { %341 = vst.msk [vmem:[#allocation2 + $0x98] sm:$0x3] %vm331_vm1, %v13812_v0  ;;  %343 = vst.msk [vmem:[#allocation2 + $0x138] sm:$0x3] %vm331_vm1, %v13812_v0  ;;  %v11723_v16 = vld [vmem:[%s11491_s13 + $0x30] sm:$0xff]  ;;  %v11730_v18 = vld [vmem:[%s11491_s13 + $0x40] sm:$0xff] }
  0x72   : > { %342 = vst.msk [vmem:[#allocation2 + $0x130] sm:$0xff] %vm329_vm0, %v13812_v0  ;;  %344 = vst.msk [vmem:[#allocation2 + $0x1d0] sm:$0xff] %vm329_vm0, %v13812_v0  ;;  %v11733_v19 = vld [vmem:[%s11491_s13 + $0x48] sm:$0xff]  ;;  %v11736_v20 = vld [vmem:[%s11491_s13 + $0x50] sm:$0xff]  ;;  %vm7704_vm8 = vcmask 15360   ;;  %s13667_s29 = scalar_lea.vmem [#allocation9], %s8078_s22 }
  0x73   : > { %345 = vst.msk [vmem:[#allocation2 + $0x1d8] sm:$0x3] %vm331_vm1, %v13812_v0  ;;  %347 = vst.msk [vmem:[#allocation2 + $0x278] sm:$0x3] %vm331_vm1, %v13812_v0  ;;  %v11745_v21 = vld [vmem:[%s11491_s13 + $0x58] sm:$0xff]  ;;  %v11748_v22 = vld [vmem:[%s11491_s13 + $0x60] sm:$0xff]  ;;  %10360 = vmatpush3.bf16.msra.mxu0 %v10357_v8 }
  0x74   : > { %346 = vst.msk [vmem:[#allocation2 + $0x270] sm:$0xff] %vm329_vm0, %v13812_v0  ;;  %v530_v6 = vld [vmem:[#allocation2 + $0x1] sm:$0xff]  ;;  %13955 = vst [vmem:[#allocation13_spill] sm:$0xff] %v11694_v7  ;;  %v11760_v24 = vld [vmem:[%s11491_s13 + $0x70] sm:$0xff]  ;;  %10362 = vmatprep.subr.bf16.mxu0 %v10361_v17  ;;  %s8673_s22 = sshll.u32 %s11325_s28, 12  ;;  %s7976_s11 = sshll.u32 %s13667_s29, 4  ;;  %s13728_s11 = int_to_ptr.vmem [resolvable:$true] %s7976_s11 }
  0x75   : > { %350 = vst.msk [vmem:[#allocation2 + $0x10] sm:$0x1] %vm348_vm2, %v13812_v0  ;;  %351 = vst.msk [vmem:[#allocation2 + $0x20] sm:$0x1] %vm348_vm2, %v13812_v0  ;;  %9337 = vmatprep.mubr.msk.f32.mxu0 %vm329_vm0, %v530_v6  ;;  %v11751_v23 = vld [vmem:[%s11491_s13 + $0x68] sm:$0xff]  ;;  %v11763_v25 = vld [vmem:[%s11491_s13 + $0x80] sm:$0xff]  ;;  %s13726_s15 = scalar_lea.hbm %s13807_s7, %s8673_s22 }
  0x76   : > { %352 = vst.msk [vmem:[#allocation2 + $0x30] sm:$0x1] %vm348_vm2, %v13812_v0  ;;  %353 = vst.msk [vmem:[#allocation2 + $0x40] sm:$0x1] %vm348_vm2, %v13812_v0  ;;  %v528_v26 = vld [vmem:[#allocation6 + $0x10] sm:$0xff]  ;;  %v529_v27 = vld [vmem:[#allocation6 + $0x18] sm:$0xff] }
  0x77   : > { %354 = vst.msk [vmem:[#allocation2 + $0x50] sm:$0x1] %vm348_vm2, %v13812_v0  ;;  %355 = vst.msk [vmem:[#allocation2 + $0x60] sm:$0x1] %vm348_vm2, %v13812_v0  ;;  %v11770_v28 = vld [vmem:[%s11491_s13 + $0x88] sm:$0xff]  ;;  %v10365_v30 = vpack.c.bf16 %v529_v27, %v528_v26  ;;  %v11777_v31 = vld [vmem:[%s11491_s13 + $0x90] sm:$0xff] }
  0x78   : > { %356 = vst.msk [vmem:[#allocation2 + $0x70] sm:$0x1] %vm348_vm2, %v13812_v0  ;;  %357 = vst.msk [vmem:[#allocation2 + $0x80] sm:$0x1] %vm348_vm2, %v13812_v0  ;;  %v11780_v32 = vld [vmem:[%s11491_s13 + $0x98] sm:$0xff]  ;;  %v11789_v34 = vld [vmem:[%s11491_s13 + $0xa0] sm:$0xff] }
  0x79   : > { %360 = vst.msk [vmem:[#allocation2 + $0xb0] sm:$0x1] %vm348_vm2, %v13812_v0  ;;  %361 = vst.msk [vmem:[#allocation2 + $0xc0] sm:$0x1] %vm348_vm2, %v13812_v0  ;;  %v11792_v35 = vld [vmem:[%s11491_s13 + $0xa8] sm:$0xff]  ;;  %v11805_v37 = vld [vmem:[%s11491_s13 + $0xb0] sm:$0xff] }
  0x7a   : > { %362 = vst.msk [vmem:[#allocation2 + $0xd0] sm:$0x1] %vm348_vm2, %v13812_v0  ;;  %363 = vst.msk [vmem:[#allocation2 + $0xe0] sm:$0x1] %vm348_vm2, %v13812_v0  ;;  %v11818_v40 = vld [vmem:[%s11491_s13 + $0xc0] sm:$0xff]  ;;  %v11821_v41 = vld [vmem:[%s11491_s13 + $0xc8] sm:$0xff] }
  0x7b   : > { %364 = vst.msk [vmem:[#allocation2 + $0xf0] sm:$0x1] %vm348_vm2, %v13812_v0  ;;  %365 = vst.msk [vmem:[#allocation2 + $0x100] sm:$0x1] %vm348_vm2, %v13812_v0  ;;  %v11830_v43 = vld [vmem:[%s11491_s13 + $0xd0] sm:$0xff]  ;;  %v11835_v44 = vld [vmem:[%s11491_s13 + $0xd8] sm:$0xff] }
  0x7c   : > { %366 = vst.msk [vmem:[#allocation2 + $0x110] sm:$0x1] %vm348_vm2, %v13812_v0  ;;  %367 = vst.msk [vmem:[#allocation2 + $0x120] sm:$0x1] %vm348_vm2, %v13812_v0  ;;  %v11842_v45 = vld [vmem:[%s11491_s13 + $0xe0] sm:$0xff]  ;;  %v11845_v46 = vld [vmem:[%s11491_s13 + $0xe8] sm:$0xff] }
  0x7d   : > { %370 = vst.msk [vmem:[#allocation2 + $0x150] sm:$0x1] %vm348_vm2, %v13812_v0  ;;  %371 = vst.msk [vmem:[#allocation2 + $0x160] sm:$0x1] %vm348_vm2, %v13812_v0  ;;  %v11848_v47 = vld [vmem:[%s11491_s13 + $0xf0] sm:$0xff]  ;;  %v538_v49 = vld [vmem:[#allocation2 + $0xa1] sm:$0xff] }
  0x7e   : > { %372 = vst.msk [vmem:[#allocation2 + $0x170] sm:$0x1] %vm348_vm2, %v13812_v0  ;;  %373 = vst.msk [vmem:[#allocation2 + $0x180] sm:$0x1] %vm348_vm2, %v13812_v0  ;;  %v1242_v50 = vld [vmem:[#allocation6 + $0x40] sm:$0xff]  ;;  %v1243_v51 = vld [vmem:[#allocation6 + $0x48] sm:$0xff] }
  0x7f   : > { %374 = vst.msk [vmem:[#allocation2 + $0x190] sm:$0x1] %vm348_vm2, %v13812_v0  ;;  %375 = vst.msk [vmem:[#allocation2 + $0x1a0] sm:$0x1] %vm348_vm2, %v13812_v0  ;;  %v10369_v52 = vpack.c.bf16 %v1243_v51, %v1242_v50  ;;  %v546_v60 = vld [vmem:[#allocation2 + $0x141] sm:$0xff]  ;;  %v1245_v50 = vld [vmem:[#allocation6 + $0x58] sm:$0xff] }
  0x80   : > { %376 = vst.msk [vmem:[#allocation2 + $0x1b0] sm:$0x1] %vm348_vm2, %v13812_v0  ;;  %377 = vst.msk [vmem:[#allocation2 + $0x1c0] sm:$0x1] %vm348_vm2, %v13812_v0  ;;  %v554_v5 = vld [vmem:[#allocation2 + $0x1e1] sm:$0xff]  ;;  %s7962_s19 = scalar_lea.sflag [#allocation5], %s11485_s20 }
  0x81   : > { %380 = vst.msk [vmem:[#allocation2 + $0x1f0] sm:$0x1] %vm348_vm2, %v13812_v0  ;;  %381 = vst.msk [vmem:[#allocation2 + $0x200] sm:$0x1] %vm348_vm2, %v13812_v0  ;;  %s11180_s14 = scalar_lea.vmem %s13728_s11, 4096  ;;  %p14136_p0 = scmp.ne.s32.totalorder %s13949_s16, 0 }
  0x82   : > { %382 = vst.msk [vmem:[#allocation2 + $0x210] sm:$0x1] %vm348_vm2, %v13812_v0  ;;  %383 = vst.msk [vmem:[#allocation2 + $0x220] sm:$0x1] %vm348_vm2, %v13812_v0  ;;  %p11181_p11 = scmp.ne.s32.totalorder %s13728_s11, %s11180_s14  ;;  %s11261_s21 = smov [#allocation9]  }
  0x83   : > { %384 = vst.msk [vmem:[#allocation2 + $0x230] sm:$0x1] %vm348_vm2, %v13812_v0  ;;  %385 = vst.msk [vmem:[#allocation2 + $0x240] sm:$0x1] %vm348_vm2, %v13812_v0  ;;  %s11184_s23 = sshll.u32 %s11261_s21, 4  ;;  %s11185_s23 = int_to_ptr.vmem [resolvable:$false] %s11184_s23 }
  0x84   : > { %386 = vst.msk [vmem:[#allocation2 + $0x250] sm:$0x1] %vm348_vm2, %v13812_v0  ;;  %387 = vst.msk [vmem:[#allocation2 + $0x260] sm:$0x1] %vm348_vm2, %v13812_v0  ;;  %p11182_p2 = pnand %p11181_p11, %p14136_p0  ;;  %s11186_s18 = scalar_lea.vmem %s11185_s23, 8192 }
  0x85   : > { %390 = vst.msk [vmem:[#allocation2 + $0x19] sm:$0x1] %vm348_vm2, %v13812_v0  ;;  %391 = vst.msk [vmem:[#allocation2 + $0x29] sm:$0x1] %vm348_vm2, %v13812_v0  ;;  %p11187_p7 = scmp.lt.s32.totalorder %s13728_s11, %s11185_s23  ;;  %p11188_p9 = scmp.lt.s32.totalorder %s11186_s18, %s11180_s14 }
  0x86   : > { %392 = vst.msk [vmem:[#allocation2 + $0x39] sm:$0x1] %vm348_vm2, %v13812_v0  ;;  %393 = vst.msk [vmem:[#allocation2 + $0x49] sm:$0x1] %vm348_vm2, %v13812_v0  ;;  %p11183_p3 = pneg %p11182_p2 }
  0x87   : > { %394 = vst.msk [vmem:[#allocation2 + $0x59] sm:$0x1] %vm348_vm2, %v13812_v0  ;;  %395 = vst.msk [vmem:[#allocation2 + $0x69] sm:$0x1] %vm348_vm2, %v13812_v0  ;;  %p11189_p12 = por %p11188_p9, %p11187_p7 }
  0x88   : > { %396 = vst.msk [vmem:[#allocation2 + $0x79] sm:$0x1] %vm348_vm2, %v13812_v0  ;;  %397 = vst.msk [vmem:[#allocation2 + $0x89] sm:$0x1] %vm348_vm2, %v13812_v0 }
  0x89   : > { %400 = vst.msk [vmem:[#allocation2 + $0xb9] sm:$0x1] %vm348_vm2, %v13812_v0  ;;  %401 = vst.msk [vmem:[#allocation2 + $0xc9] sm:$0x1] %vm348_vm2, %v13812_v0  ;;  %p11190_p1 = pnand %p11189_p12, %p11183_p3 }
  0x8a   : > { %402 = vst.msk [vmem:[#allocation2 + $0xd9] sm:$0x1] %vm348_vm2, %v13812_v0  ;;  %403 = vst.msk [vmem:[#allocation2 + $0xe9] sm:$0x1] %vm348_vm2, %v13812_v0 }
  0x8b   : > { %404 = vst.msk [vmem:[#allocation2 + $0xf9] sm:$0x1] %vm348_vm2, %v13812_v0  ;;  %405 = vst.msk [vmem:[#allocation2 + $0x109] sm:$0x1] %vm348_vm2, %v13812_v0 }
  0x8c   : > { %406 = vst.msk [vmem:[#allocation2 + $0x119] sm:$0x1] %vm348_vm2, %v13812_v0  ;;  %407 = vst.msk [vmem:[#allocation2 + $0x129] sm:$0x1] %vm348_vm2, %v13812_v0 }
  0x8d   : > { %410 = vst.msk [vmem:[#allocation2 + $0x159] sm:$0x1] %vm348_vm2, %v13812_v0  ;;  %411 = vst.msk [vmem:[#allocation2 + $0x169] sm:$0x1] %vm348_vm2, %v13812_v0 }
  0x8e   : > { %412 = vst.msk [vmem:[#allocation2 + $0x179] sm:$0x1] %vm348_vm2, %v13812_v0  ;;  %413 = vst.msk [vmem:[#allocation2 + $0x189] sm:$0x1] %vm348_vm2, %v13812_v0 }
  0x8f   : > { %414 = vst.msk [vmem:[#allocation2 + $0x199] sm:$0x1] %vm348_vm2, %v13812_v0  ;;  %415 = vst.msk [vmem:[#allocation2 + $0x1a9] sm:$0x1] %vm348_vm2, %v13812_v0 }
  0x90   : > { %416 = vst.msk [vmem:[#allocation2 + $0x1b9] sm:$0x1] %vm348_vm2, %v13812_v0  ;;  %417 = vst.msk [vmem:[#allocation2 + $0x1c9] sm:$0x1] %vm348_vm2, %v13812_v0 }
  0x91   : > { %420 = vst.msk [vmem:[#allocation2 + $0x1f9] sm:$0x1] %vm348_vm2, %v13812_v0  ;;  %421 = vst.msk [vmem:[#allocation2 + $0x209] sm:$0x1] %vm348_vm2, %v13812_v0 }
  0x92   : > { %422 = vst.msk [vmem:[#allocation2 + $0x219] sm:$0x1] %vm348_vm2, %v13812_v0  ;;  %423 = vst.msk [vmem:[#allocation2 + $0x229] sm:$0x1] %vm348_vm2, %v13812_v0 }
  0x93   : > { %424 = vst.msk [vmem:[#allocation2 + $0x239] sm:$0x1] %vm348_vm2, %v13812_v0  ;;  %425 = vst.msk [vmem:[#allocation2 + $0x249] sm:$0x1] %vm348_vm2, %v13812_v0 }
  0x94   : > { %426 = vst.msk [vmem:[#allocation2 + $0x259] sm:$0x1] %vm348_vm2, %v13812_v0  ;;  %427 = vst.msk [vmem:[#allocation2 + $0x269] sm:$0x1] %vm348_vm2, %v13812_v0 }
  0x95   : > { %349 = vst.msk [vmem:[#allocation2] sm:$0x1] %vm348_vm2, %v13812_v0  ;;  %358 = vst.msk [vmem:[#allocation2 + $0x90] sm:$0x1] %vm348_vm2, %v13812_v0 }
  0x96   : > { %359 = vst.msk [vmem:[#allocation2 + $0xa0] sm:$0x1] %vm348_vm2, %v13812_v0  ;;  %368 = vst.msk [vmem:[#allocation2 + $0x130] sm:$0x1] %vm348_vm2, %v13812_v0 }
  0x97   : > { %369 = vst.msk [vmem:[#allocation2 + $0x140] sm:$0x1] %vm348_vm2, %v13812_v0  ;;  %378 = vst.msk [vmem:[#allocation2 + $0x1d0] sm:$0x1] %vm348_vm2, %v13812_v0 }
  0x98   : > { %379 = vst.msk [vmem:[#allocation2 + $0x1e0] sm:$0x1] %vm348_vm2, %v13812_v0  ;;  %388 = vst.msk [vmem:[#allocation2 + $0x270] sm:$0x1] %vm348_vm2, %v13812_v0 }
  0x99   : > { %389 = vst.msk [vmem:[#allocation2 + $0x9] sm:$0x1] %vm348_vm2, %v13812_v0  ;;  %398 = vst.msk [vmem:[#allocation2 + $0x99] sm:$0x1] %vm348_vm2, %v13812_v0 }
  0x9a   : > { %399 = vst.msk [vmem:[#allocation2 + $0xa9] sm:$0x1] %vm348_vm2, %v13812_v0  ;;  %408 = vst.msk [vmem:[#allocation2 + $0x139] sm:$0x1] %vm348_vm2, %v13812_v0 }
  0x9b   : > { %409 = vst.msk [vmem:[#allocation2 + $0x149] sm:$0x1] %vm348_vm2, %v13812_v0  ;;  %418 = vst.msk [vmem:[#allocation2 + $0x1d9] sm:$0x1] %vm348_vm2, %v13812_v0 }
  0x9c   : > { %419 = vst.msk [vmem:[#allocation2 + $0x1e9] sm:$0x1] %vm348_vm2, %v13812_v0  ;;  %428 = vst.msk [vmem:[#allocation2 + $0x279] sm:$0x1] %vm348_vm2, %v13812_v0  ;;  %v1632_v0 = vld [vmem:[#allocation6 + $0x60] sm:$0xff] }
  0x9d   : > { %462 = vst.msk [vmem:[#allocation2 + $0x11] sm:$0xff] %vm329_vm0, %v11694_v7  ;;  %13956 = vst [vmem:[#allocation14_spill] sm:$0xff] %v11700_v11  ;;  %v2022_v7 = vld [vmem:[#allocation6 + $0x80] sm:$0xff] }
  0x9e   : > { %463 = vst.msk [vmem:[#allocation2 + $0x21] sm:$0xff] %vm329_vm0, %v11700_v11  ;;  %13957 = vst [vmem:[#allocation15_spill] sm:$0xff] %v11705_v12 }
  0x9f   : > { %13958 = vst [vmem:[#allocation16_spill] sm:$0xff] %v11708_v13  ;;  %13959 = vst [vmem:[#allocation17_spill] sm:$0xff] %v11711_v14 }
  0xa0   : > { %464 = vst.msk [vmem:[#allocation2 + $0x31] sm:$0xff] %vm329_vm0, %v11705_v12  ;;  %465 = vst.msk [vmem:[#allocation2 + $0x41] sm:$0xff] %vm329_vm0, %v11708_v13  ;;  %v1635_v13 = vld [vmem:[#allocation6 + $0x78] sm:$0xff] }
  0xa1   : > { %466 = vst.msk [vmem:[#allocation2 + $0x51] sm:$0xff] %vm329_vm0, %v11711_v14  ;;  %13960 = vst [vmem:[#allocation18_spill] sm:$0xff] %v11720_v15  ;;  %v1634_v14 = vld [vmem:[#allocation6 + $0x70] sm:$0xff] }
  0xa2   : > { %13961 = vst [vmem:[#allocation19_spill] sm:$0xff] %v11723_v16  ;;  %467 = vst.msk [vmem:[#allocation2 + $0x61] sm:$0xff] %vm329_vm0, %v11720_v15  ;;  %v1209_v15 = vld [vmem:[#allocation2 + $0x2] sm:$0xff]  ;;  %v10381_v11 = vpack.c.bf16 %v1635_v13, %v1634_v14 }
  0xa3   : > { %468 = vst.msk [vmem:[#allocation2 + $0x71] sm:$0xff] %vm329_vm0, %v11723_v16  ;;  %13962 = vst [vmem:[#allocation20_spill] sm:$0xff] %v11730_v18 }
  0xa4   : > { %13963 = vst [vmem:[#allocation21_spill] sm:$0xff] %v11733_v19  ;;  %13964 = vst [vmem:[#allocation22_spill] sm:$0xff] %v11736_v20  ;;  %v11772_v29 = vld [vmem:[#allocation2 + $0x11] sm:$0xff] }
  0xa5   : > { %470 = vst.msk [vmem:[#allocation2 + $0xb1] sm:$0xff] %vm329_vm0, %v11730_v18  ;;  %471 = vst.msk [vmem:[#allocation2 + $0xc1] sm:$0xff] %vm329_vm0, %v11733_v19  ;;  %v11782_v33 = vld [vmem:[#allocation2 + $0x21] sm:$0xff]  ;;  %9338 = vmatmul.mubr.msk.f32.vlgmr.msra.gmra.mrb[0].mxu0 %vm329_vm0, %v11772_v29  ;;  %v11950_v51 = vld [vmem:[#allocation2 + $0x10] sm:$0xff] }
  0xa6   : > { %472 = vst.msk [vmem:[#allocation2 + $0xd1] sm:$0xff] %vm329_vm0, %v11736_v20  ;;  %13965 = vst [vmem:[#allocation23_spill] sm:$0xff] %v11745_v21  ;;  %10364 = vmatpush3.bf16.msra.mxu0 %v10361_v17  ;;  %9340 = vmatprep.mubr.msk.f32.mxu0 %vm329_vm0, %v11782_v33  ;;  %v12068_v18 = vld [vmem:[%s11491_s13 + $0xf8] sm:$0xff]  ;;  %v12091_v12 = vld [vmem:[#allocation2 + $0x22] sm:$0xff] }
  0xa7   : > { %13966 = vst [vmem:[#allocation24_spill] sm:$0xff] %v11748_v22  ;;  %13967 = vst [vmem:[#allocation25_spill] sm:$0xff] %v11751_v23  ;;  %v11802_v36 = vld [vmem:[#allocation2 + $0x31] sm:$0xff]  ;;  %v11807_v38 = vld [vmem:[#allocation2 + $0x41] sm:$0xff]  ;;  %10366 = vmatprep.subr.bf16.mxu0 %v10365_v30 }
  0xa8   : > { %473 = vst.msk [vmem:[#allocation2 + $0xe1] sm:$0xff] %vm329_vm0, %v11745_v21  ;;  %474 = vst.msk [vmem:[#allocation2 + $0xf1] sm:$0xff] %vm329_vm0, %v11748_v22  ;;  %v11815_v39 = vld [vmem:[#allocation2 + $0x51] sm:$0xff]  ;;  %v518_v22 = vld [vmem:[#allocation2 + $0x1e0] sm:$0xff] }
  0xa9   : > { %475 = vst.msk [vmem:[#allocation2 + $0x101] sm:$0xff] %vm329_vm0, %v11751_v23  ;;  %13968 = vst [vmem:[#allocation26_spill] sm:$0xff] %v11760_v24  ;;  %9341 = vmatmul.mubr.msk.f32.gmra.mrb[2].mxu0 %vm329_vm0, %v11802_v36  ;;  %v11823_v42 = vld [vmem:[#allocation2 + $0x61] sm:$0xff]  ;;  %v12108_v13 = vld [vmem:[#allocation2 + $0x52] sm:$0xff] }
  0xaa   : > { %13969 = vst [vmem:[#allocation27_spill] sm:$0xff] %v11763_v25  ;;  %476 = vst.msk [vmem:[#allocation2 + $0x111] sm:$0xff] %vm329_vm0, %v11760_v24  ;;  %9343 = vmatprep.mubr.msk.f32.mxu0 %vm329_vm0, %v11807_v38  ;;  %10368 = vmatpush3.bf16.msra.mxu0 %v10365_v30  ;;  %v11852_v48 = vld [vmem:[#allocation2 + $0x71] sm:$0xff]  ;;  %v494_v30 = vld [vmem:[#allocation2] sm:$0xff] }
  0xab   : > { %478 = vst.msk [vmem:[#allocation2 + $0x151] sm:$0xff] %vm329_vm0, %v11763_v25  ;;  %13970 = vst [vmem:[#allocation28_spill] sm:$0xff] %v11770_v28  ;;  %10370 = vmatprep.subr.bf16.mxu0 %v10369_v52  ;;  %v12110_v14 = vld [vmem:[#allocation2 + $0x62] sm:$0xff] }
  0xac   : > { %479 = vst.msk [vmem:[#allocation2 + $0x161] sm:$0xff] %vm329_vm0, %v11770_v28  ;;  %13971 = vst [vmem:[#allocation29_spill] sm:$0xff] %v11777_v31  ;;  %v11863_v53 = vld [vmem:[#allocation2 + $0xb1] sm:$0xff]  ;;  %v11865_v54 = vld [vmem:[#allocation2 + $0xc1] sm:$0xff] }
  0xad   : > { %13972 = vst [vmem:[#allocation30_spill] sm:$0xff] %v11780_v32  ;;  %480 = vst.msk [vmem:[#allocation2 + $0x171] sm:$0xff] %vm329_vm0, %v11777_v31  ;;  %9344 = vmatmul.mubr.msk.f32.gmra.mrb[4].mxu0 %vm329_vm0, %v11815_v39  ;;  %v11871_v55 = vld [vmem:[#allocation2 + $0xd1] sm:$0xff] }
  0xae   : > { %481 = vst.msk [vmem:[#allocation2 + $0x181] sm:$0xff] %vm329_vm0, %v11780_v32  ;;  %13973 = vst [vmem:[#allocation31_spill] sm:$0xff] %v11789_v34  ;;  %9346 = vmatprep.mubr.msk.f32.mxu0 %vm329_vm0, %v11823_v42 }
  0xaf   : > { %13974 = vst [vmem:[#allocation32_spill] sm:$0xff] %v11792_v35  ;;  %482 = vst.msk [vmem:[#allocation2 + $0x191] sm:$0xff] %vm329_vm0, %v11789_v34  ;;  %v11873_v56 = vld [vmem:[#allocation2 + $0xe1] sm:$0xff]  ;;  %v11879_v57 = vld [vmem:[#allocation2 + $0xf1] sm:$0xff] }
  0xb0   : > { %483 = vst.msk [vmem:[#allocation2 + $0x1a1] sm:$0xff] %vm329_vm0, %v11792_v35  ;;  %13975 = vst [vmem:[#allocation33_spill] sm:$0xff] %v11805_v37  ;;  %v11881_v58 = vld [vmem:[#allocation2 + $0x101] sm:$0xff] }
  0xb1   : > { %484 = vst.msk [vmem:[#allocation2 + $0x1b1] sm:$0xff] %vm329_vm0, %v11805_v37  ;;  %13976 = vst [vmem:[#allocation34_spill] sm:$0xff] %v11818_v40  ;;  %9347 = vmatmul.mubr.msk.f32.gmra.mrb[6].mxu0 %vm329_vm0, %v11852_v48  ;;  %v11887_v59 = vld [vmem:[#allocation2 + $0x111] sm:$0xff]  ;;  %v12010_v37 = vld [vmem:[#allocation2 + $0x100] sm:$0xff] }
  0xb2   : > { %13977 = vst [vmem:[#allocation35_spill] sm:$0xff] %v11821_v41  ;;  %486 = vst.msk [vmem:[#allocation2 + $0x1f1] sm:$0xff] %vm329_vm0, %v11818_v40  ;;  %9349 = vmatprep.mubr.msk.f32.mxu0 %vm329_vm0, %v538_v49  ;;  %v11892_v61 = vld [vmem:[#allocation2 + $0x151] sm:$0xff]  ;;  %v510_v34 = vld [vmem:[#allocation2 + $0x140] sm:$0xff] }
  0xb3   : > { %487 = vst.msk [vmem:[#allocation2 + $0x201] sm:$0xff] %vm329_vm0, %v11821_v41  ;;  %13978 = vst [vmem:[#allocation36_spill] sm:$0xff] %v11830_v43  ;;  %v11894_v62 = vld [vmem:[#allocation2 + $0x161] sm:$0xff]  ;;  %v1244_v49 = vld [vmem:[#allocation6 + $0x50] sm:$0xff] }
  0xb4   : > { %488 = vst.msk [vmem:[#allocation2 + $0x211] sm:$0xff] %vm329_vm0, %v11830_v43  ;;  %13979 = vst [vmem:[#allocation37_spill] sm:$0xff] %v11835_v44  ;;  %v11900_v63 = vld [vmem:[#allocation2 + $0x171] sm:$0xff]  ;;  %v11997_v41 = vld [vmem:[#allocation2 + $0xe0] sm:$0xff] }
  0xb5   : > { %489 = vst.msk [vmem:[#allocation2 + $0x221] sm:$0xff] %vm329_vm0, %v11835_v44  ;;  %13980 = vst [vmem:[#allocation38_spill] sm:$0xff] %v11842_v45  ;;  %9350 = vmatmul.mubr.msk.f32.gmra.mrb[8].mxu0 %vm329_vm0, %v11863_v53  ;;  %v11902_v1 = vld [vmem:[#allocation2 + $0x181] sm:$0xff]  ;;  %v11965_v44 = vld [vmem:[%s11491_s13 + $0x38] sm:$0xff] }
  0xb6   : > { %13981 = vst [vmem:[#allocation39_spill] sm:$0xff] %v11845_v46  ;;  %13982 = vst [vmem:[#allocation40_spill] sm:$0xff] %v11848_v47  ;;  %9352 = vmatprep.mubr.msk.f32.mxu0 %vm329_vm0, %v11865_v54  ;;  %v11908_v2 = vld [vmem:[#allocation2 + $0x191] sm:$0xff]  ;;  %v12023_v31 = vld [vmem:[#allocation2 + $0x160] sm:$0xff] }
  0xb7   : > { %490 = vst.msk [vmem:[#allocation2 + $0x231] sm:$0xff] %vm329_vm0, %v11842_v45  ;;  %491 = vst.msk [vmem:[#allocation2 + $0x241] sm:$0xff] %vm329_vm0, %v11845_v46  ;;  %v11910_v3 = vld [vmem:[#allocation2 + $0x1a1] sm:$0xff]  ;;  %v11958_v46 = vld [vmem:[#allocation2 + $0x30] sm:$0xff] }
  0xb8   : > { %492 = vst.msk [vmem:[#allocation2 + $0x251] sm:$0xff] %vm329_vm0, %v11848_v47  ;;  %v11916_v4 = vld [vmem:[#allocation2 + $0x1b1] sm:$0xff]  ;;  %v1633_v47 = vld [vmem:[#allocation6 + $0x68] sm:$0xff]  ;;  %v11960_v45 = vld [vmem:[#allocation2 + $0x40] sm:$0xff] }
  0xb9   : > { %9353 = vmatmul.mubr.msk.f32.gmra.mrb[10].mxu0 %vm329_vm0, %v11871_v55  ;;  %v11921_v6 = vld [vmem:[#allocation2 + $0x1f1] sm:$0xff]  ;;  %13986 = vst [vmem:[#allocation44_spill] sm:$0xff] %v11965_v44  ;;  %469 = vst.msk [vmem:[#allocation2 + $0x81] sm:$0xff] %vm329_vm0, %v11965_v44  ;;  %v12031_v25 = vld [vmem:[#allocation2 + $0x180] sm:$0xff] }
  0xba   : > { %9355 = vmatprep.mubr.msk.f32.mxu0 %vm329_vm0, %v11873_v56  ;;  %v11923_v8 = vld [vmem:[#allocation2 + $0x201] sm:$0xff]  ;;  %v11995_v43 = vld [vmem:[#allocation2 + $0xd0] sm:$0xff]  ;;  %v12000_v40 = vld [vmem:[%s11491_s13 + $0x78] sm:$0xff]  ;;  %13989 = vst [vmem:[#allocation47_spill] sm:$0xff] %v12068_v18 }
  0xbb   : > { %v11929_v9 = vld [vmem:[#allocation2 + $0x211] sm:$0xff]  ;;  %13987 = vst [vmem:[#allocation45_spill] sm:$0xff] %v12000_v40  ;;  %477 = vst.msk [vmem:[#allocation2 + $0x121] sm:$0xff] %vm329_vm0, %v12000_v40  ;;  %v12044_v24 = vld [vmem:[#allocation2 + $0x1a0] sm:$0xff] }
  0xbc   : > { %v11931_v10 = vld [vmem:[#allocation2 + $0x221] sm:$0xff]  ;;  %v12016_v35 = vld [vmem:[#allocation2 + $0x110] sm:$0xff]  ;;  %v12034_v40 = vld [vmem:[%s11491_s13 + $0xb8] sm:$0xff]  ;;  %493 = vst.msk [vmem:[#allocation2 + $0x261] sm:$0xff] %vm329_vm0, %v12068_v18 }
  0xbd   : > { %9356 = vmatmul.mubr.msk.f32.gmra.mrb[12].mxu0 %vm329_vm0, %v11879_v57  ;;  %v12021_v32 = vld [vmem:[#allocation2 + $0x150] sm:$0xff]  ;;  %13988 = vst [vmem:[#allocation46_spill] sm:$0xff] %v12034_v40  ;;  %485 = vst.msk [vmem:[#allocation2 + $0x1c1] sm:$0xff] %vm329_vm0, %v12034_v40  ;;  %v12057_v21 = vld [vmem:[#allocation2 + $0x200] sm:$0xff] }
  0xbe   : > { %9358 = vmatprep.mubr.msk.f32.mxu0 %vm329_vm0, %v11881_v58  ;;  %v11937_v17 = vld [vmem:[#allocation2 + $0x231] sm:$0xff]  ;;  %v11939_v26 = vld [vmem:[#allocation2 + $0x241] sm:$0xff]  ;;  %13992 = vst [vmem:[#allocation50_spill] sm:$0xff] %v12108_v13  ;;  %13993 = vst [vmem:[#allocation51_spill] sm:$0xff] %v12110_v14 }
  0xbf   : > { %13983 = vst [vmem:[#allocation41_spill] sm:$0xff] %v11937_v17  ;;  %13984 = vst [vmem:[#allocation42_spill] sm:$0xff] %v11939_v26  ;;  %v11945_v27 = vld [vmem:[#allocation2 + $0x251] sm:$0xff]  ;;  %v12065_v19 = vld [vmem:[#allocation2 + $0x220] sm:$0xff] }
  0xc0   : > { %13985 = vst [vmem:[#allocation43_spill] sm:$0xff] %v11945_v27  ;;  %v12029_v28 = vld [vmem:[#allocation2 + $0x170] sm:$0xff]  ;;  %v12078_v44 = vld [vmem:[#allocation2 + $0x240] sm:$0xff] }
  0xc1   : > { %9359 = vmatmul.mubr.msk.f32.gmra.mrb[14].mxu0 %vm329_vm0, %v11887_v59  ;;  %v12050_v23 = vld [vmem:[#allocation2 + $0x1b0] sm:$0xff] }
  0xc2   : > { %9361 = vmatprep.mubr.msk.f32.mxu0 %vm329_vm0, %v546_v60  ;;  %v11952_v60 = vld [vmem:[#allocation2 + $0x20] sm:$0xff]  ;;  %v12055_v40 = vld [vmem:[#allocation2 + $0x1f0] sm:$0xff] }
  0xc3   : > { %v12063_v20 = vld [vmem:[#allocation2 + $0x210] sm:$0xff] }
  0xc4   : > { %v12084_v16 = vld [vmem:[#allocation2 + $0x250] sm:$0xff] }
  0xc5   : > { %9362 = vmatmul.mubr.msk.f32.gmra.mrb[16].mxu0 %vm329_vm0, %v11892_v61  ;;  %v12089_v18 = vld [vmem:[#allocation2 + $0x12] sm:$0xff] }
  0xc6   : > { %9364 = vmatprep.mubr.msk.f32.mxu0 %vm329_vm0, %v11894_v62 }
  0xc9   : > { %9365 = vmatmul.mubr.msk.f32.gmra.mrb[18].mxu0 %vm329_vm0, %v11900_v63 }
  0xca   : > { %9367 = vmatprep.mubr.msk.f32.mxu0 %vm329_vm0, %v11902_v1 }
  0xcd   : > { %9368 = vmatmul.mubr.msk.f32.gmra.mrb[20].mxu0 %vm329_vm0, %v11908_v2 }
  0xce   : > { %9370 = vmatprep.mubr.msk.f32.mxu0 %vm329_vm0, %v11910_v3 }
  0xd1   : > { %9371 = vmatmul.mubr.msk.f32.gmra.mrb[22].mxu0 %vm329_vm0, %v11916_v4 }
  0xd2   : > { %9373 = vmatprep.mubr.msk.f32.mxu0 %vm329_vm0, %v554_v5  ;;  %v10373_v5 = vpack.c.bf16 %v1245_v50, %v1244_v49  ;;  %v11975_v49 = vld [vmem:[#allocation2 + $0x60] sm:$0xff]  ;;  %v11987_v50 = vld [vmem:[#allocation2 + $0xb0] sm:$0xff] }
  0xd5   : > { %9374 = vmatmul.mubr.msk.f32.gmra.mrb[24].mxu0 %vm329_vm0, %v11921_v6 }
  0xd6   : > { %9376 = vmatprep.mubr.msk.f32.mxu0 %vm329_vm0, %v11923_v8 }
  0xd9   : > { %9377 = vmatmul.mubr.msk.f32.gmra.mrb[26].mxu0 %vm329_vm0, %v11929_v9 }
  0xda   : > { %9379 = vmatprep.mubr.msk.f32.mxu0 %vm329_vm0, %v11931_v10 }
  0xdd   : > { %9380 = vmatmul.mubr.msk.f32.gmra.mrb[28].mxu0 %vm329_vm0, %v11937_v17  ;;  %v12100_v17 = vld [vmem:[#allocation2 + $0x42] sm:$0xff] }
  0xde   : > { %9382 = vmatprep.mubr.msk.f32.mxu0 %vm329_vm0, %v11939_v26  ;;  %v12098_v26 = vld [vmem:[#allocation2 + $0x32] sm:$0xff]  ;;  %13991 = vst [vmem:[#allocation49_spill] sm:$0xff] %v12100_v17 }
  0xdf   : > { %13990 = vst [vmem:[#allocation48_spill] sm:$0xff] %v12098_v26 }
  0xe1   : > { %9383 = vmatmul.mubr.msk.f32.gmra.mrb[30].mxu0 %vm329_vm0, %v11945_v27  ;;  %v2023_v27 = vld [vmem:[#allocation6 + $0x88] sm:$0xff] }
  0xe2   : > { %9393 = vmatprep.mubr.msk.f32.mxu0 %vm329_vm0, %v494_v30  ;;  %v11962_v30 = vpack.c.bf16 %v1633_v47, %v1632_v0  ;;  %v11982_v0 = vld [vmem:[#allocation2 + $0x70] sm:$0xff]  ;;  %v502_v47 = vld [vmem:[#allocation2 + $0xa0] sm:$0xff] }
  0xe5   : > { %9394 = vmatmul.mubr.msk.f32.vlgmr.msra.gmra.mrb[0].mxu0 %vm329_vm0, %v11950_v51 }
  0xe6   : > { %10372 = vmatpush3.bf16.msra.mxu0 %v10369_v52  ;;  %9396 = vmatprep.mubr.msk.f32.mxu0 %vm329_vm0, %v11952_v60  ;;  %v11973_v52 = vld [vmem:[#allocation2 + $0x50] sm:$0xff] }
  0xe7   : > { %10374 = vmatprep.subr.bf16.mxu0 %v10373_v5 }
  0xe9   : > { %9397 = vmatmul.mubr.msk.f32.gmra.mrb[2].mxu0 %vm329_vm0, %v11958_v46 }
  0xea   : > { %9399 = vmatprep.mubr.msk.f32.mxu0 %vm329_vm0, %v11960_v45  ;;  %10376 = vmatpush3.bf16.msra.mxu0 %v10373_v5  ;;  %v11989_v5 = vld [vmem:[#allocation2 + $0xc0] sm:$0xff] }
  0xeb   : > { %10378 = vmatprep.subr.bf16.mxu0 %v11962_v30 }
  0xed   : > { %9400 = vmatmul.mubr.msk.f32.gmra.mrb[4].mxu0 %vm329_vm0, %v11973_v52 }
  0xee   : > { %9402 = vmatprep.mubr.msk.f32.mxu0 %vm329_vm0, %v11975_v49 }
  0xf1   : > { %9403 = vmatmul.mubr.msk.f32.gmra.mrb[6].mxu0 %vm329_vm0, %v11982_v0 }
  0xf2   : > { %9405 = vmatprep.mubr.msk.f32.mxu0 %vm329_vm0, %v502_v47  ;;  %v12008_v47 = vld [vmem:[#allocation2 + $0xf0] sm:$0xff] }
  0xf5   : > { %9406 = vmatmul.mubr.msk.f32.gmra.mrb[8].mxu0 %vm329_vm0, %v11987_v50 }
  0xf6   : > { %9408 = vmatprep.mubr.msk.f32.mxu0 %vm329_vm0, %v11989_v5 }
  0xf9   : > { %9409 = vmatmul.mubr.msk.f32.gmra.mrb[10].mxu0 %vm329_vm0, %v11995_v43 }
  0xfa   : > { %9411 = vmatprep.mubr.msk.f32.mxu0 %vm329_vm0, %v11997_v41 }
  0xfd   : > { %9412 = vmatmul.mubr.msk.f32.gmra.mrb[12].mxu0 %vm329_vm0, %v12008_v47 }
  0xfe   : > { %9414 = vmatprep.mubr.msk.f32.mxu0 %vm329_vm0, %v12010_v37 }
 0x101   : > { %9415 = vmatmul.mubr.msk.f32.gmra.mrb[14].mxu0 %vm329_vm0, %v12016_v35 }
 0x102   : > { %9417 = vmatprep.mubr.msk.f32.mxu0 %vm329_vm0, %v510_v34  ;;  %v12042_v34 = vld [vmem:[#allocation2 + $0x190] sm:$0xff] }
 0x105   : > { %9418 = vmatmul.mubr.msk.f32.gmra.mrb[16].mxu0 %vm329_vm0, %v12021_v32 }
 0x106   : > { %9420 = vmatprep.mubr.msk.f32.mxu0 %vm329_vm0, %v12023_v31 }
 0x109   : > { %9421 = vmatmul.mubr.msk.f32.gmra.mrb[18].mxu0 %vm329_vm0, %v12029_v28 }
 0x10a   : > { %9423 = vmatprep.mubr.msk.f32.mxu0 %vm329_vm0, %v12031_v25 }
 0x10d   : > { %9424 = vmatmul.mubr.msk.f32.gmra.mrb[20].mxu0 %vm329_vm0, %v12042_v34 }
 0x10e   : > { %9426 = vmatprep.mubr.msk.f32.mxu0 %vm329_vm0, %v12044_v24 }
 0x111   : > { %9427 = vmatmul.mubr.msk.f32.gmra.mrb[22].mxu0 %vm329_vm0, %v12050_v23 }
 0x112   : > { %9429 = vmatprep.mubr.msk.f32.mxu0 %vm329_vm0, %v518_v22  ;;  %v12076_v22 = vld [vmem:[#allocation2 + $0x230] sm:$0xff] }
 0x115   : > { %9430 = vmatmul.mubr.msk.f32.gmra.mrb[24].mxu0 %vm329_vm0, %v12055_v40 }
 0x116   : > { %9432 = vmatprep.mubr.msk.f32.mxu0 %vm329_vm0, %v12057_v21 }
 0x119   : > { %9433 = vmatmul.mubr.msk.f32.gmra.mrb[26].mxu0 %vm329_vm0, %v12063_v20 }
 0x11a   : > { %9435 = vmatprep.mubr.msk.f32.mxu0 %vm329_vm0, %v12065_v19 }
 0x11d   : > { %9436 = vmatmul.mubr.msk.f32.gmra.mrb[28].mxu0 %vm329_vm0, %v12076_v22 }
 0x11e   : > { %9438 = vmatprep.mubr.msk.f32.mxu0 %vm329_vm0, %v12078_v44 }
 0x121   : > { %9439 = vmatmul.mubr.msk.f32.gmra.mrb[30].mxu0 %vm329_vm0, %v12084_v16 }
 0x122   : > { %9449 = vmatprep.mubr.msk.f32.mxu0 %vm329_vm0, %v1209_v15  ;;  %v12102_v15 = vpack.c.bf16 %v2023_v27, %v2022_v7  ;;  %v12117_v7 = vld [vmem:[#allocation2 + $0x72] sm:$0xff]  ;;  %v1217_v27 = vld [vmem:[#allocation2 + $0xa2] sm:$0xff] }
 0x123   : > { %13994 = vst [vmem:[#allocation52_spill] sm:$0xff] %v12117_v7 }
 0x125   : > { %9450 = vmatmul.mubr.msk.f32.vlgmr.msra.gmra.mrb[0].mxu0 %vm329_vm0, %v12089_v18 }
 0x126   : > { %10380 = vmatpush3.bf16.msra.mxu0 %v11962_v30  ;;  %9452 = vmatprep.mubr.msk.f32.mxu0 %vm329_vm0, %v12091_v12  ;;  %v12122_v30 = vld [vmem:[#allocation2 + $0xb2] sm:$0xff] }
 0x127   : > { %10382 = vmatprep.subr.bf16.mxu0 %v10381_v11  ;;  %13995 = vst [vmem:[#allocation53_spill] sm:$0xff] %v12122_v30 }
 0x129   : > { %9453 = vmatmul.mubr.msk.f32.gmra.mrb[2].mxu0 %vm329_vm0, %v12098_v26  ;;  %v2413_v26 = vld [vmem:[#allocation6 + $0xa8] sm:$0xff] }
 0x12a   : > { %9455 = vmatprep.mubr.msk.f32.mxu0 %vm329_vm0, %v12100_v17  ;;  %10384 = vmatpush3.bf16.msra.mxu0 %v10381_v11  ;;  %v12124_v11 = vld [vmem:[#allocation2 + $0xc2] sm:$0xff]  ;;  %v2025_v17 = vld [vmem:[#allocation6 + $0x98] sm:$0xff] }
 0x12b   : > { %10386 = vmatprep.subr.bf16.mxu0 %v12102_v15  ;;  %13996 = vst [vmem:[#allocation54_spill] sm:$0xff] %v12124_v11 }
 0x12d   : > { %9456 = vmatmul.mubr.msk.f32.gmra.mrb[4].mxu0 %vm329_vm0, %v12108_v13  ;;  %v12130_v13 = vld [vmem:[#allocation2 + $0xd2] sm:$0xff] }
 0x12e   : > { %9458 = vmatprep.mubr.msk.f32.mxu0 %vm329_vm0, %v12110_v14  ;;  %13997 = vst [vmem:[#allocation55_spill] sm:$0xff] %v12130_v13  ;;  %v12132_v14 = vld [vmem:[#allocation2 + $0xe2] sm:$0xff] }
 0x12f   : > { %13998 = vst [vmem:[#allocation56_spill] sm:$0xff] %v12132_v14 }
 0x131   : > { %9459 = vmatmul.mubr.msk.f32.gmra.mrb[6].mxu0 %vm329_vm0, %v12117_v7  ;;  %v12140_v7 = vld [vmem:[#allocation2 + $0x102] sm:$0xff] }
 0x132   : > { %9461 = vmatprep.mubr.msk.f32.mxu0 %vm329_vm0, %v1217_v27  ;;  %v12138_v27 = vld [vmem:[#allocation2 + $0xf2] sm:$0xff]  ;;  %14000 = vst [vmem:[#allocation58_spill] sm:$0xff] %v12140_v7 }
 0x133   : > { %13999 = vst [vmem:[#allocation57_spill] sm:$0xff] %v12138_v27 }
 0x135   : > { %9462 = vmatmul.mubr.msk.f32.gmra.mrb[8].mxu0 %vm329_vm0, %v12122_v30  ;;  %v1225_v30 = vld [vmem:[#allocation2 + $0x142] sm:$0xff] }
 0x136   : > { %9464 = vmatprep.mubr.msk.f32.mxu0 %vm329_vm0, %v12124_v11  ;;  %v12146_v11 = vld [vmem:[#allocation2 + $0x112] sm:$0xff] }
 0x137   : > { %14001 = vst [vmem:[#allocation59_spill] sm:$0xff] %v12146_v11 }
 0x139   : > { %9465 = vmatmul.mubr.msk.f32.gmra.mrb[10].mxu0 %vm329_vm0, %v12130_v13  ;;  %v12151_v13 = vld [vmem:[#allocation2 + $0x152] sm:$0xff] }
 0x13a   : > { %9467 = vmatprep.mubr.msk.f32.mxu0 %vm329_vm0, %v12132_v14  ;;  %14002 = vst [vmem:[#allocation60_spill] sm:$0xff] %v12151_v13  ;;  %v12153_v14 = vld [vmem:[#allocation2 + $0x162] sm:$0xff] }
 0x13b   : > { %14003 = vst [vmem:[#allocation61_spill] sm:$0xff] %v12153_v14 }
 0x13d   : > { %9468 = vmatmul.mubr.msk.f32.gmra.mrb[12].mxu0 %vm329_vm0, %v12138_v27  ;;  %v12159_v27 = vld [vmem:[#allocation2 + $0x172] sm:$0xff] }
 0x13e   : > { %9470 = vmatprep.mubr.msk.f32.mxu0 %vm329_vm0, %v12140_v7  ;;  %14004 = vst [vmem:[#allocation62_spill] sm:$0xff] %v12159_v27  ;;  %v12161_v7 = vld [vmem:[#allocation2 + $0x182] sm:$0xff] }
 0x13f   : > { %14005 = vst [vmem:[#allocation63_spill] sm:$0xff] %v12161_v7 }
 0x141   : > { %9471 = vmatmul.mubr.msk.f32.gmra.mrb[14].mxu0 %vm329_vm0, %v12146_v11  ;;  %v12169_v11 = vld [vmem:[#allocation2 + $0x1a2] sm:$0xff] }
 0x142   : > { %9473 = vmatprep.mubr.msk.f32.mxu0 %vm329_vm0, %v1225_v30  ;;  %v12167_v30 = vld [vmem:[#allocation2 + $0x192] sm:$0xff]  ;;  %14007 = vst [vmem:[#allocation65_spill] sm:$0xff] %v12169_v11 }
 0x143   : > { %14006 = vst [vmem:[#allocation64_spill] sm:$0xff] %v12167_v30 }
 0x145   : > { %9474 = vmatmul.mubr.msk.f32.gmra.mrb[16].mxu0 %vm329_vm0, %v12151_v13  ;;  %v1233_v13 = vld [vmem:[#allocation2 + $0x1e2] sm:$0xff] }
 0x146   : > { %9476 = vmatprep.mubr.msk.f32.mxu0 %vm329_vm0, %v12153_v14  ;;  %v12175_v14 = vld [vmem:[#allocation2 + $0x1b2] sm:$0xff] }
 0x147   : > { %14008 = vst [vmem:[#allocation66_spill] sm:$0xff] %v12175_v14 }
 0x149   : > { %9477 = vmatmul.mubr.msk.f32.gmra.mrb[18].mxu0 %vm329_vm0, %v12159_v27  ;;  %v12180_v27 = vld [vmem:[#allocation2 + $0x1f2] sm:$0xff] }
 0x14a   : > { %9479 = vmatprep.mubr.msk.f32.mxu0 %vm329_vm0, %v12161_v7  ;;  %14009 = vst [vmem:[#allocation67_spill] sm:$0xff] %v12180_v27  ;;  %v12182_v7 = vld [vmem:[#allocation2 + $0x202] sm:$0xff] }
 0x14b   : > { %14010 = vst [vmem:[#allocation68_spill] sm:$0xff] %v12182_v7 }
 0x14d   : > { %9480 = vmatmul.mubr.msk.f32.gmra.mrb[20].mxu0 %vm329_vm0, %v12167_v30  ;;  %v12188_v30 = vld [vmem:[#allocation2 + $0x212] sm:$0xff] }
 0x14e   : > { %9482 = vmatprep.mubr.msk.f32.mxu0 %vm329_vm0, %v12169_v11  ;;  %14011 = vst [vmem:[#allocation69_spill] sm:$0xff] %v12188_v30  ;;  %v12190_v11 = vld [vmem:[#allocation2 + $0x222] sm:$0xff] }
 0x14f   : > { %14012 = vst [vmem:[#allocation70_spill] sm:$0xff] %v12190_v11 }
 0x151   : > { %9483 = vmatmul.mubr.msk.f32.gmra.mrb[22].mxu0 %vm329_vm0, %v12175_v14  ;;  %v12198_v14 = vld [vmem:[#allocation2 + $0x242] sm:$0xff] }
 0x152   : > { %9485 = vmatprep.mubr.msk.f32.mxu0 %vm329_vm0, %v1233_v13  ;;  %v12196_v13 = vld [vmem:[#allocation2 + $0x232] sm:$0xff]  ;;  %14013 = vst [vmem:[#allocation71_spill] sm:$0xff] %v12198_v14 }
 0x155   : > { %9486 = vmatmul.mubr.msk.f32.gmra.mrb[24].mxu0 %vm329_vm0, %v12180_v27  ;;  %v2024_v27 = vld [vmem:[#allocation6 + $0x90] sm:$0xff] }
 0x156   : > { %9488 = vmatprep.mubr.msk.f32.mxu0 %vm329_vm0, %v12182_v7  ;;  %v12204_v7 = vld [vmem:[#allocation2 + $0x252] sm:$0xff] }
 0x157   : > { %14014 = vst [vmem:[#allocation72_spill] sm:$0xff] %v12204_v7 }
 0x159   : > { %9489 = vmatmul.mubr.msk.f32.gmra.mrb[26].mxu0 %vm329_vm0, %v12188_v30  ;;  %v2412_v30 = vld [vmem:[#allocation6 + $0xa0] sm:$0xff] }
 0x15a   : > { %9491 = vmatprep.mubr.msk.f32.mxu0 %vm329_vm0, %v12190_v11  ;;  %v10389_v11 = vpack.c.bf16 %v2025_v17, %v2024_v27  ;;  %v12223_v17 = vld [vmem:[#allocation2 + $0x80] sm:$0xff]  ;;  %v2804_v27 = vld [vmem:[#allocation6 + $0xc8] sm:$0xff] }
 0x15d   : > { %9492 = vmatmul.mubr.msk.f32.gmra.mrb[28].mxu0 %vm329_vm0, %v12196_v13 }
 0x15e   : > { %9494 = vmatprep.mubr.msk.f32.mxu0 %vm329_vm0, %v12198_v14  ;;  %v10393_v14 = vpack.c.bf16 %v2413_v26, %v2412_v30  ;;  %v12241_v26 = vld [vmem:[#allocation2 + $0x120] sm:$0xff] }
 0x161   : > { %9495 = vmatmul.mubr.msk.f32.gmra.mrb[30].mxu0 %vm329_vm0, %v12204_v7 }
 0x162   : > { %9505 = vmatprep.mubr.msk.f32.mxu0 %vm329_vm0, %v11950_v51  ;;  %v12259_v51 = vld [vmem:[#allocation2 + $0x1c0] sm:$0xff] }
 0x165   : > { %9506 = vmatmul.mubr.msk.f32.vlgmr.msra.gmra.mrb[0].mxu0 %vm329_vm0, %v11952_v60 }
 0x166   : > { %10388 = vmatpush3.bf16.msra.mxu0 %v12102_v15  ;;  %9508 = vmatprep.mubr.msk.f32.mxu0 %vm329_vm0, %v11958_v46 }
 0x167   : > { %10390 = vmatprep.subr.bf16.mxu0 %v10389_v11 }
 0x169   : > { %9509 = vmatmul.mubr.msk.f32.gmra.mrb[2].mxu0 %vm329_vm0, %v11960_v45 }
 0x16a   : > { %9511 = vmatprep.mubr.msk.f32.mxu0 %vm329_vm0, %v11973_v52  ;;  %10392 = vmatpush3.bf16.msra.mxu0 %v10389_v11  ;;  %v2803_v11 = vld [vmem:[#allocation6 + $0xc0] sm:$0xff] }
 0x16b   : > { %10394 = vmatprep.subr.bf16.mxu0 %v10393_v14  ;;  %v10401_v30 = vpack.c.bf16 %v2804_v27, %v2803_v11  ;;  %v14033_v11 = vld [vmem:[#allocation63_spill] sm:$0xff]  ;;  %v14034_v27 = vld [vmem:[#allocation64_spill] sm:$0xff] }
 0x16d   : > { %9512 = vmatmul.mubr.msk.f32.gmra.mrb[4].mxu0 %vm329_vm0, %v11975_v49 }
 0x16e   : > { %9514 = vmatprep.mubr.msk.f32.mxu0 %vm329_vm0, %v11982_v0 }
 0x171   : > { %9515 = vmatmul.mubr.msk.f32.gmra.mrb[6].mxu0 %vm329_vm0, %v12223_v17 }
 0x172   : > { %9517 = vmatprep.mubr.msk.f32.mxu0 %vm329_vm0, %v11987_v50  ;;  %v2415_v50 = vld [vmem:[#allocation6 + $0xb8] sm:$0xff] }
 0x175   : > { %9518 = vmatmul.mubr.msk.f32.gmra.mrb[8].mxu0 %vm329_vm0, %v11989_v5 }
 0x176   : > { %9520 = vmatprep.mubr.msk.f32.mxu0 %vm329_vm0, %v11995_v43 }
 0x179   : > { %9521 = vmatmul.mubr.msk.f32.gmra.mrb[10].mxu0 %vm329_vm0, %v11997_v41 }
 0x17a   : > { %9523 = vmatprep.mubr.msk.f32.mxu0 %vm329_vm0, %v12008_v47 }
 0x17d   : > { %9524 = vmatmul.mubr.msk.f32.gmra.mrb[12].mxu0 %vm329_vm0, %v12010_v37 }
 0x17e   : > { %9526 = vmatprep.mubr.msk.f32.mxu0 %vm329_vm0, %v12016_v35 }
 0x181   : > { %9527 = vmatmul.mubr.msk.f32.gmra.mrb[14].mxu0 %vm329_vm0, %v12241_v26 }
 0x182   : > { %9529 = vmatprep.mubr.msk.f32.mxu0 %vm329_vm0, %v12021_v32  ;;  %v12277_v32 = vld [vmem:[#allocation2 + $0x260] sm:$0xff] }
 0x185   : > { %9530 = vmatmul.mubr.msk.f32.gmra.mrb[16].mxu0 %vm329_vm0, %v12023_v31 }
 0x186   : > { %9532 = vmatprep.mubr.msk.f32.mxu0 %vm329_vm0, %v12029_v28 }
 0x189   : > { %9533 = vmatmul.mubr.msk.f32.gmra.mrb[18].mxu0 %vm329_vm0, %v12031_v25 }
 0x18a   : > { %9535 = vmatprep.mubr.msk.f32.mxu0 %vm329_vm0, %v12042_v34 }
 0x18d   : > { %9536 = vmatmul.mubr.msk.f32.gmra.mrb[20].mxu0 %vm329_vm0, %v12044_v24 }
 0x18e   : > { %9538 = vmatprep.mubr.msk.f32.mxu0 %vm329_vm0, %v12050_v23 }
 0x191   : > { %9539 = vmatmul.mubr.msk.f32.gmra.mrb[22].mxu0 %vm329_vm0, %v12259_v51 }
 0x192   : > { %9541 = vmatprep.mubr.msk.f32.mxu0 %vm329_vm0, %v12055_v40  ;;  %v2414_v40 = vld [vmem:[#allocation6 + $0xb0] sm:$0xff] }
 0x193   : > { %v10397_v15 = vpack.c.bf16 %v2415_v50, %v2414_v40  ;;  %v14030_v40 = vld [vmem:[#allocation60_spill] sm:$0xff]  ;;  %v14031_v50 = vld [vmem:[#allocation61_spill] sm:$0xff] }
 0x195   : > { %9542 = vmatmul.mubr.msk.f32.gmra.mrb[24].mxu0 %vm329_vm0, %v12057_v21 }
 0x196   : > { %9544 = vmatprep.mubr.msk.f32.mxu0 %vm329_vm0, %v12063_v20 }
 0x199   : > { %9545 = vmatmul.mubr.msk.f32.gmra.mrb[26].mxu0 %vm329_vm0, %v12065_v19 }
 0x19a   : > { %9547 = vmatprep.mubr.msk.f32.mxu0 %vm329_vm0, %v12076_v22 }
 0x19d   : > { %9548 = vmatmul.mubr.msk.f32.gmra.mrb[28].mxu0 %vm329_vm0, %v12078_v44 }
 0x19e   : > { %9550 = vmatprep.mubr.msk.f32.mxu0 %vm329_vm0, %v12084_v16 }
 0x1a1   : > { %9551 = vmatmul.mubr.msk.f32.gmra.mrb[30].mxu0 %vm329_vm0, %v12277_v32 }
 0x1a2   : > { %9561 = vmatprep.mubr.msk.f32.mxu0 %vm329_vm0, %v11772_v29  ;;  %v12295_v29 = vld [vmem:[#allocation2 + $0x81] sm:$0xff] }
 0x1a5   : > { %9562 = vmatmul.mubr.msk.f32.vlgmr.msra.gmra.mrb[0].mxu0 %vm329_vm0, %v11782_v33  ;;  %v12313_v33 = vld [vmem:[#allocation2 + $0x121] sm:$0xff] }
 0x1a6   : > { %10396 = vmatpush3.bf16.msra.mxu0 %v10393_v14  ;;  %9564 = vmatprep.mubr.msk.f32.mxu0 %vm329_vm0, %v11802_v36  ;;  %v12331_v36 = vld [vmem:[#allocation2 + $0x1c1] sm:$0xff] }
 0x1a7   : > { %10398 = vmatprep.subr.bf16.mxu0 %v10397_v15  ;;  %v12385_v14 = vld [vmem:[#allocation2 + $0x122] sm:$0xff] }
 0x1a9   : > { %9565 = vmatmul.mubr.msk.f32.gmra.mrb[2].mxu0 %vm329_vm0, %v11807_v38  ;;  %v14015_v38 = vld [vmem:[#allocation41_spill] sm:$0xff] }
 0x1aa   : > { %9567 = vmatprep.mubr.msk.f32.mxu0 %vm329_vm0, %v11815_v39  ;;  %10400 = vmatpush3.bf16.msra.mxu0 %v10397_v15  ;;  %v14016_v39 = vld [vmem:[#allocation42_spill] sm:$0xff] }
 0x1ab   : > { %10402 = vmatprep.subr.bf16.mxu0 %v10401_v30  ;;  %v14032_v15 = vld [vmem:[#allocation62_spill] sm:$0xff] }
 0x1ad   : > { %9568 = vmatmul.mubr.msk.f32.gmra.mrb[4].mxu0 %vm329_vm0, %v11823_v42  ;;  %v14017_v42 = vld [vmem:[#allocation43_spill] sm:$0xff] }
 0x1ae   : > { %9570 = vmatprep.mubr.msk.f32.mxu0 %vm329_vm0, %v11852_v48  ;;  %v12349_v48 = vld [vmem:[#allocation2 + $0x261] sm:$0xff] }
 0x1b1   : > { %9571 = vmatmul.mubr.msk.f32.gmra.mrb[6].mxu0 %vm329_vm0, %v12295_v29 }
 0x1b2   : > { %9573 = vmatprep.mubr.msk.f32.mxu0 %vm329_vm0, %v11863_v53  ;;  %v2805_v53 = vld [vmem:[#allocation6 + $0xd0] sm:$0xff] }
 0x1b5   : > { %9574 = vmatmul.mubr.msk.f32.gmra.mrb[8].mxu0 %vm329_vm0, %v11865_v54  ;;  %v2806_v54 = vld [vmem:[#allocation6 + $0xd8] sm:$0xff] }
 0x1b6   : > { %9576 = vmatprep.mubr.msk.f32.mxu0 %vm329_vm0, %v11871_v55  ;;  %v10405_v55 = vpack.c.bf16 %v2806_v54, %v2805_v53  ;;  %v14038_v53 = vld [vmem:[#allocation68_spill] sm:$0xff]  ;;  %v14039_v54 = vld [vmem:[#allocation69_spill] sm:$0xff] }
 0x1b9   : > { %9577 = vmatmul.mubr.msk.f32.gmra.mrb[10].mxu0 %vm329_vm0, %v11873_v56  ;;  %v3193_v56 = vld [vmem:[#allocation6 + $0xe0] sm:$0xff] }
 0x1ba   : > { %9579 = vmatprep.mubr.msk.f32.mxu0 %vm329_vm0, %v11879_v57  ;;  %v3194_v57 = vld [vmem:[#allocation6 + $0xe8] sm:$0xff] }
 0x1bd   : > { %9580 = vmatmul.mubr.msk.f32.gmra.mrb[12].mxu0 %vm329_vm0, %v11881_v58  ;;  %v14018_v58 = vld [vmem:[#allocation48_spill] sm:$0xff] }
 0x1be   : > { %9582 = vmatprep.mubr.msk.f32.mxu0 %vm329_vm0, %v11887_v59  ;;  %v10409_v59 = vpack.c.bf16 %v3194_v57, %v3193_v56  ;;  %v14041_v56 = vld [vmem:[#allocation71_spill] sm:$0xff]  ;;  %v12421_v57 = vld [vmem:[#allocation2 + $0x262] sm:$0xff] }
 0x1c1   : > { %9583 = vmatmul.mubr.msk.f32.gmra.mrb[14].mxu0 %vm329_vm0, %v12313_v33 }
 0x1c2   : > { %9585 = vmatprep.mubr.msk.f32.mxu0 %vm329_vm0, %v11892_v61  ;;  %v14019_v61 = vld [vmem:[#allocation49_spill] sm:$0xff] }
 0x1c5   : > { %9586 = vmatmul.mubr.msk.f32.gmra.mrb[16].mxu0 %vm329_vm0, %v11894_v62  ;;  %v14020_v62 = vld [vmem:[#allocation50_spill] sm:$0xff] }
 0x1c6   : > { %9588 = vmatprep.mubr.msk.f32.mxu0 %vm329_vm0, %v11900_v63  ;;  %v14022_v63 = vld [vmem:[#allocation52_spill] sm:$0xff] }
 0x1c9   : > { %9589 = vmatmul.mubr.msk.f32.gmra.mrb[18].mxu0 %vm329_vm0, %v11902_v1  ;;  %v12367_v1 = vld [vmem:[#allocation2 + $0x82] sm:$0xff] }
 0x1ca   : > { %9591 = vmatprep.mubr.msk.f32.mxu0 %vm329_vm0, %v11908_v2  ;;  %v14023_v2 = vld [vmem:[#allocation53_spill] sm:$0xff] }
 0x1cd   : > { %9592 = vmatmul.mubr.msk.f32.gmra.mrb[20].mxu0 %vm329_vm0, %v11910_v3  ;;  %v14024_v3 = vld [vmem:[#allocation54_spill] sm:$0xff] }
 0x1ce   : > { %9594 = vmatprep.mubr.msk.f32.mxu0 %vm329_vm0, %v11916_v4  ;;  %v14025_v4 = vld [vmem:[#allocation55_spill] sm:$0xff] }
 0x1d1   : > { %9595 = vmatmul.mubr.msk.f32.gmra.mrb[22].mxu0 %vm329_vm0, %v12331_v36 }
 0x1d2   : > { %9597 = vmatprep.mubr.msk.f32.mxu0 %vm329_vm0, %v11921_v6  ;;  %v14026_v6 = vld [vmem:[#allocation56_spill] sm:$0xff] }
 0x1d5   : > { %9598 = vmatmul.mubr.msk.f32.gmra.mrb[24].mxu0 %vm329_vm0, %v11923_v8  ;;  %v14027_v8 = vld [vmem:[#allocation57_spill] sm:$0xff] }
 0x1d6   : > { %9600 = vmatprep.mubr.msk.f32.mxu0 %vm329_vm0, %v11929_v9  ;;  %v14028_v9 = vld [vmem:[#allocation58_spill] sm:$0xff] }
 0x1d9   : > { %9601 = vmatmul.mubr.msk.f32.gmra.mrb[26].mxu0 %vm329_vm0, %v11931_v10  ;;  %v14029_v10 = vld [vmem:[#allocation59_spill] sm:$0xff] }
 0x1da   : > { %9603 = vmatprep.mubr.msk.f32.mxu0 %vm329_vm0, %v14015_v38  ;;  %v14036_v38 = vld [vmem:[#allocation66_spill] sm:$0xff] }
 0x1dd   : > { %9604 = vmatmul.mubr.msk.f32.gmra.mrb[28].mxu0 %vm329_vm0, %v14016_v39  ;;  %v12403_v39 = vld [vmem:[#allocation2 + $0x1c2] sm:$0xff] }
 0x1de   : > { %9606 = vmatprep.mubr.msk.f32.mxu0 %vm329_vm0, %v14017_v42  ;;  %v14037_v42 = vld [vmem:[#allocation67_spill] sm:$0xff] }
 0x1e1   : > { %9607 = vmatmul.mubr.msk.f32.gmra.mrb[30].mxu0 %vm329_vm0, %v12349_v48 }
 0x1e2   : > { %9617 = vmatprep.mubr.msk.f32.mxu0 %vm329_vm0, %v12089_v18  ;;  %v14021_v18 = vld [vmem:[#allocation51_spill] sm:$0xff] }
 0x1e5   : > { %9618 = vmatmul.mubr.msk.f32.vlgmr.msra.gmra.mrb[0].mxu0 %vm329_vm0, %v12091_v12 }
 0x1e6   : > { %10404 = vmatpush3.bf16.msra.mxu0 %v10401_v30  ;;  %9620 = vmatprep.mubr.msk.f32.mxu0 %vm329_vm0, %v14018_v58  ;;  %v14035_v30 = vld [vmem:[#allocation65_spill] sm:$0xff] }
 0x1e7   : > { %10406 = vmatprep.subr.bf16.mxu0 %v10405_v55 }
 0x1e9   : > { %9621 = vmatmul.mubr.msk.f32.gmra.mrb[2].mxu0 %vm329_vm0, %v14019_v61 }
 0x1ea   : > { %9623 = vmatprep.mubr.msk.f32.mxu0 %vm329_vm0, %v14020_v62  ;;  %10408 = vmatpush3.bf16.msra.mxu0 %v10405_v55  ;;  %v14040_v55 = vld [vmem:[#allocation70_spill] sm:$0xff] }
 0x1eb   : > { %10410 = vmatprep.subr.bf16.mxu0 %v10409_v59 }
 0x1ed   : > { %9624 = vmatmul.mubr.msk.f32.gmra.mrb[4].mxu0 %vm329_vm0, %v14021_v18 }
 0x1ee   : > { %9626 = vmatprep.mubr.msk.f32.mxu0 %vm329_vm0, %v14022_v63 }
 0x1f1   : > { %9627 = vmatmul.mubr.msk.f32.gmra.mrb[6].mxu0 %vm329_vm0, %v12367_v1 }
 0x1f2   : > { %9629 = vmatprep.mubr.msk.f32.mxu0 %vm329_vm0, %v14023_v2  ;;  %v3195_v2 = vld [vmem:[#allocation6 + $0xf0] sm:$0xff] }
 0x1f5   : > { %9630 = vmatmul.mubr.msk.f32.gmra.mrb[8].mxu0 %vm329_vm0, %v14024_v3 }
 0x1f6   : > { %9632 = vmatprep.mubr.msk.f32.mxu0 %vm329_vm0, %v14025_v4 }
 0x1f9   : > { %9633 = vmatmul.mubr.msk.f32.gmra.mrb[10].mxu0 %vm329_vm0, %v14026_v6 }
 0x1fa   : > { %9635 = vmatprep.mubr.msk.f32.mxu0 %vm329_vm0, %v14027_v8 }
 0x1fd   : > { %9636 = vmatmul.mubr.msk.f32.gmra.mrb[12].mxu0 %vm329_vm0, %v14028_v9 }
 0x1fe   : > { %9638 = vmatprep.mubr.msk.f32.mxu0 %vm329_vm0, %v14029_v10 }
 0x201   : > { %9639 = vmatmul.mubr.msk.f32.gmra.mrb[14].mxu0 %vm329_vm0, %v12385_v14 }
 0x202   : > { %9641 = vmatprep.mubr.msk.f32.mxu0 %vm329_vm0, %v14030_v40  ;;  %v3196_v40 = vld [vmem:[#allocation6 + $0xf8] sm:$0xff] }
 0x205   : > { %9642 = vmatmul.mubr.msk.f32.gmra.mrb[16].mxu0 %vm329_vm0, %v14031_v50 }
 0x206   : > { %9644 = vmatprep.mubr.msk.f32.mxu0 %vm329_vm0, %v14032_v15 }
 0x209   : > { %9645 = vmatmul.mubr.msk.f32.gmra.mrb[18].mxu0 %vm329_vm0, %v14033_v11 }
 0x20a   : > { %9647 = vmatprep.mubr.msk.f32.mxu0 %vm329_vm0, %v14034_v27 }
 0x20d   : > { %9648 = vmatmul.mubr.msk.f32.gmra.mrb[20].mxu0 %vm329_vm0, %v14035_v30 }
 0x20e   : > { %9650 = vmatprep.mubr.msk.f32.mxu0 %vm329_vm0, %v14036_v38 }
 0x211   : > { %9651 = vmatmul.mubr.msk.f32.gmra.mrb[22].mxu0 %vm329_vm0, %v12403_v39 }
 0x212   : > { %9653 = vmatprep.mubr.msk.f32.mxu0 %vm329_vm0, %v14037_v42  ;;  %v10413_v42 = vpack.c.bf16 %v3196_v40, %v3195_v2 }
 0x215   : > { %9654 = vmatmul.mubr.msk.f32.gmra.mrb[24].mxu0 %vm329_vm0, %v14038_v53 }
 0x216   : > { %9656 = vmatprep.mubr.msk.f32.mxu0 %vm329_vm0, %v14039_v54  ;;  %v3584_v54 = vld [vmem:[#allocation6 + $0x108] sm:$0xff] }
 0x219   : > { %9657 = vmatmul.mubr.msk.f32.gmra.mrb[26].mxu0 %vm329_vm0, %v14040_v55  ;;  %v3583_v55 = vld [vmem:[#allocation6 + $0x100] sm:$0xff] }
 0x21a   : > { %9659 = vmatprep.mubr.msk.f32.mxu0 %vm329_vm0, %v12196_v13 }
 0x21d   : > { %9660 = vmatmul.mubr.msk.f32.gmra.mrb[28].mxu0 %vm329_vm0, %v14041_v56 }
 0x21e   : > { %9662 = vmatprep.mubr.msk.f32.mxu0 %vm329_vm0, %v12204_v7  ;;  %v10417_v7 = vpack.c.bf16 %v3584_v54, %v3583_v55  ;;  %v3188_v54 = vld [vmem:[#allocation2 + $0x241] sm:$0xff]  ;;  %v3189_v55 = vld [vmem:[#allocation2 + $0x251] sm:$0xff] }
 0x221   : > { %9663 = vmatmul.mubr.msk.f32.gmra.mrb[30].mxu0 %vm329_vm0, %v12421_v57 }
 0x222   : > { %9673 = vmatprep.mubr.msk.f32.mxu0 %vm329_vm0, %v11952_v60  ;;  %v3170_v60 = vld [vmem:[#allocation2 + $0xe1] sm:$0xff] }
 0x225   : > { %9674 = vmatmul.mubr.msk.f32.vlgmr.msra.gmra.mrb[0].mxu0 %vm329_vm0, %v11958_v46  ;;  %v2777_v46 = vld [vmem:[#allocation2 + $0x90] sm:$0xff] }
 0x226   : > { %10412 = vmatpush3.bf16.msra.mxu0 %v10409_v59  ;;  %9676 = vmatprep.mubr.msk.f32.mxu0 %vm329_vm0, %v11960_v45  ;;  %v2785_v45 = vld [vmem:[#allocation2 + $0x130] sm:$0xff] }
 0x227   : > { %10414 = vmatprep.subr.bf16.mxu0 %v10413_v42  ;;  %v3187_v59 = vld [vmem:[#allocation2 + $0x231] sm:$0xff] }
 0x229   : > { %9677 = vmatmul.mubr.msk.f32.gmra.mrb[2].mxu0 %vm329_vm0, %v11973_v52  ;;  %v3171_v52 = vld [vmem:[#allocation2 + $0xf1] sm:$0xff] }
 0x22a   : > { %9679 = vmatprep.mubr.msk.f32.mxu0 %vm329_vm0, %v11975_v49  ;;  %10416 = vmatpush3.bf16.msra.mxu0 %v10413_v42  ;;  %v3172_v49 = vld [vmem:[#allocation2 + $0x101] sm:$0xff] }
 0x22b   : > { %10418 = vmatprep.subr.bf16.mxu0 %v10417_v7 }
 0x22d   : > { %9680 = vmatmul.mubr.msk.f32.gmra.mrb[4].mxu0 %vm329_vm0, %v11982_v0  ;;  %v3173_v0 = vld [vmem:[#allocation2 + $0x111] sm:$0xff] }
 0x22e   : > { %9682 = vmatprep.mubr.msk.f32.mxu0 %vm329_vm0, %v12223_v17  ;;  %v3180_v17 = vld [vmem:[#allocation2 + $0x1a1] sm:$0xff] }
 0x231   : > { %9683 = vmatmul.mubr.msk.f32.gmra.mrb[6].mxu0 %vm329_vm0, %v2777_v46 }
 0x232   : > { %9685 = vmatprep.mubr.msk.f32.mxu0 %vm329_vm0, %v11989_v5  ;;  %v3175_v5 = vld [vmem:[#allocation2 + $0x131] sm:$0xff] }
 0x235   : > { %9686 = vmatmul.mubr.msk.f32.gmra.mrb[8].mxu0 %vm329_vm0, %v11995_v43  ;;  %v3168_v43 = vld [vmem:[#allocation2 + $0xc1] sm:$0xff] }
 0x236   : > { %9688 = vmatprep.mubr.msk.f32.mxu0 %vm329_vm0, %v11997_v41  ;;  %v3167_v41 = vld [vmem:[#allocation2 + $0x91] sm:$0xff] }
 0x239   : > { %9689 = vmatmul.mubr.msk.f32.gmra.mrb[10].mxu0 %vm329_vm0, %v12008_v47  ;;  %v3176_v47 = vld [vmem:[#allocation2 + $0x161] sm:$0xff] }
 0x23a   : > { %9691 = vmatprep.mubr.msk.f32.mxu0 %vm329_vm0, %v12010_v37  ;;  %v3165_v37 = vld [vmem:[#allocation2 + $0x71] sm:$0xff] }
 0x23d   : > { %9692 = vmatmul.mubr.msk.f32.gmra.mrb[12].mxu0 %vm329_vm0, %v12016_v35  ;;  %v2793_v35 = vld [vmem:[#allocation2 + $0x1d0] sm:$0xff] }
 0x23e   : > { %9694 = vmatprep.mubr.msk.f32.mxu0 %vm329_vm0, %v12241_v26  ;;  %v3181_v26 = vld [vmem:[#allocation2 + $0x1b1] sm:$0xff] }
 0x241   : > { %9695 = vmatmul.mubr.msk.f32.gmra.mrb[14].mxu0 %vm329_vm0, %v2785_v45 }
 0x242   : > { %9697 = vmatprep.mubr.msk.f32.mxu0 %vm329_vm0, %v12023_v31  ;;  %v3164_v31 = vld [vmem:[#allocation2 + $0x61] sm:$0xff] }
 0x245   : > { %9698 = vmatmul.mubr.msk.f32.gmra.mrb[16].mxu0 %vm329_vm0, %v12029_v28 }
 0x246   : > { %9700 = vmatprep.mubr.msk.f32.mxu0 %vm329_vm0, %v12031_v25  ;;  %v3586_v25 = vld [vmem:[#allocation6 + $0x118] sm:$0xff] }
 0x249   : > { %9701 = vmatmul.mubr.msk.f32.gmra.mrb[18].mxu0 %vm329_vm0, %v12042_v34  ;;  %v3177_v34 = vld [vmem:[#allocation2 + $0x171] sm:$0xff] }
 0x24a   : > { %9703 = vmatprep.mubr.msk.f32.mxu0 %vm329_vm0, %v12044_v24  ;;  %v3585_v24 = vld [vmem:[#allocation6 + $0x110] sm:$0xff] }
 0x24b   : > { %v10421_v28 = vpack.c.bf16 %v3586_v25, %v3585_v24  ;;  %v4078_v24 = vld [vmem:[#allocation8 + $0x18] sm:$0xff] }
 0x24d   : > { %9704 = vmatmul.mubr.msk.f32.gmra.mrb[20].mxu0 %vm329_vm0, %v12050_v23  ;;  %v2801_v23 = vld [vmem:[#allocation2 + $0x270] sm:$0xff] }
 0x24e   : > { %9706 = vmatprep.mubr.msk.f32.mxu0 %vm329_vm0, %v12259_v51  ;;  %v3183_v51 = vld [vmem:[#allocation2 + $0x1d1] sm:$0xff] }
 0x251   : > { %9707 = vmatmul.mubr.msk.f32.gmra.mrb[22].mxu0 %vm329_vm0, %v2793_v35 }
 0x252   : > { %9709 = vmatprep.mubr.msk.f32.mxu0 %vm329_vm0, %v12057_v21  ;;  %v3160_v21 = vld [vmem:[#allocation2 + $0x21] sm:$0xff] }
 0x255   : > { %9710 = vmatmul.mubr.msk.f32.gmra.mrb[24].mxu0 %vm329_vm0, %v12063_v20  ;;  %v3162_v20 = vld [vmem:[#allocation2 + $0x41] sm:$0xff] }
 0x256   : > { %9712 = vmatprep.mubr.msk.f32.mxu0 %vm329_vm0, %v12065_v19  ;;  %v3161_v19 = vld [vmem:[#allocation2 + $0x31] sm:$0xff] }
 0x259   : > { %9713 = vmatmul.mubr.msk.f32.gmra.mrb[26].mxu0 %vm329_vm0, %v12076_v22  ;;  %v3178_v22 = vld [vmem:[#allocation2 + $0x181] sm:$0xff] }
 0x25a   : > { %9715 = vmatprep.mubr.msk.f32.mxu0 %vm329_vm0, %v12078_v44  ;;  %v3169_v44 = vld [vmem:[#allocation2 + $0xd1] sm:$0xff] }
 0x25d   : > { %9716 = vmatmul.mubr.msk.f32.gmra.mrb[28].mxu0 %vm329_vm0, %v12084_v16  ;;  %v3163_v16 = vld [vmem:[#allocation2 + $0x51] sm:$0xff] }
 0x25e   : > { %9718 = vmatprep.mubr.msk.f32.mxu0 %vm329_vm0, %v12277_v32  ;;  %v3184_v32 = vld [vmem:[#allocation2 + $0x201] sm:$0xff] }
 0x261   : > { %9719 = vmatmul.mubr.msk.f32.gmra.mrb[30].mxu0 %vm329_vm0, %v2801_v23 }
 0x262   : > { %9729 = vmatprep.mubr.msk.f32.mxu0 %vm329_vm0, %v3160_v21  ;;  %v4077_v21 = vld [vmem:[#allocation8 + $0x10] sm:$0xff] }
 0x265   : > { %9730 = vmatmul.mubr.msk.f32.vlgmr.msra.gmra.mrb[0].mxu0 %vm329_vm0, %v3161_v19 }
 0x266   : > { %10420 = vmatpush3.bf16.msra.mxu0 %v10417_v7  ;;  %9732 = vmatprep.mubr.msk.f32.mxu0 %vm329_vm0, %v3162_v20  ;;  %v3179_v7 = vld [vmem:[#allocation2 + $0x191] sm:$0xff] }
 0x267   : > { %10422 = vmatprep.subr.bf16.mxu0 %v10421_v28 }
 0x269   : > { %9733 = vmatmul.mubr.msk.f32.gmra.mrb[2].mxu0 %vm329_vm0, %v3163_v16  ;;  %v10437_v16 = vpack.c.bf16 %v4078_v24, %v4077_v21 }
 0x26a   : > { %9735 = vmatprep.mubr.msk.f32.mxu0 %vm329_vm0, %v3164_v31  ;;  %10424 = vmatpush3.bf16.msra.mxu0 %v10421_v28 }
 0x26d   : > { %9736 = vmatmul.mubr.msk.f32.gmra.mrb[4].mxu0 %vm329_vm0, %v3165_v37 }
 0x26e   : > { %9738 = vmatprep.mubr.msk.f32.mxu0 %vm329_vm0, %v12295_v29  ;;  %v3185_v29 = vld [vmem:[#allocation2 + $0x211] sm:$0xff] }
 0x271   : > { %9739 = vmatmul.mubr.msk.f32.gmra.mrb[6].mxu0 %vm329_vm0, %v3167_v41 }
 0x272   : > { %9741 = vmatprep.mubr.msk.f32.mxu0 %vm329_vm0, %v3168_v43  ;;  %v4791_v43 = vld [vmem:[#allocation8 + $0x40] sm:$0xff] }
 0x275   : > { %9742 = vmatmul.mubr.msk.f32.gmra.mrb[8].mxu0 %vm329_vm0, %v3169_v44  ;;  %v4792_v44 = vld [vmem:[#allocation8 + $0x48] sm:$0xff] }
 0x276   : > { %9744 = vmatprep.mubr.msk.f32.mxu0 %vm329_vm0, %v3170_v60 }
 0x279   : > { %9745 = vmatmul.mubr.msk.f32.gmra.mrb[10].mxu0 %vm329_vm0, %v3171_v52 }
 0x27a   : > { %9747 = vmatprep.mubr.msk.f32.mxu0 %vm329_vm0, %v3172_v49 }
 0x27d   : > { %9748 = vmatmul.mubr.msk.f32.gmra.mrb[12].mxu0 %vm329_vm0, %v3173_v0 }
 0x27e   : > { %9750 = vmatprep.mubr.msk.f32.mxu0 %vm329_vm0, %v12313_v33  ;;  %v3186_v33 = vld [vmem:[#allocation2 + $0x221] sm:$0xff] }
 0x281   : > { %9751 = vmatmul.mubr.msk.f32.gmra.mrb[14].mxu0 %vm329_vm0, %v3175_v5 }
 0x282   : > { %9753 = vmatprep.mubr.msk.f32.mxu0 %vm329_vm0, %v3176_v47  ;;  %v12609_v47 = vpack.c.bf16 %v4792_v44, %v4791_v43 }
 0x285   : > { %9754 = vmatmul.mubr.msk.f32.gmra.mrb[16].mxu0 %vm329_vm0, %v3177_v34 }
 0x286   : > { %9756 = vmatprep.mubr.msk.f32.mxu0 %vm329_vm0, %v3178_v22 }
 0x289   : > { %9757 = vmatmul.mubr.msk.f32.gmra.mrb[18].mxu0 %vm329_vm0, %v3179_v7 }
 0x28a   : > { %9759 = vmatprep.mubr.msk.f32.mxu0 %vm329_vm0, %v3180_v17 }
 0x28d   : > { %9760 = vmatmul.mubr.msk.f32.gmra.mrb[20].mxu0 %vm329_vm0, %v3181_v26 }
 0x28e   : > { %9762 = vmatprep.mubr.msk.f32.mxu0 %vm329_vm0, %v12331_v36  ;;  %v3191_v36 = vld [vmem:[#allocation2 + $0x271] sm:$0xff] }
 0x291   : > { %9763 = vmatmul.mubr.msk.f32.gmra.mrb[22].mxu0 %vm329_vm0, %v3183_v51 }
 0x292   : > { %9765 = vmatprep.mubr.msk.f32.mxu0 %vm329_vm0, %v3184_v32 }
 0x295   : > { %9766 = vmatmul.mubr.msk.f32.gmra.mrb[24].mxu0 %vm329_vm0, %v3185_v29 }
 0x296   : > { %9768 = vmatprep.mubr.msk.f32.mxu0 %vm329_vm0, %v3186_v33 }
 0x299   : > { %9769 = vmatmul.mubr.msk.f32.gmra.mrb[26].mxu0 %vm329_vm0, %v3187_v59 }
 0x29a   : > { %9771 = vmatprep.mubr.msk.f32.mxu0 %vm329_vm0, %v3188_v54 }
 0x29d   : > { %9772 = vmatmul.mubr.msk.f32.gmra.mrb[28].mxu0 %vm329_vm0, %v3189_v55 }
 0x29e   : > { %9774 = vmatprep.mubr.msk.f32.mxu0 %vm329_vm0, %v12349_v48  ;;  %v3557_v48 = vld [vmem:[#allocation2 + $0x92] sm:$0xff] }
 0x2a1   : > { %9775 = vmatmul.mubr.msk.f32.gmra.mrb[30].mxu0 %vm329_vm0, %v3191_v36 }
 0x2a2   : > { %9785 = vmatprep.mubr.msk.f32.mxu0 %vm329_vm0, %v12091_v12  ;;  %v3565_v12 = vld [vmem:[#allocation2 + $0x132] sm:$0xff] }
 0x2a5   : > { %9786 = vmatmul.mubr.msk.f32.vlgmr.msra.gmra.mrb[0].mxu0 %vm329_vm0, %v14018_v58  ;;  %v3573_v58 = vld [vmem:[#allocation2 + $0x1d2] sm:$0xff] }
 0x2a6   : > { %9788 = vmatprep.mubr.msk.f32.mxu0 %vm329_vm0, %v14019_v61  ;;  %v14042_v61 = vld [vmem:[#allocation69_spill] sm:$0xff] }
 0x2a9   : > { %9789 = vmatmul.mubr.msk.f32.gmra.mrb[2].mxu0 %vm329_vm0, %v14020_v62  ;;  %v14043_v62 = vld [vmem:[#allocation70_spill] sm:$0xff] }
 0x2aa   : > { %9791 = vmatprep.mubr.msk.f32.mxu0 %vm329_vm0, %v14021_v18  ;;  %v14044_v18 = vld [vmem:[#allocation72_spill] sm:$0xff] }
 0x2ad   : > { %9792 = vmatmul.mubr.msk.f32.gmra.mrb[4].mxu0 %vm329_vm0, %v14022_v63  ;;  %v3581_v63 = vld [vmem:[#allocation2 + $0x272] sm:$0xff] }
 0x2ae   : > { %9794 = vmatprep.mubr.msk.f32.mxu0 %vm329_vm0, %v12367_v1  ;;  %v4112_v1 = vld [vmem:[#allocation8 + $0x20] sm:$0xff] }
 0x2b1   : > { %9795 = vmatmul.mubr.msk.f32.gmra.mrb[6].mxu0 %vm329_vm0, %v3557_v48 }
 0x2b2   : > { %9797 = vmatprep.mubr.msk.f32.mxu0 %vm329_vm0, %v14024_v3  ;;  %v4113_v3 = vld [vmem:[#allocation8 + $0x28] sm:$0xff] }
 0x2b5   : > { %9798 = vmatmul.mubr.msk.f32.gmra.mrb[8].mxu0 %vm329_vm0, %v14025_v4  ;;  %v10425_v4 = vpack.c.bf16 %v4113_v3, %v4112_v1 }
 0x2b6   : > { %9800 = vmatprep.mubr.msk.f32.mxu0 %vm329_vm0, %v14026_v6  ;;  %v4114_v6 = vld [vmem:[#allocation8 + $0x30] sm:$0xff] }
 0x2b7   : > { %10426 = vmatprep.subr.bf16.mxu1 %v10425_v4 }
 0x2b8   : > { %10428 = vmatpush3.bf16.msra.mxu1 %v10425_v4 }
 0x2b9   : > { %9801 = vmatmul.mubr.msk.f32.gmra.mrb[10].mxu0 %vm329_vm0, %v14027_v8  ;;  %v4115_v8 = vld [vmem:[#allocation8 + $0x38] sm:$0xff] }
 0x2ba   : > { %9803 = vmatprep.mubr.msk.f32.mxu0 %vm329_vm0, %v14028_v9  ;;  %v4079_v9 = vld [vmem:[#allocation2 + $0x1] sm:$0xff] }
 0x2bb   : > { %9841 = vmatprep.mubr.msk.f32.mxu1 %vm329_vm0, %v4079_v9 }
 0x2bd   : > { %9804 = vmatmul.mubr.msk.f32.gmra.mrb[12].mxu0 %vm329_vm0, %v14029_v10  ;;  %v4075_v10 = vld [vmem:[#allocation8] sm:$0xff] }
 0x2be   : > { %9806 = vmatprep.mubr.msk.f32.mxu0 %vm329_vm0, %v12385_v14  ;;  %v4076_v14 = vld [vmem:[#allocation8 + $0x8] sm:$0xff] }
 0x2c1   : > { %9807 = vmatmul.mubr.msk.f32.gmra.mrb[14].mxu0 %vm329_vm0, %v3565_v12 }
 0x2c2   : > { %9809 = vmatprep.mubr.msk.f32.mxu0 %vm329_vm0, %v14031_v50  ;;  %v10433_v50 = vpack.c.bf16 %v4076_v14, %v4075_v10 }
 0x2c5   : > { %9810 = vmatmul.mubr.msk.f32.gmra.mrb[16].mxu0 %vm329_vm0, %v14032_v15  ;;  %v12585_v15 = vld [vmem:[%s13803_s3] ss:$0 sm:$0xff] }
 0x2c6   : > { %9812 = vmatprep.mubr.msk.f32.mxu0 %vm329_vm0, %v14033_v11 }
 0x2c9   : > { %9813 = vmatmul.mubr.msk.f32.gmra.mrb[18].mxu0 %vm329_vm0, %v14034_v27 }
 0x2ca   : > { %9815 = vmatprep.mubr.msk.f32.mxu0 %vm329_vm0, %v14035_v30 }
 0x2cd   : > { %9816 = vmatmul.mubr.msk.f32.gmra.mrb[20].mxu0 %vm329_vm0, %v14036_v38 }
 0x2ce   : > { %9818 = vmatprep.mubr.msk.f32.mxu0 %vm329_vm0, %v12403_v39 }
 0x2d1   : > { %9819 = vmatmul.mubr.msk.f32.gmra.mrb[22].mxu0 %vm329_vm0, %v3573_v58 }
 0x2d2   : > { %9821 = vmatprep.mubr.msk.f32.mxu0 %vm329_vm0, %v14038_v53 }
 0x2d5   : > { %9822 = vmatmul.mubr.msk.f32.gmra.mrb[24].mxu0 %vm329_vm0, %v14042_v61  ;;  %v4087_v61 = vld [vmem:[#allocation2 + $0xa1] sm:$0xff] }
 0x2d6   : > { %9824 = vmatprep.mubr.msk.f32.mxu0 %vm329_vm0, %v14043_v62 }
 0x2d9   : > { %9825 = vmatmul.mubr.msk.f32.gmra.mrb[26].mxu0 %vm329_vm0, %v12196_v13  ;;  %v10429_v13 = vpack.c.bf16 %v4115_v8, %v4114_v6 }
 0x2da   : > { %9827 = vmatprep.mubr.msk.f32.mxu0 %vm329_vm0, %v14041_v56 }
 0x2db   : > { %10430 = vmatprep.subr.bf16.mxu1 %v10429_v13 }
 0x2dc   : > { %10432 = vmatpush3.bf16.msra.mxu1 %v10429_v13 }
 0x2dd   : > { %9828 = vmatmul.mubr.msk.f32.gmra.mrb[28].mxu0 %vm329_vm0, %v14044_v18  ;;  %10434 = vmatprep.subr.bf16.mxu1 %v10433_v50 }
 0x2de   : > { %9830 = vmatprep.mubr.msk.f32.mxu0 %vm329_vm0, %v12421_v57 }
 0x2e1   : > { %9831 = vmatmul.mubr.msk.f32.gmra.mrb[30].mxu0 %vm329_vm0, %v3581_v63 }
 0x378   : > { %v9787_v11 = vpop.f32.mrb[0].mxu0 }
 0x379   : > { %v3948_v27 = vadd.f32 %v9787_v11, %v12585_v15  ;;  %v3749_v30 = vpop.f32.mrb[1].mxu0 }
 0x37a   : > { %v3947_v38 = vadd.f32 %v12585_v15, %v3749_v30 }
 0x37b   : > { %v3980_v39 = vmax.f32 %v3948_v27, 0.0 }
 0x37c   : > { %v3979_v53 = vmax.f32 %v3947_v38, 0.0  ;;  %v9790_v56 = vpop.f32.mrb[2].mxu0 }
 0x37d   : > { %4012 = vst.msk [vmem:[#allocation2 + $0x21] sm:$0xff] %vm329_vm0, %v3980_v39  ;;  %v3950_v57 = vadd.f32 %v9790_v56, %v12585_v15  ;;  %v3759_v2 = vpop.f32.mrb[3].mxu0 }
 0x37e   : > { %4011 = vst.msk [vmem:[#allocation2 + $0x11] sm:$0xff] %vm329_vm0, %v3979_v53  ;;  %v3949_v40 = vadd.f32 %v12585_v15, %v3759_v2 }
 0x37f   : > { %v3982_v42 = vmax.f32 %v3950_v57, 0.0 }
 0x380   : > { %v3981_v46 = vmax.f32 %v3949_v40, 0.0  ;;  %v9793_v45 = vpop.f32.mrb[4].mxu0 }
 0x381   : > { %4014 = vst.msk [vmem:[#allocation2 + $0x41] sm:$0xff] %vm329_vm0, %v3982_v42  ;;  %v3952_v35 = vadd.f32 %v9793_v45, %v12585_v15  ;;  %v3769_v23 = vpop.f32.mrb[5].mxu0 }
 0x382   : > { %4013 = vst.msk [vmem:[#allocation2 + $0x31] sm:$0xff] %vm329_vm0, %v3981_v46  ;;  %v3951_v25 = vadd.f32 %v12585_v15, %v3769_v23 }
 0x383   : > { %v3984_v19 = vmax.f32 %v3952_v35, 0.0 }
 0x384   : > { %v3983_v20 = vmax.f32 %v3951_v25, 0.0  ;;  %v9796_v28 = vpop.f32.mrb[6].mxu0  ;;  %v12605_v52 = vld [vmem:[#allocation2 + $0x21] sm:$0xff] }
 0x385   : > { %4016 = vst.msk [vmem:[#allocation2 + $0x61] sm:$0xff] %vm329_vm0, %v3984_v19  ;;  %v3954_v31 = vadd.f32 %v9796_v28, %v12585_v15  ;;  %v3779_v37 = vpop.f32.mrb[7].mxu0  ;;  %v12599_v41 = vld [vmem:[#allocation2 + $0x11] sm:$0xff]  ;;  %v4095_v19 = vld [vmem:[#allocation2 + $0x141] sm:$0xff] }
 0x386   : > { %4015 = vst.msk [vmem:[#allocation2 + $0x51] sm:$0xff] %vm329_vm0, %v3983_v20  ;;  %v3953_v60 = vadd.f32 %v12585_v15, %v3779_v37  ;;  %9842 = vmatmul.mubr.msk.f32.vlgmr.msra.gmra.mrb[0].mxu1 %vm329_vm0, %v12599_v41 }
 0x387   : > { %v3986_v49 = vmax.f32 %v3954_v31, 0.0  ;;  %9844 = vmatprep.mubr.msk.f32.mxu1 %vm329_vm0, %v12605_v52  ;;  %10436 = vmatpush3.bf16.msra.mxu1 %v10433_v50 }
 0x388   : > { %v3985_v0 = vmax.f32 %v3953_v60, 0.0  ;;  %v9799_v5 = vpop.f32.mrb[8].mxu0  ;;  %10438 = vmatprep.subr.bf16.mxu1 %v10437_v16  ;;  %v12619_v26 = vld [vmem:[#allocation2 + $0x41] sm:$0xff] }
 0x389   : > { %4018 = vst.msk [vmem:[#allocation2 + $0x81] sm:$0xff] %vm329_vm0, %v3986_v49  ;;  %v3956_v34 = vadd.f32 %v9799_v5, %v12585_v15  ;;  %v3789_v22 = vpop.f32.mrb[9].mxu0  ;;  %v12613_v7 = vld [vmem:[#allocation2 + $0x31] sm:$0xff] }
 0x38a   : > { %4017 = vst.msk [vmem:[#allocation2 + $0x71] sm:$0xff] %vm329_vm0, %v3985_v0  ;;  %v3955_v17 = vadd.f32 %v12585_v15, %v3789_v22  ;;  %9845 = vmatmul.mubr.msk.f32.gmra.mrb[2].mxu1 %vm329_vm0, %v12613_v7 }
 0x38b   : > { %v3988_v51 = vmax.f32 %v3956_v34, 0.0  ;;  %9847 = vmatprep.mubr.msk.f32.mxu1 %vm329_vm0, %v12619_v26  ;;  %10440 = vmatpush3.bf16.msra.mxu1 %v10437_v16 }
 0x38c   : > { %v3987_v32 = vmax.f32 %v3955_v17, 0.0  ;;  %v9802_v29 = vpop.f32.mrb[10].mxu0  ;;  %10442 = vmatprep.subr.bf16.mxu1 %v12609_v47  ;;  %v12632_v36 = vld [vmem:[#allocation2 + $0x61] sm:$0xff] }
 0x38d   : > { %4020 = vst.msk [vmem:[#allocation2 + $0xc1] sm:$0xff] %vm329_vm0, %v3988_v51  ;;  %v3958_v33 = vadd.f32 %v9802_v29, %v12585_v15  ;;  %v3799_v59 = vpop.f32.mrb[11].mxu0  ;;  %v12626_v54 = vld [vmem:[#allocation2 + $0x51] sm:$0xff] }
 0x38e   : > { %4019 = vst.msk [vmem:[#allocation2 + $0xb1] sm:$0xff] %vm329_vm0, %v3987_v32  ;;  %v3957_v55 = vadd.f32 %v12585_v15, %v3799_v59  ;;  %9848 = vmatmul.mubr.msk.f32.gmra.mrb[4].mxu1 %vm329_vm0, %v12626_v54 }
 0x38f   : > { %v3990_v48 = vmax.f32 %v3958_v33, 0.0  ;;  %9850 = vmatprep.mubr.msk.f32.mxu1 %vm329_vm0, %v12632_v36 }
 0x390   : > { %v3989_v12 = vmax.f32 %v3957_v55, 0.0  ;;  %v9805_v58 = vpop.f32.mrb[12].mxu0 }
 0x391   : > { %4022 = vst.msk [vmem:[#allocation2 + $0xe1] sm:$0xff] %vm329_vm0, %v3990_v48  ;;  %v3960_v62 = vadd.f32 %v9805_v58, %v12585_v15  ;;  %v3809_v18 = vpop.f32.mrb[13].mxu0  ;;  %v12638_v63 = vld [vmem:[#allocation2 + $0x71] sm:$0xff] }
 0x392   : > { %4021 = vst.msk [vmem:[#allocation2 + $0xd1] sm:$0xff] %vm329_vm0, %v3989_v12  ;;  %v3959_v1 = vadd.f32 %v12585_v15, %v3809_v18  ;;  %9851 = vmatmul.mubr.msk.f32.gmra.mrb[6].mxu1 %vm329_vm0, %v12638_v63 }
 0x393   : > { %v3992_v3 = vmax.f32 %v3960_v62, 0.0  ;;  %9853 = vmatprep.mubr.msk.f32.mxu1 %vm329_vm0, %v4087_v61 }
 0x394   : > { %v3991_v4 = vmax.f32 %v3959_v1, 0.0  ;;  %v9808_v6 = vpop.f32.mrb[14].mxu0  ;;  %v12653_v14 = vld [vmem:[#allocation2 + $0xc1] sm:$0xff] }
 0x395   : > { %4024 = vst.msk [vmem:[#allocation2 + $0x101] sm:$0xff] %vm329_vm0, %v3992_v3  ;;  %v3962_v8 = vadd.f32 %v9808_v6, %v12585_v15  ;;  %v3819_v13 = vpop.f32.mrb[15].mxu0  ;;  %v12647_v9 = vld [vmem:[#allocation2 + $0xb1] sm:$0xff] }
 0x396   : > { %4023 = vst.msk [vmem:[#allocation2 + $0xf1] sm:$0xff] %vm329_vm0, %v3991_v4  ;;  %v3961_v10 = vadd.f32 %v12585_v15, %v3819_v13  ;;  %9854 = vmatmul.mubr.msk.f32.gmra.mrb[8].mxu1 %vm329_vm0, %v12647_v9  ;;  %v4103_v13 = vld [vmem:[#allocation2 + $0x1e1] sm:$0xff] }
 0x397   : > { %v3994_v50 = vmax.f32 %v3962_v8, 0.0  ;;  %9856 = vmatprep.mubr.msk.f32.mxu1 %vm329_vm0, %v12653_v14 }
 0x398   : > { %v3993_v11 = vmax.f32 %v3961_v10, 0.0  ;;  %v9811_v27 = vpop.f32.mrb[16].mxu0  ;;  %v12665_v56 = vld [vmem:[#allocation2 + $0xe1] sm:$0xff] }
 0x399   : > { %4026 = vst.msk [vmem:[#allocation2 + $0x121] sm:$0xff] %vm329_vm0, %v3994_v50  ;;  %v3964_v30 = vadd.f32 %v9811_v27, %v12585_v15  ;;  %v3829_v38 = vpop.f32.mrb[17].mxu0  ;;  %v12659_v39 = vld [vmem:[#allocation2 + $0xd1] sm:$0xff] }
 0x39a   : > { %4025 = vst.msk [vmem:[#allocation2 + $0x111] sm:$0xff] %vm329_vm0, %v3993_v11  ;;  %v3963_v53 = vadd.f32 %v12585_v15, %v3829_v38  ;;  %9857 = vmatmul.mubr.msk.f32.gmra.mrb[10].mxu1 %vm329_vm0, %v12659_v39 }
 0x39b   : > { %v3996_v57 = vmax.f32 %v3964_v30, 0.0  ;;  %9859 = vmatprep.mubr.msk.f32.mxu1 %vm329_vm0, %v12665_v56 }
 0x39c   : > { %v3995_v2 = vmax.f32 %v3963_v53, 0.0  ;;  %v9814_v40 = vpop.f32.mrb[18].mxu0  ;;  %v12677_v23 = vld [vmem:[#allocation2 + $0x101] sm:$0xff] }
 0x39d   : > { %4028 = vst.msk [vmem:[#allocation2 + $0x161] sm:$0xff] %vm329_vm0, %v3996_v57  ;;  %v3966_v42 = vadd.f32 %v9814_v40, %v12585_v15  ;;  %v3839_v46 = vpop.f32.mrb[19].mxu0  ;;  %v12671_v45 = vld [vmem:[#allocation2 + $0xf1] sm:$0xff] }
 0x39e   : > { %4027 = vst.msk [vmem:[#allocation2 + $0x151] sm:$0xff] %vm329_vm0, %v3995_v2  ;;  %v3965_v35 = vadd.f32 %v12585_v15, %v3839_v46  ;;  %9860 = vmatmul.mubr.msk.f32.gmra.mrb[12].mxu1 %vm329_vm0, %v12671_v45 }
 0x39f   : > { %v3998_v21 = vmax.f32 %v3966_v42, 0.0  ;;  %9862 = vmatprep.mubr.msk.f32.mxu1 %vm329_vm0, %v12677_v23 }
 0x3a0   : > { %v3997_v24 = vmax.f32 %v3965_v35, 0.0  ;;  %v9817_v25 = vpop.f32.mrb[20].mxu0 }
 0x3a1   : > { %4030 = vst.msk [vmem:[#allocation2 + $0x181] sm:$0xff] %vm329_vm0, %v3998_v21  ;;  %v3968_v20 = vadd.f32 %v9817_v25, %v12585_v15  ;;  %v3849_v28 = vpop.f32.mrb[21].mxu0  ;;  %v12683_v16 = vld [vmem:[#allocation2 + $0x111] sm:$0xff] }
 0x3a2   : > { %4029 = vst.msk [vmem:[#allocation2 + $0x171] sm:$0xff] %vm329_vm0, %v3997_v24  ;;  %v3967_v31 = vadd.f32 %v12585_v15, %v3849_v28  ;;  %9863 = vmatmul.mubr.msk.f32.gmra.mrb[14].mxu1 %vm329_vm0, %v12683_v16 }
 0x3a3   : > { %v4000_v37 = vmax.f32 %v3968_v20, 0.0  ;;  %9865 = vmatprep.mubr.msk.f32.mxu1 %vm329_vm0, %v4095_v19  ;;  %v4043_v20 = vld [vmem:[#allocation2] sm:$0xff] }
 0x3a4   : > { %v3999_v43 = vmax.f32 %v3967_v31, 0.0  ;;  %v9820_v44 = vpop.f32.mrb[22].mxu0  ;;  %v12698_v34 = vld [vmem:[#allocation2 + $0x161] sm:$0xff]  ;;  %v4793_v31 = vld [vmem:[#allocation8 + $0x50] sm:$0xff] }
 0x3a5   : > { %4032 = vst.msk [vmem:[#allocation2 + $0x1a1] sm:$0xff] %vm329_vm0, %v4000_v37  ;;  %v3970_v60 = vadd.f32 %v9820_v44, %v12585_v15  ;;  %v3859_v49 = vpop.f32.mrb[23].mxu0  ;;  %v12692_v0 = vld [vmem:[#allocation2 + $0x151] sm:$0xff] }
 0x3a6   : > { %4031 = vst.msk [vmem:[#allocation2 + $0x191] sm:$0xff] %vm329_vm0, %v3999_v43  ;;  %v3969_v5 = vadd.f32 %v12585_v15, %v3859_v49  ;;  %9866 = vmatmul.mubr.msk.f32.gmra.mrb[16].mxu1 %vm329_vm0, %v12692_v0  ;;  %v4794_v37 = vld [vmem:[#allocation8 + $0x58] sm:$0xff]  ;;  %v12770_v44 = vld [vmem:[#allocation2 + $0x10] sm:$0xff]  ;;  %v5182_v49 = vld [vmem:[#allocation8 + $0x68] sm:$0xff] }
 0x3a7   : > { %v4002_v22 = vmax.f32 %v3970_v60, 0.0  ;;  %9868 = vmatprep.mubr.msk.f32.mxu1 %vm329_vm0, %v12698_v34  ;;  %v10445_v43 = vpack.c.bf16 %v4794_v37, %v4793_v31  ;;  %v5181_v60 = vld [vmem:[#allocation8 + $0x60] sm:$0xff] }
 0x3a8   : > { %v4001_v17 = vmax.f32 %v3969_v5, 0.0  ;;  %v9823_v51 = vpop.f32.mrb[24].mxu0  ;;  %v12710_v55 = vld [vmem:[#allocation2 + $0x181] sm:$0xff] }
 0x3a9   : > { %4034 = vst.msk [vmem:[#allocation2 + $0x1c1] sm:$0xff] %vm329_vm0, %v4002_v22  ;;  %v3972_v32 = vadd.f32 %v9823_v51, %v12585_v15  ;;  %v3869_v29 = vpop.f32.mrb[25].mxu0  ;;  %v12704_v33 = vld [vmem:[#allocation2 + $0x171] sm:$0xff]  ;;  %v12774_v5 = vld [vmem:[#allocation2 + $0x20] sm:$0xff]  ;;  %v12779_v22 = vpack.c.bf16 %v5182_v49, %v5181_v60 }
 0x3aa   : > { %4033 = vst.msk [vmem:[#allocation2 + $0x1b1] sm:$0xff] %vm329_vm0, %v4001_v17  ;;  %v3971_v59 = vadd.f32 %v12585_v15, %v3869_v29  ;;  %9869 = vmatmul.mubr.msk.f32.gmra.mrb[18].mxu1 %vm329_vm0, %v12704_v33  ;;  %v12781_v17 = vld [vmem:[#allocation2 + $0x30] sm:$0xff]  ;;  %v12785_v51 = vld [vmem:[#allocation2 + $0x40] sm:$0xff]  ;;  %v5184_v60 = vld [vmem:[#allocation8 + $0x78] sm:$0xff] }
 0x3ab   : > { %v4004_v48 = vmax.f32 %v3972_v32, 0.0  ;;  %9871 = vmatprep.mubr.msk.f32.mxu1 %vm329_vm0, %v12710_v55  ;;  %v12790_v32 = vld [vmem:[#allocation2 + $0x50] sm:$0xff]  ;;  %v4051_v29 = vld [vmem:[#allocation2 + $0xa0] sm:$0xff] }
 0x3ac   : > { %v4003_v12 = vmax.f32 %v3971_v59, 0.0  ;;  %v9826_v58 = vpop.f32.mrb[26].mxu0  ;;  %v12722_v3 = vld [vmem:[#allocation2 + $0x1a1] sm:$0xff]  ;;  %v12798_v59 = vld [vmem:[#allocation2 + $0x70] sm:$0xff] }
 0x3ad   : > { %4036 = vst.msk [vmem:[#allocation2 + $0x201] sm:$0xff] %vm329_vm0, %v4004_v48  ;;  %v3974_v61 = vadd.f32 %v9826_v58, %v12585_v15  ;;  %v3879_v62 = vpop.f32.mrb[27].mxu0  ;;  %v12716_v18 = vld [vmem:[#allocation2 + $0x191] sm:$0xff]  ;;  %v4758_v31 = vld [vmem:[#allocation2 + $0x2] sm:$0xff] }
 0x3ae   : > { %4035 = vst.msk [vmem:[#allocation2 + $0x1f1] sm:$0xff] %vm329_vm0, %v4003_v12  ;;  %v3973_v1 = vadd.f32 %v12585_v15, %v3879_v62  ;;  %9872 = vmatmul.mubr.msk.f32.gmra.mrb[20].mxu1 %vm329_vm0, %v12716_v18  ;;  %v12803_v48 = vld [vmem:[#allocation2 + $0xb0] sm:$0xff]  ;;  %v12807_v12 = vld [vmem:[#allocation2 + $0xc0] sm:$0xff] }
 0x3af   : > { %v4006_v4 = vmax.f32 %v3974_v61, 0.0  ;;  %9874 = vmatprep.mubr.msk.f32.mxu1 %vm329_vm0, %v12722_v3  ;;  %v12811_v58 = vld [vmem:[#allocation2 + $0xd0] sm:$0xff]  ;;  %v12815_v61 = vld [vmem:[#allocation2 + $0xe0] sm:$0xff] }
 0x3b0   : > { %v4005_v6 = vmax.f32 %v3973_v1, 0.0  ;;  %v9829_v8 = vpop.f32.mrb[28].mxu0  ;;  %v12819_v62 = vld [vmem:[#allocation2 + $0xf0] sm:$0xff]  ;;  %v12823_v1 = vld [vmem:[#allocation2 + $0x100] sm:$0xff] }
 0x3b1   : > { %4038 = vst.msk [vmem:[#allocation2 + $0x221] sm:$0xff] %vm329_vm0, %v4006_v4  ;;  %v3976_v10 = vadd.f32 %v9829_v8, %v12585_v15  ;;  %v3889_v50 = vpop.f32.mrb[29].mxu0  ;;  %v12728_v11 = vld [vmem:[#allocation2 + $0x1b1] sm:$0xff]  ;;  %v4059_v4 = vld [vmem:[#allocation2 + $0x140] sm:$0xff] }
 0x3b2   : > { %4037 = vst.msk [vmem:[#allocation2 + $0x211] sm:$0xff] %vm329_vm0, %v4005_v6  ;;  %v3975_v27 = vadd.f32 %v12585_v15, %v3889_v50  ;;  %9875 = vmatmul.mubr.msk.f32.gmra.mrb[22].mxu1 %vm329_vm0, %v12728_v11  ;;  %v12827_v6 = vld [vmem:[#allocation2 + $0x110] sm:$0xff]  ;;  %v12844_v50 = vld [vmem:[#allocation2 + $0x180] sm:$0xff] }
 0x3b3   : > { %v4008_v30 = vmax.f32 %v3976_v10, 0.0  ;;  %9877 = vmatprep.mubr.msk.f32.mxu1 %vm329_vm0, %v4103_v13  ;;  %v12832_v8 = vld [vmem:[#allocation2 + $0x150] sm:$0xff]  ;;  %v12836_v13 = vld [vmem:[#allocation2 + $0x160] sm:$0xff] }
 0x3b4   : > { %v4007_v38 = vmax.f32 %v3975_v27, 0.0  ;;  %v9832_v53 = vpop.f32.mrb[30].mxu0  ;;  %v12743_v46 = vld [vmem:[#allocation2 + $0x201] sm:$0xff]  ;;  %v12840_v10 = vld [vmem:[#allocation2 + $0x170] sm:$0xff] }
 0x3b5   : > { %4040 = vst.msk [vmem:[#allocation2 + $0x241] sm:$0xff] %vm329_vm0, %v4008_v30  ;;  %v3978_v57 = vadd.f32 %v9832_v53, %v12585_v15  ;;  %v3899_v2 = vpop.f32.mrb[31].mxu0  ;;  %v12737_v40 = vld [vmem:[#allocation2 + $0x1f1] sm:$0xff]  ;;  %v12852_v30 = vld [vmem:[#allocation2 + $0x1a0] sm:$0xff] }
 0x3b6   : > { %4039 = vst.msk [vmem:[#allocation2 + $0x231] sm:$0xff] %vm329_vm0, %v4007_v38  ;;  %v3977_v42 = vadd.f32 %v12585_v15, %v3899_v2  ;;  %9878 = vmatmul.mubr.msk.f32.gmra.mrb[24].mxu1 %vm329_vm0, %v12737_v40  ;;  %v12848_v27 = vld [vmem:[#allocation2 + $0x190] sm:$0xff]  ;;  %v4067_v38 = vld [vmem:[#allocation2 + $0x1e0] sm:$0xff] }
 0x3b7   : > { %v4010_v35 = vmax.f32 %v3978_v57, 0.0  ;;  %9880 = vmatprep.mubr.msk.f32.mxu1 %vm329_vm0, %v12743_v46  ;;  %v12856_v53 = vld [vmem:[#allocation2 + $0x1b0] sm:$0xff]  ;;  %v12865_v2 = vld [vmem:[#allocation2 + $0x200] sm:$0xff] }
 0x3b8   : > { %v4009_v21 = vmax.f32 %v3977_v42, 0.0  ;;  %v12753_v15 = vld [vmem:[#allocation2 + $0x221] sm:$0xff]  ;;  %v12861_v57 = vld [vmem:[#allocation2 + $0x1f0] sm:$0xff] }
 0x3b9   : > { %4042 = vst.msk [vmem:[#allocation2 + $0x261] sm:$0xff] %vm329_vm0, %v4010_v35  ;;  %v12748_v24 = vld [vmem:[#allocation2 + $0x211] sm:$0xff]  ;;  %v12873_v35 = vld [vmem:[#allocation2 + $0x220] sm:$0xff] }
 0x3ba   : > { %4041 = vst.msk [vmem:[#allocation2 + $0x251] sm:$0xff] %vm329_vm0, %v4009_v21  ;;  %9881 = vmatmul.mubr.msk.f32.gmra.mrb[26].mxu1 %vm329_vm0, %v12748_v24  ;;  %v12869_v42 = vld [vmem:[#allocation2 + $0x210] sm:$0xff] }
 0x3bb   : > { %9883 = vmatprep.mubr.msk.f32.mxu1 %vm329_vm0, %v12753_v15 }
 0x3bc   : > { %v12761_v19 = vld [vmem:[#allocation2 + $0x241] sm:$0xff] }
 0x3bd   : > { %v12757_v25 = vld [vmem:[#allocation2 + $0x231] sm:$0xff]  ;;  %14046 = vst [vmem:[#allocation42_spill] sm:$0xff] %v12761_v19 }
 0x3be   : > { %14045 = vst [vmem:[#allocation41_spill] sm:$0xff] %v12757_v25  ;;  %9884 = vmatmul.mubr.msk.f32.gmra.mrb[28].mxu1 %vm329_vm0, %v12757_v25  ;;  %v12877_v21 = vld [vmem:[#allocation2 + $0x230] sm:$0xff] }
 0x3bf   : > { %9886 = vmatprep.mubr.msk.f32.mxu1 %vm329_vm0, %v12761_v19  ;;  %v12901_v25 = vld [vmem:[#allocation2 + $0x32] sm:$0xff] }
 0x3c0   : > { %14048 = vst [vmem:[#allocation48_spill] sm:$0xff] %v12901_v25 }
 0x3c1   : > { %v12765_v28 = vld [vmem:[#allocation2 + $0x251] sm:$0xff] }
 0x3c2   : > { %14047 = vst [vmem:[#allocation43_spill] sm:$0xff] %v12765_v28  ;;  %9887 = vmatmul.mubr.msk.f32.gmra.mrb[30].mxu1 %vm329_vm0, %v12765_v28  ;;  %v12885_v37 = vld [vmem:[#allocation2 + $0x250] sm:$0xff]  ;;  %v12894_v28 = vld [vmem:[#allocation2 + $0x22] sm:$0xff] }
 0x3c3   : > { %9897 = vmatprep.mubr.msk.f32.mxu1 %vm329_vm0, %v4043_v20  ;;  %v12881_v20 = vld [vmem:[#allocation2 + $0x240] sm:$0xff] }
 0x3c6   : > { %9898 = vmatmul.mubr.msk.f32.vlgmr.msra.gmra.mrb[0].mxu1 %vm329_vm0, %v12770_v44 }
 0x3c7   : > { %9900 = vmatprep.mubr.msk.f32.mxu1 %vm329_vm0, %v12774_v5  ;;  %10444 = vmatpush3.bf16.msra.mxu1 %v12609_v47  ;;  %v12794_v47 = vld [vmem:[#allocation2 + $0x60] sm:$0xff] }
 0x3c8   : > { %10446 = vmatprep.subr.bf16.mxu1 %v10445_v43 }
 0x3ca   : > { %9901 = vmatmul.mubr.msk.f32.gmra.mrb[2].mxu1 %vm329_vm0, %v12781_v17 }
 0x3cb   : > { %9903 = vmatprep.mubr.msk.f32.mxu1 %vm329_vm0, %v12785_v51  ;;  %10448 = vmatpush3.bf16.msra.mxu1 %v10445_v43  ;;  %v5183_v43 = vld [vmem:[#allocation8 + $0x70] sm:$0xff] }
 0x3cc   : > { %10450 = vmatprep.subr.bf16.mxu1 %v12779_v22  ;;  %v10453_v49 = vpack.c.bf16 %v5184_v60, %v5183_v43  ;;  %v12910_v43 = vld [vmem:[#allocation2 + $0x52] sm:$0xff]  ;;  %v4766_v60 = vld [vmem:[#allocation2 + $0xa2] sm:$0xff] }
 0x3cd   : > { %14050 = vst [vmem:[#allocation50_spill] sm:$0xff] %v12910_v43 }
 0x3ce   : > { %9904 = vmatmul.mubr.msk.f32.gmra.mrb[4].mxu1 %vm329_vm0, %v12790_v32 }
 0x3cf   : > { %9906 = vmatprep.mubr.msk.f32.mxu1 %vm329_vm0, %v12794_v47 }
 0x3d2   : > { %9907 = vmatmul.mubr.msk.f32.gmra.mrb[6].mxu1 %vm329_vm0, %v12798_v59 }
 0x3d3   : > { %9909 = vmatprep.mubr.msk.f32.mxu1 %vm329_vm0, %v4051_v29  ;;  %v12890_v29 = vld [vmem:[#allocation2 + $0x12] sm:$0xff] }
 0x3d6   : > { %9910 = vmatmul.mubr.msk.f32.gmra.mrb[8].mxu1 %vm329_vm0, %v12803_v48 }
 0x3d7   : > { %9912 = vmatprep.mubr.msk.f32.mxu1 %vm329_vm0, %v12807_v12 }
 0x3da   : > { %9913 = vmatmul.mubr.msk.f32.gmra.mrb[10].mxu1 %vm329_vm0, %v12811_v58 }
 0x3db   : > { %9915 = vmatprep.mubr.msk.f32.mxu1 %vm329_vm0, %v12815_v61 }
 0x3de   : > { %9916 = vmatmul.mubr.msk.f32.gmra.mrb[12].mxu1 %vm329_vm0, %v12819_v62 }
 0x3df   : > { %9918 = vmatprep.mubr.msk.f32.mxu1 %vm329_vm0, %v12823_v1 }
 0x3e2   : > { %9919 = vmatmul.mubr.msk.f32.gmra.mrb[14].mxu1 %vm329_vm0, %v12827_v6 }
 0x3e3   : > { %9921 = vmatprep.mubr.msk.f32.mxu1 %vm329_vm0, %v4059_v4  ;;  %v5571_v4 = vld [vmem:[#allocation8 + $0x80] sm:$0xff] }
 0x3e6   : > { %9922 = vmatmul.mubr.msk.f32.gmra.mrb[16].mxu1 %vm329_vm0, %v12832_v8 }
 0x3e7   : > { %9924 = vmatprep.mubr.msk.f32.mxu1 %vm329_vm0, %v12836_v13 }
 0x3ea   : > { %9925 = vmatmul.mubr.msk.f32.gmra.mrb[18].mxu1 %vm329_vm0, %v12840_v10 }
 0x3eb   : > { %9927 = vmatprep.mubr.msk.f32.mxu1 %vm329_vm0, %v12844_v50 }
 0x3ee   : > { %9928 = vmatmul.mubr.msk.f32.gmra.mrb[20].mxu1 %vm329_vm0, %v12848_v27 }
 0x3ef   : > { %9930 = vmatprep.mubr.msk.f32.mxu1 %vm329_vm0, %v12852_v30 }
 0x3f2   : > { %9931 = vmatmul.mubr.msk.f32.gmra.mrb[22].mxu1 %vm329_vm0, %v12856_v53 }
 0x3f3   : > { %9933 = vmatprep.mubr.msk.f32.mxu1 %vm329_vm0, %v4067_v38  ;;  %v5572_v38 = vld [vmem:[#allocation8 + $0x88] sm:$0xff] }
 0x3f4   : > { %v12899_v19 = vpack.c.bf16 %v5572_v38, %v5571_v4  ;;  %v12918_v4 = vld [vmem:[#allocation2 + $0x72] sm:$0xff]  ;;  %v12927_v38 = vld [vmem:[#allocation2 + $0xc2] sm:$0xff] }
 0x3f5   : > { %14052 = vst [vmem:[#allocation52_spill] sm:$0xff] %v12918_v4  ;;  %14054 = vst [vmem:[#allocation54_spill] sm:$0xff] %v12927_v38 }
 0x3f6   : > { %9934 = vmatmul.mubr.msk.f32.gmra.mrb[24].mxu1 %vm329_vm0, %v12861_v57 }
 0x3f7   : > { %9936 = vmatprep.mubr.msk.f32.mxu1 %vm329_vm0, %v12865_v2 }
 0x3fa   : > { %9937 = vmatmul.mubr.msk.f32.gmra.mrb[26].mxu1 %vm329_vm0, %v12869_v42 }
 0x3fb   : > { %9939 = vmatprep.mubr.msk.f32.mxu1 %vm329_vm0, %v12873_v35 }
 0x3fe   : > { %9940 = vmatmul.mubr.msk.f32.gmra.mrb[28].mxu1 %vm329_vm0, %v12877_v21 }
 0x3ff   : > { %9942 = vmatprep.mubr.msk.f32.mxu1 %vm329_vm0, %v12881_v20 }
 0x402   : > { %9943 = vmatmul.mubr.msk.f32.gmra.mrb[30].mxu1 %vm329_vm0, %v12885_v37 }
 0x403   : > { %9953 = vmatprep.mubr.msk.f32.mxu1 %vm329_vm0, %v4758_v31  ;;  %v12905_v31 = vld [vmem:[#allocation2 + $0x42] sm:$0xff] }
 0x404   : > { %14049 = vst [vmem:[#allocation49_spill] sm:$0xff] %v12905_v31 }
 0x406   : > { %9954 = vmatmul.mubr.msk.f32.vlgmr.msra.gmra.mrb[0].mxu1 %vm329_vm0, %v12890_v29 }
 0x407   : > { %9956 = vmatprep.mubr.msk.f32.mxu1 %vm329_vm0, %v12894_v28  ;;  %10452 = vmatpush3.bf16.msra.mxu1 %v12779_v22  ;;  %v12914_v22 = vld [vmem:[#allocation2 + $0x62] sm:$0xff] }
 0x408   : > { %10454 = vmatprep.subr.bf16.mxu1 %v10453_v49  ;;  %14051 = vst [vmem:[#allocation51_spill] sm:$0xff] %v12914_v22 }
 0x40a   : > { %9957 = vmatmul.mubr.msk.f32.gmra.mrb[2].mxu1 %vm329_vm0, %v12901_v25  ;;  %v5962_v25 = vld [vmem:[#allocation8 + $0xa8] sm:$0xff] }
 0x40b   : > { %9959 = vmatprep.mubr.msk.f32.mxu1 %vm329_vm0, %v12905_v31  ;;  %10456 = vmatpush3.bf16.msra.mxu1 %v10453_v49  ;;  %v12923_v49 = vld [vmem:[#allocation2 + $0xb2] sm:$0xff] }
 0x40c   : > { %10458 = vmatprep.subr.bf16.mxu1 %v12899_v19  ;;  %14053 = vst [vmem:[#allocation53_spill] sm:$0xff] %v12923_v49  ;;  %v5574_v31 = vld [vmem:[#allocation8 + $0x98] sm:$0xff] }
 0x40e   : > { %9960 = vmatmul.mubr.msk.f32.gmra.mrb[4].mxu1 %vm329_vm0, %v12910_v43  ;;  %v12931_v43 = vld [vmem:[#allocation2 + $0xd2] sm:$0xff] }
 0x40f   : > { %9962 = vmatprep.mubr.msk.f32.mxu1 %vm329_vm0, %v12914_v22  ;;  %14055 = vst [vmem:[#allocation55_spill] sm:$0xff] %v12931_v43  ;;  %v12935_v22 = vld [vmem:[#allocation2 + $0xe2] sm:$0xff] }
 0x410   : > { %14056 = vst [vmem:[#allocation56_spill] sm:$0xff] %v12935_v22 }
 0x412   : > { %9963 = vmatmul.mubr.msk.f32.gmra.mrb[6].mxu1 %vm329_vm0, %v12918_v4  ;;  %v12947_v4 = vld [vmem:[#allocation2 + $0x112] sm:$0xff] }
 0x413   : > { %9965 = vmatprep.mubr.msk.f32.mxu1 %vm329_vm0, %v4766_v60  ;;  %v12939_v60 = vld [vmem:[#allocation2 + $0xf2] sm:$0xff]  ;;  %14059 = vst [vmem:[#allocation59_spill] sm:$0xff] %v12947_v4 }
 0x414   : > { %14057 = vst [vmem:[#allocation57_spill] sm:$0xff] %v12939_v60 }
 0x416   : > { %9966 = vmatmul.mubr.msk.f32.gmra.mrb[8].mxu1 %vm329_vm0, %v12923_v49  ;;  %v12943_v49 = vld [vmem:[#allocation2 + $0x102] sm:$0xff] }
 0x417   : > { %9968 = vmatprep.mubr.msk.f32.mxu1 %vm329_vm0, %v12927_v38  ;;  %14058 = vst [vmem:[#allocation58_spill] sm:$0xff] %v12943_v49  ;;  %v4774_v38 = vld [vmem:[#allocation2 + $0x142] sm:$0xff] }
 0x41a   : > { %9969 = vmatmul.mubr.msk.f32.gmra.mrb[10].mxu1 %vm329_vm0, %v12931_v43  ;;  %v12952_v43 = vld [vmem:[#allocation2 + $0x152] sm:$0xff] }
 0x41b   : > { %9971 = vmatprep.mubr.msk.f32.mxu1 %vm329_vm0, %v12935_v22  ;;  %14060 = vst [vmem:[#allocation60_spill] sm:$0xff] %v12952_v43  ;;  %v12956_v22 = vld [vmem:[#allocation2 + $0x162] sm:$0xff] }
 0x41c   : > { %14061 = vst [vmem:[#allocation61_spill] sm:$0xff] %v12956_v22 }
 0x41e   : > { %9972 = vmatmul.mubr.msk.f32.gmra.mrb[12].mxu1 %vm329_vm0, %v12939_v60  ;;  %v12960_v60 = vld [vmem:[#allocation2 + $0x172] sm:$0xff] }
 0x41f   : > { %9974 = vmatprep.mubr.msk.f32.mxu1 %vm329_vm0, %v12943_v49  ;;  %14062 = vst [vmem:[#allocation62_spill] sm:$0xff] %v12960_v60  ;;  %v12964_v49 = vld [vmem:[#allocation2 + $0x182] sm:$0xff] }
 0x420   : > { %14063 = vst [vmem:[#allocation63_spill] sm:$0xff] %v12964_v49 }
 0x422   : > { %9975 = vmatmul.mubr.msk.f32.gmra.mrb[14].mxu1 %vm329_vm0, %v12947_v4  ;;  %v12976_v4 = vld [vmem:[#allocation2 + $0x1b2] sm:$0xff] }
 0x423   : > { %9977 = vmatprep.mubr.msk.f32.mxu1 %vm329_vm0, %v4774_v38  ;;  %v12968_v38 = vld [vmem:[#allocation2 + $0x192] sm:$0xff]  ;;  %14066 = vst [vmem:[#allocation66_spill] sm:$0xff] %v12976_v4 }
 0x424   : > { %14064 = vst [vmem:[#allocation64_spill] sm:$0xff] %v12968_v38 }
 0x426   : > { %9978 = vmatmul.mubr.msk.f32.gmra.mrb[16].mxu1 %vm329_vm0, %v12952_v43  ;;  %v12972_v43 = vld [vmem:[#allocation2 + $0x1a2] sm:$0xff] }
 0x427   : > { %9980 = vmatprep.mubr.msk.f32.mxu1 %vm329_vm0, %v12956_v22  ;;  %14065 = vst [vmem:[#allocation65_spill] sm:$0xff] %v12972_v43  ;;  %v4782_v22 = vld [vmem:[#allocation2 + $0x1e2] sm:$0xff] }
 0x42a   : > { %9981 = vmatmul.mubr.msk.f32.gmra.mrb[18].mxu1 %vm329_vm0, %v12960_v60  ;;  %v12981_v60 = vld [vmem:[#allocation2 + $0x1f2] sm:$0xff] }
 0x42b   : > { %9983 = vmatprep.mubr.msk.f32.mxu1 %vm329_vm0, %v12964_v49  ;;  %14067 = vst [vmem:[#allocation67_spill] sm:$0xff] %v12981_v60  ;;  %v12985_v49 = vld [vmem:[#allocation2 + $0x202] sm:$0xff] }
 0x42c   : > { %14068 = vst [vmem:[#allocation68_spill] sm:$0xff] %v12985_v49 }
 0x42e   : > { %9984 = vmatmul.mubr.msk.f32.gmra.mrb[20].mxu1 %vm329_vm0, %v12968_v38  ;;  %v12989_v38 = vld [vmem:[#allocation2 + $0x212] sm:$0xff] }
 0x42f   : > { %9986 = vmatprep.mubr.msk.f32.mxu1 %vm329_vm0, %v12972_v43  ;;  %14069 = vst [vmem:[#allocation71_spill] sm:$0xff] %v12989_v38  ;;  %v12993_v43 = vld [vmem:[#allocation2 + $0x222] sm:$0xff] }
 0x430   : > { %14070 = vst [vmem:[#allocation69_spill] sm:$0xff] %v12993_v43 }
 0x432   : > { %9987 = vmatmul.mubr.msk.f32.gmra.mrb[22].mxu1 %vm329_vm0, %v12976_v4  ;;  %v5573_v4 = vld [vmem:[#allocation8 + $0x90] sm:$0xff] }
 0x433   : > { %9989 = vmatprep.mubr.msk.f32.mxu1 %vm329_vm0, %v4782_v22  ;;  %v12997_v22 = vld [vmem:[#allocation2 + $0x232] sm:$0xff] }
 0x436   : > { %9990 = vmatmul.mubr.msk.f32.gmra.mrb[24].mxu1 %vm329_vm0, %v12981_v60  ;;  %v13001_v60 = vld [vmem:[#allocation2 + $0x242] sm:$0xff] }
 0x437   : > { %9992 = vmatprep.mubr.msk.f32.mxu1 %vm329_vm0, %v12985_v49  ;;  %14071 = vst [vmem:[#allocation70_spill] sm:$0xff] %v13001_v60  ;;  %v13005_v49 = vld [vmem:[#allocation2 + $0x252] sm:$0xff] }
 0x438   : > { %14072 = vst [vmem:[#allocation72_spill] sm:$0xff] %v13005_v49 }
 0x43a   : > { %9993 = vmatmul.mubr.msk.f32.gmra.mrb[26].mxu1 %vm329_vm0, %v12989_v38  ;;  %v5961_v38 = vld [vmem:[#allocation8 + $0xa0] sm:$0xff] }
 0x43b   : > { %9995 = vmatprep.mubr.msk.f32.mxu1 %vm329_vm0, %v12993_v43  ;;  %v10461_v43 = vpack.c.bf16 %v5574_v31, %v5573_v4  ;;  %v6352_v4 = vld [vmem:[#allocation8 + $0xc8] sm:$0xff] }
 0x43e   : > { %9996 = vmatmul.mubr.msk.f32.gmra.mrb[28].mxu1 %vm329_vm0, %v12997_v22 }
 0x43f   : > { %9998 = vmatprep.mubr.msk.f32.mxu1 %vm329_vm0, %v13001_v60  ;;  %v10465_v60 = vpack.c.bf16 %v5962_v25, %v5961_v38  ;;  %v13042_v25 = vld [vmem:[#allocation2 + $0x120] sm:$0xff] }
 0x442   : > { %9999 = vmatmul.mubr.msk.f32.gmra.mrb[30].mxu1 %vm329_vm0, %v13005_v49 }
 0x443   : > { %10009 = vmatprep.mubr.msk.f32.mxu1 %vm329_vm0, %v12770_v44  ;;  %v13024_v44 = vld [vmem:[#allocation2 + $0x80] sm:$0xff] }
 0x446   : > { %10010 = vmatmul.mubr.msk.f32.vlgmr.msra.gmra.mrb[0].mxu1 %vm329_vm0, %v12774_v5 }
 0x447   : > { %10012 = vmatprep.mubr.msk.f32.mxu1 %vm329_vm0, %v12781_v17  ;;  %10460 = vmatpush3.bf16.msra.mxu1 %v12899_v19  ;;  %v13060_v19 = vld [vmem:[#allocation2 + $0x1c0] sm:$0xff] }
 0x448   : > { %10462 = vmatprep.subr.bf16.mxu1 %v10461_v43 }
 0x44a   : > { %10013 = vmatmul.mubr.msk.f32.gmra.mrb[2].mxu1 %vm329_vm0, %v12785_v51 }
 0x44b   : > { %10015 = vmatprep.mubr.msk.f32.mxu1 %vm329_vm0, %v12790_v32  ;;  %10464 = vmatpush3.bf16.msra.mxu1 %v10461_v43  ;;  %v6351_v43 = vld [vmem:[#allocation8 + $0xc0] sm:$0xff] }
 0x44c   : > { %10466 = vmatprep.subr.bf16.mxu1 %v10465_v60  ;;  %v10473_v38 = vpack.c.bf16 %v6352_v4, %v6351_v43  ;;  %v14091_v43 = vld [vmem:[#allocation63_spill] sm:$0xff]  ;;  %v14092_v4 = vld [vmem:[#allocation64_spill] sm:$0xff] }
 0x44e   : > { %10016 = vmatmul.mubr.msk.f32.gmra.mrb[4].mxu1 %vm329_vm0, %v12794_v47 }
 0x44f   : > { %10018 = vmatprep.mubr.msk.f32.mxu1 %vm329_vm0, %v12798_v59 }
 0x452   : > { %10019 = vmatmul.mubr.msk.f32.gmra.mrb[6].mxu1 %vm329_vm0, %v13024_v44 }
 0x453   : > { %10021 = vmatprep.mubr.msk.f32.mxu1 %vm329_vm0, %v12803_v48  ;;  %v13078_v48 = vld [vmem:[#allocation2 + $0x260] sm:$0xff] }
 0x456   : > { %10022 = vmatmul.mubr.msk.f32.gmra.mrb[8].mxu1 %vm329_vm0, %v12807_v12 }
 0x457   : > { %10024 = vmatprep.mubr.msk.f32.mxu1 %vm329_vm0, %v12811_v58 }
 0x45a   : > { %10025 = vmatmul.mubr.msk.f32.gmra.mrb[10].mxu1 %vm329_vm0, %v12815_v61 }
 0x45b   : > { %10027 = vmatprep.mubr.msk.f32.mxu1 %vm329_vm0, %v12819_v62 }
 0x45e   : > { %10028 = vmatmul.mubr.msk.f32.gmra.mrb[12].mxu1 %vm329_vm0, %v12823_v1 }
 0x45f   : > { %10030 = vmatprep.mubr.msk.f32.mxu1 %vm329_vm0, %v12827_v6 }
 0x462   : > { %10031 = vmatmul.mubr.msk.f32.gmra.mrb[14].mxu1 %vm329_vm0, %v13042_v25 }
 0x463   : > { %10033 = vmatprep.mubr.msk.f32.mxu1 %vm329_vm0, %v12832_v8  ;;  %v5963_v8 = vld [vmem:[#allocation8 + $0xb0] sm:$0xff] }
 0x466   : > { %10034 = vmatmul.mubr.msk.f32.gmra.mrb[16].mxu1 %vm329_vm0, %v12836_v13 }
 0x467   : > { %10036 = vmatprep.mubr.msk.f32.mxu1 %vm329_vm0, %v12840_v10 }
 0x46a   : > { %10037 = vmatmul.mubr.msk.f32.gmra.mrb[18].mxu1 %vm329_vm0, %v12844_v50 }
 0x46b   : > { %10039 = vmatprep.mubr.msk.f32.mxu1 %vm329_vm0, %v12848_v27 }
 0x46e   : > { %10040 = vmatmul.mubr.msk.f32.gmra.mrb[20].mxu1 %vm329_vm0, %v12852_v30 }
 0x46f   : > { %10042 = vmatprep.mubr.msk.f32.mxu1 %vm329_vm0, %v12856_v53 }
 0x472   : > { %10043 = vmatmul.mubr.msk.f32.gmra.mrb[22].mxu1 %vm329_vm0, %v13060_v19 }
 0x473   : > { %10045 = vmatprep.mubr.msk.f32.mxu1 %vm329_vm0, %v12861_v57  ;;  %v5964_v57 = vld [vmem:[#allocation8 + $0xb8] sm:$0xff] }
 0x474   : > { %v10469_v31 = vpack.c.bf16 %v5964_v57, %v5963_v8  ;;  %v14088_v8 = vld [vmem:[#allocation60_spill] sm:$0xff]  ;;  %v14089_v57 = vld [vmem:[#allocation61_spill] sm:$0xff] }
 0x476   : > { %10046 = vmatmul.mubr.msk.f32.gmra.mrb[24].mxu1 %vm329_vm0, %v12865_v2 }
 0x477   : > { %10048 = vmatprep.mubr.msk.f32.mxu1 %vm329_vm0, %v12869_v42 }
 0x47a   : > { %10049 = vmatmul.mubr.msk.f32.gmra.mrb[26].mxu1 %vm329_vm0, %v12873_v35 }
 0x47b   : > { %10051 = vmatprep.mubr.msk.f32.mxu1 %vm329_vm0, %v12877_v21 }
 0x47e   : > { %10052 = vmatmul.mubr.msk.f32.gmra.mrb[28].mxu1 %vm329_vm0, %v12881_v20 }
 0x47f   : > { %10054 = vmatprep.mubr.msk.f32.mxu1 %vm329_vm0, %v12885_v37 }
 0x482   : > { %10055 = vmatmul.mubr.msk.f32.gmra.mrb[30].mxu1 %vm329_vm0, %v13078_v48 }
 0x483   : > { %10065 = vmatprep.mubr.msk.f32.mxu1 %vm329_vm0, %v12599_v41  ;;  %v13096_v41 = vld [vmem:[#allocation2 + $0x81] sm:$0xff] }
 0x486   : > { %10066 = vmatmul.mubr.msk.f32.vlgmr.msra.gmra.mrb[0].mxu1 %vm329_vm0, %v12605_v52  ;;  %v13114_v52 = vld [vmem:[#allocation2 + $0x121] sm:$0xff] }
 0x487   : > { %10068 = vmatprep.mubr.msk.f32.mxu1 %vm329_vm0, %v12613_v7  ;;  %10468 = vmatpush3.bf16.msra.mxu1 %v10465_v60  ;;  %v13132_v7 = vld [vmem:[#allocation2 + $0x1c1] sm:$0xff] }
 0x488   : > { %10470 = vmatprep.subr.bf16.mxu1 %v10469_v31  ;;  %v13186_v60 = vld [vmem:[#allocation2 + $0x122] sm:$0xff] }
 0x48a   : > { %10069 = vmatmul.mubr.msk.f32.gmra.mrb[2].mxu1 %vm329_vm0, %v12619_v26  ;;  %v14073_v26 = vld [vmem:[#allocation41_spill] sm:$0xff] }
 0x48b   : > { %10071 = vmatprep.mubr.msk.f32.mxu1 %vm329_vm0, %v12626_v54  ;;  %10472 = vmatpush3.bf16.msra.mxu1 %v10469_v31  ;;  %v14074_v54 = vld [vmem:[#allocation42_spill] sm:$0xff] }
 0x48c   : > { %10474 = vmatprep.subr.bf16.mxu1 %v10473_v38  ;;  %v14090_v31 = vld [vmem:[#allocation62_spill] sm:$0xff] }
 0x48e   : > { %10072 = vmatmul.mubr.msk.f32.gmra.mrb[4].mxu1 %vm329_vm0, %v12632_v36  ;;  %v14075_v36 = vld [vmem:[#allocation43_spill] sm:$0xff] }
 0x48f   : > { %10074 = vmatprep.mubr.msk.f32.mxu1 %vm329_vm0, %v12638_v63  ;;  %v13150_v63 = vld [vmem:[#allocation2 + $0x261] sm:$0xff] }
 0x492   : > { %10075 = vmatmul.mubr.msk.f32.gmra.mrb[6].mxu1 %vm329_vm0, %v13096_v41 }
 0x493   : > { %10077 = vmatprep.mubr.msk.f32.mxu1 %vm329_vm0, %v12647_v9  ;;  %v6353_v9 = vld [vmem:[#allocation8 + $0xd0] sm:$0xff] }
 0x496   : > { %10078 = vmatmul.mubr.msk.f32.gmra.mrb[8].mxu1 %vm329_vm0, %v12653_v14  ;;  %v6354_v14 = vld [vmem:[#allocation8 + $0xd8] sm:$0xff] }
 0x497   : > { %10080 = vmatprep.mubr.msk.f32.mxu1 %vm329_vm0, %v12659_v39  ;;  %v10477_v39 = vpack.c.bf16 %v6354_v14, %v6353_v9  ;;  %v14096_v9 = vld [vmem:[#allocation68_spill] sm:$0xff]  ;;  %v14097_v14 = vld [vmem:[#allocation71_spill] sm:$0xff] }
 0x49a   : > { %10081 = vmatmul.mubr.msk.f32.gmra.mrb[10].mxu1 %vm329_vm0, %v12665_v56  ;;  %v6741_v56 = vld [vmem:[#allocation8 + $0xe0] sm:$0xff] }
 0x49b   : > { %10083 = vmatprep.mubr.msk.f32.mxu1 %vm329_vm0, %v12671_v45  ;;  %v6742_v45 = vld [vmem:[#allocation8 + $0xe8] sm:$0xff] }
 0x49e   : > { %10084 = vmatmul.mubr.msk.f32.gmra.mrb[12].mxu1 %vm329_vm0, %v12677_v23  ;;  %v14076_v23 = vld [vmem:[#allocation48_spill] sm:$0xff] }
 0x49f   : > { %10086 = vmatprep.mubr.msk.f32.mxu1 %vm329_vm0, %v12683_v16  ;;  %v10481_v16 = vpack.c.bf16 %v6742_v45, %v6741_v56  ;;  %v14099_v56 = vld [vmem:[#allocation70_spill] sm:$0xff] }
 0x4a0   : > { %v13222_v45 = vld [vmem:[#allocation2 + $0x262] sm:$0xff] }
 0x4a2   : > { %10087 = vmatmul.mubr.msk.f32.gmra.mrb[14].mxu1 %vm329_vm0, %v13114_v52 }
 0x4a3   : > { %10089 = vmatprep.mubr.msk.f32.mxu1 %vm329_vm0, %v12692_v0  ;;  %v14077_v0 = vld [vmem:[#allocation49_spill] sm:$0xff] }
 0x4a6   : > { %10090 = vmatmul.mubr.msk.f32.gmra.mrb[16].mxu1 %vm329_vm0, %v12698_v34  ;;  %v14078_v34 = vld [vmem:[#allocation50_spill] sm:$0xff] }
 0x4a7   : > { %10092 = vmatprep.mubr.msk.f32.mxu1 %vm329_vm0, %v12704_v33  ;;  %v14079_v33 = vld [vmem:[#allocation51_spill] sm:$0xff] }
 0x4aa   : > { %10093 = vmatmul.mubr.msk.f32.gmra.mrb[18].mxu1 %vm329_vm0, %v12710_v55  ;;  %v14080_v55 = vld [vmem:[#allocation52_spill] sm:$0xff] }
 0x4ab   : > { %10095 = vmatprep.mubr.msk.f32.mxu1 %vm329_vm0, %v12716_v18  ;;  %v13168_v18 = vld [vmem:[#allocation2 + $0x82] sm:$0xff] }
 0x4ae   : > { %10096 = vmatmul.mubr.msk.f32.gmra.mrb[20].mxu1 %vm329_vm0, %v12722_v3  ;;  %v14081_v3 = vld [vmem:[#allocation53_spill] sm:$0xff] }
 0x4af   : > { %10098 = vmatprep.mubr.msk.f32.mxu1 %vm329_vm0, %v12728_v11  ;;  %v14082_v11 = vld [vmem:[#allocation54_spill] sm:$0xff] }
 0x4b2   : > { %10099 = vmatmul.mubr.msk.f32.gmra.mrb[22].mxu1 %vm329_vm0, %v13132_v7 }
 0x4b3   : > { %10101 = vmatprep.mubr.msk.f32.mxu1 %vm329_vm0, %v12737_v40  ;;  %v14083_v40 = vld [vmem:[#allocation55_spill] sm:$0xff] }
 0x4b6   : > { %10102 = vmatmul.mubr.msk.f32.gmra.mrb[24].mxu1 %vm329_vm0, %v12743_v46  ;;  %v14084_v46 = vld [vmem:[#allocation56_spill] sm:$0xff] }
 0x4b7   : > { %10104 = vmatprep.mubr.msk.f32.mxu1 %vm329_vm0, %v12748_v24  ;;  %v14085_v24 = vld [vmem:[#allocation57_spill] sm:$0xff] }
 0x4ba   : > { %10105 = vmatmul.mubr.msk.f32.gmra.mrb[26].mxu1 %vm329_vm0, %v12753_v15  ;;  %v14086_v15 = vld [vmem:[#allocation58_spill] sm:$0xff] }
 0x4bb   : > { %10107 = vmatprep.mubr.msk.f32.mxu1 %vm329_vm0, %v14073_v26  ;;  %v14094_v26 = vld [vmem:[#allocation66_spill] sm:$0xff] }
 0x4be   : > { %10108 = vmatmul.mubr.msk.f32.gmra.mrb[28].mxu1 %vm329_vm0, %v14074_v54  ;;  %v13204_v54 = vld [vmem:[#allocation2 + $0x1c2] sm:$0xff] }
 0x4bf   : > { %10110 = vmatprep.mubr.msk.f32.mxu1 %vm329_vm0, %v14075_v36  ;;  %v14095_v36 = vld [vmem:[#allocation67_spill] sm:$0xff] }
 0x4c2   : > { %10111 = vmatmul.mubr.msk.f32.gmra.mrb[30].mxu1 %vm329_vm0, %v13150_v63 }
 0x4c3   : > { %10121 = vmatprep.mubr.msk.f32.mxu1 %vm329_vm0, %v12890_v29  ;;  %v14087_v29 = vld [vmem:[#allocation59_spill] sm:$0xff] }
 0x4c6   : > { %10122 = vmatmul.mubr.msk.f32.vlgmr.msra.gmra.mrb[0].mxu1 %vm329_vm0, %v12894_v28 }
 0x4c7   : > { %10124 = vmatprep.mubr.msk.f32.mxu1 %vm329_vm0, %v14076_v23  ;;  %10476 = vmatpush3.bf16.msra.mxu1 %v10473_v38  ;;  %v14093_v38 = vld [vmem:[#allocation65_spill] sm:$0xff] }
 0x4c8   : > { %10478 = vmatprep.subr.bf16.mxu1 %v10477_v39 }
 0x4ca   : > { %10125 = vmatmul.mubr.msk.f32.gmra.mrb[2].mxu1 %vm329_vm0, %v14077_v0 }
 0x4cb   : > { %10127 = vmatprep.mubr.msk.f32.mxu1 %vm329_vm0, %v14078_v34  ;;  %10480 = vmatpush3.bf16.msra.mxu1 %v10477_v39  ;;  %v14098_v39 = vld [vmem:[#allocation69_spill] sm:$0xff] }
 0x4cc   : > { %10482 = vmatprep.subr.bf16.mxu1 %v10481_v16 }
 0x4ce   : > { %10128 = vmatmul.mubr.msk.f32.gmra.mrb[4].mxu1 %vm329_vm0, %v14079_v33 }
 0x4cf   : > { %10130 = vmatprep.mubr.msk.f32.mxu1 %vm329_vm0, %v14080_v55 }
 0x4d2   : > { %10131 = vmatmul.mubr.msk.f32.gmra.mrb[6].mxu1 %vm329_vm0, %v13168_v18 }
 0x4d3   : > { %10133 = vmatprep.mubr.msk.f32.mxu1 %vm329_vm0, %v14081_v3  ;;  %v6743_v3 = vld [vmem:[#allocation8 + $0xf0] sm:$0xff] }
 0x4d6   : > { %10134 = vmatmul.mubr.msk.f32.gmra.mrb[8].mxu1 %vm329_vm0, %v14082_v11 }
 0x4d7   : > { %10136 = vmatprep.mubr.msk.f32.mxu1 %vm329_vm0, %v14083_v40 }
 0x4da   : > { %10137 = vmatmul.mubr.msk.f32.gmra.mrb[10].mxu1 %vm329_vm0, %v14084_v46 }
 0x4db   : > { %10139 = vmatprep.mubr.msk.f32.mxu1 %vm329_vm0, %v14085_v24 }
 0x4de   : > { %10140 = vmatmul.mubr.msk.f32.gmra.mrb[12].mxu1 %vm329_vm0, %v14086_v15 }
 0x4df   : > { %10142 = vmatprep.mubr.msk.f32.mxu1 %vm329_vm0, %v14087_v29 }
 0x4e2   : > { %10143 = vmatmul.mubr.msk.f32.gmra.mrb[14].mxu1 %vm329_vm0, %v13186_v60 }
 0x4e3   : > { %10145 = vmatprep.mubr.msk.f32.mxu1 %vm329_vm0, %v14088_v8  ;;  %v6744_v8 = vld [vmem:[#allocation8 + $0xf8] sm:$0xff] }
 0x4e6   : > { %10146 = vmatmul.mubr.msk.f32.gmra.mrb[16].mxu1 %vm329_vm0, %v14089_v57 }
 0x4e7   : > { %10148 = vmatprep.mubr.msk.f32.mxu1 %vm329_vm0, %v14090_v31 }
 0x4ea   : > { %10149 = vmatmul.mubr.msk.f32.gmra.mrb[18].mxu1 %vm329_vm0, %v14091_v43 }
 0x4eb   : > { %10151 = vmatprep.mubr.msk.f32.mxu1 %vm329_vm0, %v14092_v4 }
 0x4ee   : > { %10152 = vmatmul.mubr.msk.f32.gmra.mrb[20].mxu1 %vm329_vm0, %v14093_v38 }
 0x4ef   : > { %10154 = vmatprep.mubr.msk.f32.mxu1 %vm329_vm0, %v14094_v26 }
 0x4f2   : > { %10155 = vmatmul.mubr.msk.f32.gmra.mrb[22].mxu1 %vm329_vm0, %v13204_v54 }
 0x4f3   : > { %10157 = vmatprep.mubr.msk.f32.mxu1 %vm329_vm0, %v14095_v36  ;;  %v10485_v36 = vpack.c.bf16 %v6744_v8, %v6743_v3  ;;  %v6737_v3 = vld [vmem:[#allocation2 + $0x251] sm:$0xff] }
 0x4f6   : > { %10158 = vmatmul.mubr.msk.f32.gmra.mrb[24].mxu1 %vm329_vm0, %v14096_v9 }
 0x4f7   : > { %10160 = vmatprep.mubr.msk.f32.mxu1 %vm329_vm0, %v14097_v14  ;;  %v7132_v14 = vld [vmem:[#allocation8 + $0x108] sm:$0xff] }
 0x4fa   : > { %10161 = vmatmul.mubr.msk.f32.gmra.mrb[26].mxu1 %vm329_vm0, %v14098_v39  ;;  %v7131_v39 = vld [vmem:[#allocation8 + $0x100] sm:$0xff] }
 0x4fb   : > { %10163 = vmatprep.mubr.msk.f32.mxu1 %vm329_vm0, %v12997_v22 }
 0x4fe   : > { %10164 = vmatmul.mubr.msk.f32.gmra.mrb[28].mxu1 %vm329_vm0, %v14099_v56 }
 0x4ff   : > { %10166 = vmatprep.mubr.msk.f32.mxu1 %vm329_vm0, %v13005_v49  ;;  %v10489_v49 = vpack.c.bf16 %v7132_v14, %v7131_v39  ;;  %v6735_v14 = vld [vmem:[#allocation2 + $0x231] sm:$0xff]  ;;  %v6736_v39 = vld [vmem:[#allocation2 + $0x241] sm:$0xff] }
 0x502   : > { %10167 = vmatmul.mubr.msk.f32.gmra.mrb[30].mxu1 %vm329_vm0, %v13222_v45 }
 0x503   : > { %10177 = vmatprep.mubr.msk.f32.mxu1 %vm329_vm0, %v12774_v5  ;;  %v6325_v5 = vld [vmem:[#allocation2 + $0x90] sm:$0xff] }
 0x506   : > { %10178 = vmatmul.mubr.msk.f32.vlgmr.msra.gmra.mrb[0].mxu1 %vm329_vm0, %v12781_v17  ;;  %v6333_v17 = vld [vmem:[#allocation2 + $0x130] sm:$0xff] }
 0x507   : > { %10180 = vmatprep.mubr.msk.f32.mxu1 %vm329_vm0, %v12785_v51  ;;  %10484 = vmatpush3.bf16.msra.mxu1 %v10481_v16  ;;  %v6341_v51 = vld [vmem:[#allocation2 + $0x1d0] sm:$0xff]  ;;  %v6734_v16 = vld [vmem:[#allocation2 + $0x221] sm:$0xff] }
 0x508   : > { %10486 = vmatprep.subr.bf16.mxu1 %v10485_v36 }
 0x50a   : > { %10181 = vmatmul.mubr.msk.f32.gmra.mrb[2].mxu1 %vm329_vm0, %v12790_v32  ;;  %v6349_v32 = vld [vmem:[#allocation2 + $0x270] sm:$0xff] }
 0x50b   : > { %10183 = vmatprep.mubr.msk.f32.mxu1 %vm329_vm0, %v12794_v47  ;;  %10488 = vmatpush3.bf16.msra.mxu1 %v10485_v36  ;;  %v7133_v47 = vld [vmem:[#allocation8 + $0x110] sm:$0xff] }
 0x50c   : > { %10490 = vmatprep.subr.bf16.mxu1 %v10489_v49 }
 0x50e   : > { %10184 = vmatmul.mubr.msk.f32.gmra.mrb[4].mxu1 %vm329_vm0, %v12798_v59  ;;  %v7134_v59 = vld [vmem:[#allocation8 + $0x118] sm:$0xff] }
 0x50f   : > { %10186 = vmatprep.mubr.msk.f32.mxu1 %vm329_vm0, %v13024_v44  ;;  %v6727_v44 = vld [vmem:[#allocation2 + $0x191] sm:$0xff] }
 0x512   : > { %10187 = vmatmul.mubr.msk.f32.gmra.mrb[6].mxu1 %vm329_vm0, %v6325_v5 }
 0x513   : > { %10189 = vmatprep.mubr.msk.f32.mxu1 %vm329_vm0, %v12807_v12  ;;  %v6708_v12 = vld [vmem:[#allocation2 + $0x21] sm:$0xff] }
 0x516   : > { %10190 = vmatmul.mubr.msk.f32.gmra.mrb[8].mxu1 %vm329_vm0, %v12811_v58  ;;  %v10493_v58 = vpack.c.bf16 %v7134_v59, %v7133_v47 }
 0x517   : > { %10192 = vmatprep.mubr.msk.f32.mxu1 %vm329_vm0, %v12815_v61  ;;  %v6709_v61 = vld [vmem:[#allocation2 + $0x31] sm:$0xff] }
 0x51a   : > { %10193 = vmatmul.mubr.msk.f32.gmra.mrb[10].mxu1 %vm329_vm0, %v12819_v62  ;;  %v6710_v62 = vld [vmem:[#allocation2 + $0x41] sm:$0xff] }
 0x51b   : > { %10195 = vmatprep.mubr.msk.f32.mxu1 %vm329_vm0, %v12823_v1  ;;  %v6711_v1 = vld [vmem:[#allocation2 + $0x51] sm:$0xff] }
 0x51e   : > { %10196 = vmatmul.mubr.msk.f32.gmra.mrb[12].mxu1 %vm329_vm0, %v12827_v6  ;;  %v6712_v6 = vld [vmem:[#allocation2 + $0x61] sm:$0xff] }
 0x51f   : > { %10198 = vmatprep.mubr.msk.f32.mxu1 %vm329_vm0, %v13042_v25  ;;  %v6728_v25 = vld [vmem:[#allocation2 + $0x1a1] sm:$0xff] }
 0x522   : > { %10199 = vmatmul.mubr.msk.f32.gmra.mrb[14].mxu1 %vm329_vm0, %v6333_v17 }
 0x523   : > { %10201 = vmatprep.mubr.msk.f32.mxu1 %vm329_vm0, %v12836_v13  ;;  %v14100_v13 = vmov 0.0  }
 0x524   : > { %10345 = vmatprep.mubr.msk.f32.mxu0 %vm11259_vm3, %v14100_v13 }
 0x526   : > { %10202 = vmatmul.mubr.msk.f32.gmra.mrb[16].mxu1 %vm329_vm0, %v12840_v10  ;;  %v6713_v10 = vld [vmem:[#allocation2 + $0x71] sm:$0xff] }
 0x527   : > { %10204 = vmatprep.mubr.msk.f32.mxu1 %vm329_vm0, %v12844_v50  ;;  %v6715_v50 = vld [vmem:[#allocation2 + $0x91] sm:$0xff] }
 0x52a   : > { %10205 = vmatmul.mubr.msk.f32.gmra.mrb[18].mxu1 %vm329_vm0, %v12848_v27  ;;  %v6716_v27 = vld [vmem:[#allocation2 + $0xc1] sm:$0xff] }
 0x52b   : > { %10207 = vmatprep.mubr.msk.f32.mxu1 %vm329_vm0, %v12852_v30  ;;  %v6717_v30 = vld [vmem:[#allocation2 + $0xd1] sm:$0xff] }
 0x52e   : > { %10208 = vmatmul.mubr.msk.f32.gmra.mrb[20].mxu1 %vm329_vm0, %v12856_v53  ;;  %v6718_v53 = vld [vmem:[#allocation2 + $0xe1] sm:$0xff] }
 0x52f   : > { %10210 = vmatprep.mubr.msk.f32.mxu1 %vm329_vm0, %v13060_v19  ;;  %v6729_v19 = vld [vmem:[#allocation2 + $0x1b1] sm:$0xff] }
 0x532   : > { %10211 = vmatmul.mubr.msk.f32.gmra.mrb[22].mxu1 %vm329_vm0, %v6341_v51 }
 0x533   : > { %10213 = vmatprep.mubr.msk.f32.mxu1 %vm329_vm0, %v12865_v2  ;;  %v6719_v2 = vld [vmem:[#allocation2 + $0xf1] sm:$0xff] }
 0x536   : > { %10214 = vmatmul.mubr.msk.f32.gmra.mrb[24].mxu1 %vm329_vm0, %v12869_v42  ;;  %v6720_v42 = vld [vmem:[#allocation2 + $0x101] sm:$0xff] }
 0x537   : > { %10216 = vmatprep.mubr.msk.f32.mxu1 %vm329_vm0, %v12873_v35  ;;  %v6721_v35 = vld [vmem:[#allocation2 + $0x111] sm:$0xff] }
 0x53a   : > { %10217 = vmatmul.mubr.msk.f32.gmra.mrb[26].mxu1 %vm329_vm0, %v12877_v21  ;;  %v6723_v21 = vld [vmem:[#allocation2 + $0x131] sm:$0xff] }
 0x53b   : > { %10219 = vmatprep.mubr.msk.f32.mxu1 %vm329_vm0, %v12881_v20  ;;  %v6724_v20 = vld [vmem:[#allocation2 + $0x161] sm:$0xff] }
 0x53e   : > { %10220 = vmatmul.mubr.msk.f32.gmra.mrb[28].mxu1 %vm329_vm0, %v12885_v37  ;;  %v6725_v37 = vld [vmem:[#allocation2 + $0x171] sm:$0xff] }
 0x53f   : > { %10222 = vmatprep.mubr.msk.f32.mxu1 %vm329_vm0, %v13078_v48  ;;  %v6731_v48 = vld [vmem:[#allocation2 + $0x1d1] sm:$0xff] }
 0x542   : > { %10223 = vmatmul.mubr.msk.f32.gmra.mrb[30].mxu1 %vm329_vm0, %v6349_v32 }
 0x543   : > { %10233 = vmatprep.mubr.msk.f32.mxu1 %vm329_vm0, %v6708_v12 }
 0x546   : > { %10234 = vmatmul.mubr.msk.f32.vlgmr.msra.gmra.mrb[0].mxu1 %vm329_vm0, %v6709_v61 }
 0x547   : > { %10236 = vmatprep.mubr.msk.f32.mxu1 %vm329_vm0, %v6710_v62  ;;  %10492 = vmatpush3.bf16.msra.mxu1 %v10489_v49  ;;  %v6726_v49 = vld [vmem:[#allocation2 + $0x181] sm:$0xff] }
 0x548   : > { %10494 = vmatprep.subr.bf16.mxu1 %v10493_v58 }
 0x54a   : > { %10237 = vmatmul.mubr.msk.f32.gmra.mrb[2].mxu1 %vm329_vm0, %v6711_v1 }
 0x54b   : > { %10239 = vmatprep.mubr.msk.f32.mxu1 %vm329_vm0, %v6712_v6  ;;  %10496 = vmatpush3.bf16.msra.mxu1 %v10493_v58 }
 0x54c   : > { %10348 = vmatprep.subr.mxu1 %v14100_v13 }
 0x54e   : > { %10240 = vmatmul.mubr.msk.f32.gmra.mrb[4].mxu1 %vm329_vm0, %v6713_v10 }
 0x54f   : > { %10242 = vmatprep.mubr.msk.f32.mxu1 %vm329_vm0, %v13096_v41  ;;  %v6732_v41 = vld [vmem:[#allocation2 + $0x201] sm:$0xff] }
 0x552   : > { %10243 = vmatmul.mubr.msk.f32.gmra.mrb[6].mxu1 %vm329_vm0, %v6715_v50 }
 0x553   : > { %10245 = vmatprep.mubr.msk.f32.mxu1 %vm329_vm0, %v6716_v27 }
 0x556   : > { %10246 = vmatmul.mubr.msk.f32.gmra.mrb[8].mxu1 %vm329_vm0, %v6717_v30 }
 0x557   : > { %10248 = vmatprep.mubr.msk.f32.mxu1 %vm329_vm0, %v6718_v53 }
 0x55a   : > { %10249 = vmatmul.mubr.msk.f32.gmra.mrb[10].mxu1 %vm329_vm0, %v6719_v2 }
 0x55b   : > { %10251 = vmatprep.mubr.msk.f32.mxu1 %vm329_vm0, %v6720_v42 }
 0x55e   : > { %10252 = vmatmul.mubr.msk.f32.gmra.mrb[12].mxu1 %vm329_vm0, %v6721_v35 }
 0x55f   : > { %10254 = vmatprep.mubr.msk.f32.mxu1 %vm329_vm0, %v13114_v52  ;;  %v6733_v52 = vld [vmem:[#allocation2 + $0x211] sm:$0xff] }
 0x562   : > { %10255 = vmatmul.mubr.msk.f32.gmra.mrb[14].mxu1 %vm329_vm0, %v6723_v21 }
 0x563   : > { %10257 = vmatprep.mubr.msk.f32.mxu1 %vm329_vm0, %v6724_v20 }
 0x566   : > { %10258 = vmatmul.mubr.msk.f32.gmra.mrb[16].mxu1 %vm329_vm0, %v6725_v37 }
 0x567   : > { %10260 = vmatprep.mubr.msk.f32.mxu1 %vm329_vm0, %v6726_v49 }
 0x56a   : > { %10261 = vmatmul.mubr.msk.f32.gmra.mrb[18].mxu1 %vm329_vm0, %v6727_v44 }
 0x56b   : > { %10263 = vmatprep.mubr.msk.f32.mxu1 %vm329_vm0, %v6728_v25 }
 0x56e   : > { %10264 = vmatmul.mubr.msk.f32.gmra.mrb[20].mxu1 %vm329_vm0, %v6729_v19 }
 0x56f   : > { %10266 = vmatprep.mubr.msk.f32.mxu1 %vm329_vm0, %v13132_v7  ;;  %v6739_v7 = vld [vmem:[#allocation2 + $0x271] sm:$0xff] }
 0x572   : > { %10267 = vmatmul.mubr.msk.f32.gmra.mrb[22].mxu1 %vm329_vm0, %v6731_v48 }
 0x573   : > { %10269 = vmatprep.mubr.msk.f32.mxu1 %vm329_vm0, %v6732_v41 }
 0x576   : > { %10270 = vmatmul.mubr.msk.f32.gmra.mrb[24].mxu1 %vm329_vm0, %v6733_v52 }
 0x577   : > { %10272 = vmatprep.mubr.msk.f32.mxu1 %vm329_vm0, %v6734_v16 }
 0x57a   : > { %10273 = vmatmul.mubr.msk.f32.gmra.mrb[26].mxu1 %vm329_vm0, %v6735_v14 }
 0x57b   : > { %10275 = vmatprep.mubr.msk.f32.mxu1 %vm329_vm0, %v6736_v39 }
 0x57e   : > { %10276 = vmatmul.mubr.msk.f32.gmra.mrb[28].mxu1 %vm329_vm0, %v6737_v3 }
 0x57f   : > { %10278 = vmatprep.mubr.msk.f32.mxu1 %vm329_vm0, %v13150_v63  ;;  %v7105_v63 = vld [vmem:[#allocation2 + $0x92] sm:$0xff] }
 0x582   : > { %10279 = vmatmul.mubr.msk.f32.gmra.mrb[30].mxu1 %vm329_vm0, %v6739_v7 }
 0x583   : > { %10289 = vmatprep.mubr.msk.f32.mxu1 %vm329_vm0, %v12894_v28  ;;  %v7113_v28 = vld [vmem:[#allocation2 + $0x132] sm:$0xff] }
 0x586   : > { %10290 = vmatmul.mubr.msk.f32.vlgmr.msra.gmra.mrb[0].mxu1 %vm329_vm0, %v14076_v23  ;;  %v7121_v23 = vld [vmem:[#allocation2 + $0x1d2] sm:$0xff] }
 0x587   : > { %10292 = vmatprep.mubr.msk.f32.mxu1 %vm329_vm0, %v14077_v0  ;;  %v14101_v0 = vld [vmem:[#allocation71_spill] sm:$0xff] }
 0x58a   : > { %10293 = vmatmul.mubr.msk.f32.gmra.mrb[2].mxu1 %vm329_vm0, %v14078_v34  ;;  %v14102_v34 = vld [vmem:[#allocation69_spill] sm:$0xff] }
 0x58b   : > { %10295 = vmatprep.mubr.msk.f32.mxu1 %vm329_vm0, %v14079_v33  ;;  %v14103_v33 = vld [vmem:[#allocation72_spill] sm:$0xff] }
 0x58e   : > { %10296 = vmatmul.mubr.msk.f32.gmra.mrb[4].mxu1 %vm329_vm0, %v14080_v55  ;;  %v7129_v55 = vld [vmem:[#allocation2 + $0x272] sm:$0xff] }
 0x58f   : > { %10298 = vmatprep.mubr.msk.f32.mxu1 %vm329_vm0, %v13168_v18  ;;  %v7616_v18 = vld [vmem:[%s13805_s5] sm:$0xff] }
 0x592   : > { %10299 = vmatmul.mubr.msk.f32.gmra.mrb[6].mxu1 %vm329_vm0, %v7105_v63 }
 0x593   : > { %10301 = vmatprep.mubr.msk.f32.mxu1 %vm329_vm0, %v14082_v11  ;;  %v11258_v11 = vmov 0.0|0.0  }
 0x594   : > { %10497 = vmatprep.subr.bf16.mxu0 %v11258_v11 }
 0x596   : > { %10302 = vmatmul.mubr.msk.f32.gmra.mrb[8].mxu1 %vm329_vm0, %v14083_v40 }
 0x597   : > { %10304 = vmatprep.mubr.msk.f32.mxu1 %vm329_vm0, %v14084_v46  ;;  %v7618_v46 = vld [vmem:[%s13805_s5 + $0x10] sm:$0xff] }
 0x59a   : > { %10305 = vmatmul.mubr.msk.f32.gmra.mrb[10].mxu1 %vm329_vm0, %v14085_v24  ;;  %v7619_v24 = vld [vmem:[%s13805_s5 + $0x18] sm:$0xff] }
 0x59b   : > { %10307 = vmatprep.mubr.msk.f32.mxu1 %vm329_vm0, %v14086_v15  ;;  %v10501_v15 = vpack.c.bf16 %v7619_v24, %v7618_v46 }
 0x59e   : > { %10308 = vmatmul.mubr.msk.f32.gmra.mrb[12].mxu1 %vm329_vm0, %v14087_v29  ;;  %v7703_v29 = vld [vmem:[%s13806_s6] sm:$0x3] }
 0x59f   : > { %10310 = vmatprep.mubr.msk.f32.mxu1 %vm329_vm0, %v13186_v60  ;;  %10349 = vmatpush3.msk.msra.mxu1 %vm7708_vm4, %v7703_v29 }
 0x5a2   : > { %10311 = vmatmul.mubr.msk.f32.gmra.mrb[14].mxu1 %vm329_vm0, %v7113_v28 }
 0x5a3   : > { %10313 = vmatprep.mubr.msk.f32.mxu1 %vm329_vm0, %v14089_v57 }
 0x5a6   : > { %10314 = vmatmul.mubr.msk.f32.gmra.mrb[16].mxu1 %vm329_vm0, %v14090_v31 }
 0x5a7   : > { %10316 = vmatprep.mubr.msk.f32.mxu1 %vm329_vm0, %v14091_v43 }
 0x5aa   : > { %10317 = vmatmul.mubr.msk.f32.gmra.mrb[18].mxu1 %vm329_vm0, %v14092_v4 }
 0x5ab   : > { %10319 = vmatprep.mubr.msk.f32.mxu1 %vm329_vm0, %v14093_v38 }
 0x5ae   : > { %10320 = vmatmul.mubr.msk.f32.gmra.mrb[20].mxu1 %vm329_vm0, %v14094_v26 }
 0x5af   : > { %10322 = vmatprep.mubr.msk.f32.mxu1 %vm329_vm0, %v13204_v54 }
 0x5b2   : > { %10323 = vmatmul.mubr.msk.f32.gmra.mrb[22].mxu1 %vm329_vm0, %v7121_v23 }
 0x5b3   : > { %10325 = vmatprep.mubr.msk.f32.mxu1 %vm329_vm0, %v14096_v9 }
 0x5b6   : > { %10326 = vmatmul.mubr.msk.f32.gmra.mrb[24].mxu1 %vm329_vm0, %v14101_v0 }
 0x5b7   : > { %10328 = vmatprep.mubr.msk.f32.mxu1 %vm329_vm0, %v14102_v34 }
 0x5ba   : > { %10329 = vmatmul.mubr.msk.f32.gmra.mrb[26].mxu1 %vm329_vm0, %v12997_v22  ;;  %v7617_v22 = vld [vmem:[%s13805_s5 + $0x8] sm:$0xff] }
 0x5bb   : > { %10331 = vmatprep.mubr.msk.f32.mxu1 %vm329_vm0, %v14099_v56  ;;  %v10498_v40 = vpack.c.bf16 %v7617_v22, %v7616_v18 }
 0x5bd   : > { %10499 = vmatpush3.bf16.msra.mxu0 %v10498_v40 }
 0x5be   : > { %10332 = vmatmul.mubr.msk.f32.gmra.mrb[28].mxu1 %vm329_vm0, %v14103_v33  ;;  %10500 = vmatprep.subr.bf16.mxu0 %v11258_v11 }
 0x5bf   : > { %10334 = vmatprep.mubr.msk.f32.mxu1 %vm329_vm0, %v13222_v45  ;;  %v13405_v45 = vld [vmem:[%s13804_s4] ss:$0 sm:$0xff] }
 0x5c1   : > { %10502 = vmatpush3.bf16.msra.mxu0 %v10501_v15 }
 0x5c2   : > { %10335 = vmatmul.mubr.msk.f32.gmra.mrb[30].mxu1 %vm329_vm0, %v7129_v55 }
 0x5c3   : > { %10350 = vmatprep.mubr.msk.f32.mxu1 %vm11259_vm3, %v14100_v13 }
 0x659   : > { %v10291_v60 = vpop.f32.mrb[0].mxu1 }
 0x65a   : > { %v7297_v57 = vpop.f32.mrb[1].mxu1  ;;  %v13414_v51 = vadd.f32 %v10291_v60, %v13405_v45 }
 0x65b   : > { %v13417_v32 = vadd.f32 %v13405_v45, %v7297_v57 }
 0x65c   : > { %v7528_v1 = vsel %vm329_vm0, %v13414_v51, 0.0 }
 0x65d   : > { %v10294_v31 = vpop.f32.mrb[2].mxu1  ;;  %v7527_v6 = vsel %vm329_vm0, %v13417_v32, 0.0 }
 0x65e   : > { %v7307_v43 = vpop.f32.mrb[3].mxu1  ;;  %v7529_v53 = vadd.f32 %v7528_v1, %v7527_v6  ;;  %v13441_v35 = vadd.f32 %v10294_v31, %v13405_v45 }
 0x65f   : > { %v13423_v59 = vadd.f32 %v13405_v45, %v7307_v43 }
 0x660   : > { %v7532_v41 = vsel %vm329_vm0, %v13441_v35, 0.0 }
 0x661   : > { %v10297_v4 = vpop.f32.mrb[4].mxu1  ;;  %v7530_v50 = vsel %vm329_vm0, %v13423_v59, 0.0 }
 0x662   : > { %v7317_v38 = vpop.f32.mrb[5].mxu1  ;;  %v7531_v20 = vadd.f32 %v7530_v50, %v7529_v53  ;;  %v13471_v23 = vadd.f32 %v10297_v4, %v13405_v45 }
 0x663   : > { %v13447_v37 = vadd.f32 %v13405_v45, %v7317_v38 }
 0x664   : > { %v7533_v14 = vadd.f32 %v7532_v41, %v7531_v20  ;;  %v7536_v29 = vsel %vm329_vm0, %v13471_v23, 0.0 }
 0x665   : > { %v13400_v26 = vpop.f32.mrb[6].mxu1  ;;  %v7534_v39 = vsel %vm329_vm0, %v13447_v37, 0.0 }
 0x666   : > { %v7327_v54 = vpop.f32.mrb[7].mxu1  ;;  %v7535_v22 = vadd.f32 %v7534_v39, %v7533_v14  ;;  %v13510_v6 = vadd.f32 %v13400_v26, %v13405_v45 }
 0x667   : > { %v13483_v40 = vadd.f32 %v13405_v45, %v7327_v54 }
 0x669   : > { %v10303_v9 = vpop.f32.mrb[8].mxu1 }
 0x66a   : > { %v7337_v56 = vpop.f32.mrb[9].mxu1  ;;  %v13408_v8 = vadd.f32 %v10303_v9, %v13405_v45  ;;  %v7537_v9 = vadd.f32 %v7536_v29, %v7535_v22 }
 0x66b   : > { %v13411_v36 = vadd.f32 %v13405_v45, %v7337_v56 }
 0x66c   : > { %v7549_v12 = vsel %vm329_vm0, %v13408_v8, 0.0 }
 0x66d   : > { %v10306_v5 = vpop.f32.mrb[10].mxu1  ;;  %v7548_v58 = vsel %vm329_vm0, %v13411_v36, 0.0 }
 0x66e   : > { %v7347_v17 = vpop.f32.mrb[11].mxu1  ;;  %v7550_v10 = vadd.f32 %v7549_v12, %v7548_v58  ;;  %v13438_v27 = vadd.f32 %v10306_v5, %v13405_v45  ;;  %v7538_v5 = vsel %vm329_vm0, %v13483_v40, 0.0 }
 0x66f   : > { %v13420_v47 = vadd.f32 %v13405_v45, %v7347_v17 }
 0x670   : > { %v7553_v49 = vsel %vm329_vm0, %v13438_v27, 0.0 }
 0x671   : > { %v10309_v61 = vpop.f32.mrb[12].mxu1  ;;  %v7551_v13 = vsel %vm329_vm0, %v13420_v47, 0.0 }
 0x672   : > { %v7357_v62 = vpop.f32.mrb[13].mxu1  ;;  %v7552_v2 = vadd.f32 %v7551_v13, %v7550_v10  ;;  %v13464_v3 = vadd.f32 %v10309_v61, %v13405_v45 }
 0x673   : > { %v13444_v21 = vadd.f32 %v13405_v45, %v7357_v62 }
 0x674   : > { %v7554_v25 = vadd.f32 %v7553_v49, %v7552_v2  ;;  %v7557_v46 = vsel %vm329_vm0, %v13464_v3, 0.0 }
 0x675   : > { %v10312_v30 = vpop.f32.mrb[14].mxu1  ;;  %v7555_v52 = vsel %vm329_vm0, %v13444_v21, 0.0 }
 0x676   : > { %v7367_v42 = vpop.f32.mrb[15].mxu1  ;;  %v7556_v0 = vadd.f32 %v7555_v52, %v7554_v25  ;;  %v13504_v17 = vadd.f32 %v10312_v30, %v13405_v45  ;;  %v7539_v30 = vadd.f32 %v7538_v5, %v7537_v9 }
 0x677   : > { %v13474_v33 = vadd.f32 %v13405_v45, %v7367_v42 }
 0x678   : > { %v7558_v60 = vadd.f32 %v7557_v46, %v7556_v0  ;;  %v7561_v2 = vsel %vm329_vm0, %v13504_v17, 0.0 }
 0x679   : > { %v10315_v44 = vpop.f32.mrb[16].mxu1  ;;  %v7559_v43 = vsel %vm329_vm0, %v13474_v33, 0.0 }
 0x67a   : > { %v13452_v19 = vadd.f32 %v10315_v44, %v13405_v45  ;;  %v7377_v48 = vpop.f32.mrb[17].mxu1  ;;  %v7560_v61 = vadd.f32 %v7559_v43, %v7558_v60 }
 0x67b   : > { %v13459_v16 = vadd.f32 %v13405_v45, %v7377_v48  ;;  %v7540_v48 = vsel %vm329_vm0, %v13510_v6, 0.0 }
 0x67c   : > { %v7570_v7 = vsel %vm329_vm0, %v13452_v19, 0.0  ;;  %v7562_v26 = vadd.f32 %v7561_v2, %v7560_v61  ;;  %v7541_v14 = vadd.f32 %v7540_v48, %v7539_v30 }
 0x67d   : > { %v7569_v63 = vsel %vm329_vm0, %v13459_v16, 0.0  ;;  %v10318_v28 = vpop.f32.mrb[18].mxu1 }
 0x67e   : > { %v7387_v34 = vpop.f32.mrb[19].mxu1  ;;  %v13477_v55 = vadd.f32 %v10318_v28, %v13405_v45  ;;  %v7571_v11 = vadd.f32 %v7570_v7, %v7569_v63  ;;  %v7563_v0 = vrot.slane %v7562_v26, 4 }
 0x67f   : > { %v13480_v18 = vadd.f32 %v13405_v45, %v7387_v34 }
 0x680   : > { %v7574_v4 = vsel %vm329_vm0, %v13477_v55, 0.0 }
 0x681   : > { %v7572_v24 = vsel %vm329_vm0, %v13480_v18, 0.0  ;;  %v10321_v15 = vpop.f32.mrb[20].mxu1 }
 0x682   : > { %v7573_v57 = vadd.f32 %v7572_v24, %v7571_v11  ;;  %v7397_v31 = vpop.f32.mrb[21].mxu1  ;;  %v13496_v38 = vadd.f32 %v10321_v15, %v13405_v45  ;;  %v7542_v24 = vrot.slane %v7541_v14, 4 }
 0x683   : > { %v13499_v54 = vadd.f32 %v13405_v45, %v7397_v31 }
 0x684   : > { %v7575_v56 = vadd.f32 %v7574_v4, %v7573_v57  ;;  %v7578_v13 = vsel %vm329_vm0, %v13496_v38, 0.0  ;;  %v7564_v57 = vadd.f32 %v7563_v0, %v7562_v26 }
 0x685   : > { %v7576_v12 = vsel %vm329_vm0, %v13499_v54, 0.0  ;;  %v10324_v58 = vpop.f32.mrb[22].mxu1 }
 0x686   : > { %v7577_v62 = vadd.f32 %v7576_v12, %v7575_v56  ;;  %v7407_v1 = vpop.f32.mrb[23].mxu1  ;;  %v13515_v10 = vadd.f32 %v10324_v58, %v13405_v45  ;;  %v7543_v12 = vadd.f32 %v7542_v24, %v7541_v14 }
 0x687   : > { %v13518_v50 = vadd.f32 %v13405_v45, %v7407_v1  ;;  %v7565_v1 = vrot.slane %v7564_v57, 2 }
 0x688   : > { %v7579_v53 = vadd.f32 %v7578_v13, %v7577_v62  ;;  %v7582_v41 = vsel %vm329_vm0, %v13515_v10, 0.0  ;;  %v7544_v26 = vrot.slane %v7543_v12, 2 }
 0x689   : > { %v7580_v42 = vsel %vm329_vm0, %v13518_v50, 0.0  ;;  %v10327_v20 = vpop.f32.mrb[24].mxu1  ;;  %v7566_v48 = vadd.f32 %v7565_v1, %v7564_v57 }
 0x68a   : > { %v7581_v49 = vadd.f32 %v7580_v42, %v7579_v53  ;;  %v13525_v44 = vadd.f32 %v10327_v20, %v13405_v45  ;;  %v7417_v25 = vpop.f32.mrb[25].mxu1 }
 0x68b   : > { %v13532_v52 = vadd.f32 %v13405_v45, %v7417_v25 }
 0x68c   : > { %v7583_v39 = vadd.f32 %v7582_v41, %v7581_v49  ;;  %v7591_v7 = vsel %vm329_vm0, %v13525_v44, 0.0 }
 0x68d   : > { %v7590_v63 = vsel %vm329_vm0, %v13532_v52, 0.0  ;;  %v10330_v28 = vpop.f32.mrb[26].mxu1 }
 0x68e   : > { %v7427_v34 = vpop.f32.mrb[27].mxu1  ;;  %v7584_v22 = vrot.slane %v7583_v39, 4  ;;  %v13539_v11 = vadd.f32 %v10330_v28, %v13405_v45  ;;  %v7592_v15 = vadd.f32 %v7591_v7, %v7590_v63  ;;  %v7545_v7 = vadd.f32 %v7544_v26, %v7543_v12 }
 0x68f   : > { %v13542_v46 = vadd.f32 %v13405_v45, %v7427_v34  ;;  %v7567_v28 = vrot.slane %v7566_v48, 1 }
 0x690   : > { %v7585_v4 = vadd.f32 %v7584_v22, %v7583_v39  ;;  %v7595_v9 = vsel %vm329_vm0, %v13539_v11, 0.0  ;;  %v7546_v22 = vrot.slane %v7545_v7, 1 }
 0x691   : > { %v7593_v29 = vsel %vm329_vm0, %v13542_v46, 0.0  ;;  %v10333_v60 = vpop.f32.mrb[28].mxu1 }
 0x692   : > { %v7594_v31 = vadd.f32 %v7593_v29, %v7592_v15  ;;  %v7437_v43 = vpop.f32.mrb[29].mxu1  ;;  %v13549_v56 = vadd.f32 %v10333_v60, %v13405_v45  ;;  %v7586_v53 = vrot.slane %v7585_v4, 2  ;;  %v7547_v60 = vadd.f32 %v7546_v22, %v7545_v7 }
 0x693   : > { %v13552_v5 = vadd.f32 %v13405_v45, %v7437_v43 }
 0x694   : > { %v7596_v58 = vadd.f32 %v7595_v9, %v7594_v31  ;;  %v7599_v2 = vsel %vm329_vm0, %v13549_v56, 0.0  ;;  %v7587_v14 = vadd.f32 %v7586_v53, %v7585_v4  ;;  %v7612_v4 = vmul.f32 0.015625, %v7547_v60 }
 0x695   : > { %v7597_v61 = vsel %vm329_vm0, %v13552_v5, 0.0  ;;  %v10336_v62 = vpop.f32.mrb[30].mxu1 }
 0x696   : > { %v7598_v13 = vadd.f32 %v7597_v61, %v7596_v58  ;;  %v7447_v30 = vpop.f32.mrb[31].mxu1  ;;  %v13559_v42 = vadd.f32 %v10336_v62, %v13405_v45  ;;  %v7588_v34 = vrot.slane %v7587_v14, 1 }
 0x697   : > { %v13562_v20 = vadd.f32 %v13405_v45, %v7447_v30  ;;  %v7568_v45 = vadd.f32 %v7567_v28, %v7566_v48 }
 0x698   : > { %v7600_v49 = vadd.f32 %v7599_v2, %v7598_v13  ;;  %v7603_v39 = vsel %vm329_vm0, %v13559_v42, 0.0  ;;  %v7589_v29 = vadd.f32 %v7588_v34, %v7587_v14 }
 0x699   : > { %v7601_v25 = vsel %vm329_vm0, %v13562_v20, 0.0  ;;  %v7613_v43 = vmul.f32 0.015625, %v7568_v45 }
 0x69a   : > { %v7602_v41 = vadd.f32 %v7601_v25, %v7600_v49  ;;  %v7614_v57 = vmul.f32 0.015625, %v7589_v29 }
 0x69b   : > { %v7625_v61 = vsel %vm7624_vm5, %v7613_v43, %v7612_v4 }
 0x69c   : > { %v7604_v63 = vadd.f32 %v7603_v39, %v7602_v41  ;;  %v7627_v62 = vsel %vm7626_vm6, %v7614_v57, %v7625_v61  ;;  %v11260_v41 = vmov 1966171168   ;;  %v7792_v39 = vlaneseq }
 0x69d   : > { %v7790_v14 = vunpack.c.l.s4 %v11260_v41  ;;  %v14108_v41 = vld [vmem:[#allocation17_spill] sm:$0xff] }
 0x69e   : > { %v7605_v0 = vrot.slane %v7604_v63, 4 }
 0x69f   : > { %v7791_v7 = vunpack.c.0.s8 %v7790_v14  ;;  %v14109_v14 = vld [vmem:[#allocation18_spill] sm:$0xff] }
 0x6a0   : > { %v7606_v24 = vadd.f32 %v7605_v0, %v7604_v63  ;;  %v7793_v63 = vshrl.u32 %v7792_v39, 7  ;;  %v14110_v39 = vld [vmem:[#allocation19_spill] sm:$0xff] }
 0x6a2   : > { %v7607_v15 = vrot.slane %v7606_v24, 2  ;;  %v7794_v28 = vsub.s32 %v7791_v7, %v7793_v63  ;;  %v7815_v22 = vsub.s32 0, %v7793_v63  ;;  %v14111_v7 = vld [vmem:[#allocation44_spill] sm:$0xff] }
 0x6a3   : > { %v14112_v63 = vld [vmem:[#allocation20_spill] sm:$0xff] }
 0x6a4   : > { %v7608_v31 = vadd.f32 %v7607_v15, %v7606_v24 }
 0x6a6   : > { %v7609_v9 = vrot.slane %v7608_v31, 1 }
 0x6a8   : > { %v7610_v58 = vadd.f32 %v7609_v9, %v7608_v31 }
 0x6aa   : > { %v7615_v12 = vmul.f32 0.015625, %v7610_v58 }
 0x6ac   : > { %v7629_v1 = vsel %vm7628_vm7, %v7615_v12, %v7627_v62 }
 0x6ad   : > { %10346 = vmatmul.mubr.msk.f32.vlgmr.msra.gmra.mrb[32].mxu0 %vm329_vm0, %v7629_v1 }
 0x780   : > { %v7698_v13 = vpop.f32.mrb[32].mxu0 }
 0x781   : > { %v7702_v30 = vmax.f32 %v7698_v13, 0.0  ;;  %v10347_v53 = vpop.f32.mrb[33].mxu0 }
 0x783   : > { %10351 = vmatmul.mubr.msk.f32.vlgmr.msra.gmra.mrb[32].mxu1 %vm7704_vm8, %v7702_v30 }
 0x856   : > { %v7778_v2 = vpop.f32.mrb[32].mxu1 }
 0x857   : > { %v8663_v26 = vmul.f32 -1.442695, %v7778_v2  ;;  %v10352_v49 = vpop.f32.mrb[33].mxu1 }
 0x858   : > { %v14105_v49 = vld [vmem:[#allocation14_spill] sm:$0xff] }
 0x859   : > { %11090 = vpow2.f32 %v8663_v26  ;;  %v14104_v26 = vld [vmem:[#allocation13_spill] sm:$0xff] }
 0x863   : > { %v11091_v25 = vpop.eup %11090 }
 0x864   : > { %v7785_v48 = vadd.f32 1.0, %v11091_v25  ;;  %v14106_v25 = vld [vmem:[#allocation15_spill] sm:$0xff] }
 0x866   : > { %11092 = vrcp.f32 %v7785_v48  ;;  %v14107_v48 = vld [vmem:[#allocation16_spill] sm:$0xff] }
 0x870   : > { %v11093_v0 = vpop.eup %11092 }
 0x871   : > { %v7795_v34 = vrot.slane %v11093_v0, %v7794_v28  ;;  %v14114_v0 = vld [vmem:[#allocation22_spill] sm:$0xff] }
 0x873   : > { %v7796_v24 = vcombine.high %v7795_v34, %v7795_v34  ;;  %v7803_v45 = vrot.slane %v7795_v34, %v7794_v28 }
 0x875   : > { %v7810_v15 = vrot.slane %v7796_v24, %v7794_v28  ;;  %v7811_v29 = vcombine.high %v7803_v45, %v7803_v45  ;;  %v7816_v60 = vrot.slane %v7803_v45, %v7815_v22  ;;  %v14113_v28 = vld [vmem:[#allocation21_spill] sm:$0xff]  ;;  %v14116_v45 = vld [vmem:[#allocation24_spill] sm:$0xff] }
 0x877   : > { %v7812_v31 = vcombine.high %v7810_v15, %v7810_v15  ;;  %v7820_v43 = vrot.slane %v7810_v15, %v7815_v22  ;;  %v7824_v9 = vrot.slane %v7811_v29, %v7815_v22  ;;  %v7833_v57 = vmul.f32 %v7816_v60, %v13417_v32  ;;  %v14117_v29 = vld [vmem:[#allocation25_spill] sm:$0xff] }
 0x878   : > { %v7834_v4 = vmul.f32 %v7816_v60, %v13414_v51  ;;  %v7835_v58 = vmul.f32 %v7816_v60, %v13423_v59  ;;  %v7836_v12 = vmul.f32 %v7816_v60, %v13441_v35  ;;  %v7837_v61 = vmul.f32 %v7816_v60, %v13447_v37 }
 0x879   : > { %v7828_v62 = vrot.slane %v7812_v31, %v7815_v22  ;;  %v7838_v1 = vmul.f32 %v7816_v60, %v13471_v23  ;;  %v7839_v13 = vmul.f32 %v7816_v60, %v13483_v40  ;;  %v7840_v30 = vmul.f32 %v7816_v60, %v13510_v6  ;;  %v14115_v22 = vld [vmem:[#allocation23_spill] sm:$0xff]  ;;  %v14118_v31 = vld [vmem:[#allocation26_spill] sm:$0xff] }
 0x87a   : > { %v7841_v53 = vmul.f32 %v7820_v43, %v13411_v36  ;;  %v7842_v2 = vmul.f32 %v7820_v43, %v13408_v8  ;;  %v7843_v32 = vmul.f32 %v7820_v43, %v13420_v47  ;;  %v7844_v51 = vmul.f32 %v7820_v43, %v13438_v27 }
 0x87b   : > { %v7845_v59 = vmul.f32 %v7820_v43, %v13444_v21  ;;  %v7846_v35 = vmul.f32 %v7820_v43, %v13464_v3  ;;  %v7847_v37 = vmul.f32 %v7820_v43, %v13474_v33  ;;  %v7848_v23 = vmul.f32 %v7820_v43, %v13504_v17 }
 0x87c   : > { %v7849_v40 = vmul.f32 %v7824_v9, %v13459_v16  ;;  %v7850_v6 = vmul.f32 %v7824_v9, %v13452_v19  ;;  %v7851_v36 = vmul.f32 %v7824_v9, %v13480_v18  ;;  %v7852_v8 = vmul.f32 %v7824_v9, %v13477_v55 }
 0x87d   : > { %v7853_v47 = vmul.f32 %v7824_v9, %v13499_v54  ;;  %v7854_v27 = vmul.f32 %v7824_v9, %v13496_v38  ;;  %v7855_v21 = vmul.f32 %v7824_v9, %v13518_v50  ;;  %v7856_v3 = vmul.f32 %v7824_v9, %v13515_v10  ;;  %v14119_v9 = vld [vmem:[#allocation45_spill] sm:$0xff] }
 0x87e   : > { %v7857_v33 = vmul.f32 %v7828_v62, %v13532_v52  ;;  %v7858_v17 = vmul.f32 %v7828_v62, %v13525_v44  ;;  %v7859_v16 = vmul.f32 %v7828_v62, %v13542_v46  ;;  %v7860_v19 = vmul.f32 %v7828_v62, %v13539_v11 }
 0x87f   : > { %v7861_v18 = vmul.f32 %v7828_v62, %v13552_v5  ;;  %v7862_v55 = vmul.f32 %v7828_v62, %v13549_v56  ;;  %v7863_v54 = vmul.f32 %v7828_v62, %v13562_v20  ;;  %v7864_v38 = vmul.f32 %v7828_v62, %v13559_v42  ;;  %v14122_v62 = vld [vmem:[#allocation29_spill] sm:$0xff] }
 0x880   : > { %v7865_v50 = vadd.f32 %v7833_v57, %v14104_v26  ;;  %v7866_v10 = vadd.f32 %v7834_v4, %v14105_v49  ;;  %v7867_v52 = vadd.f32 %v7835_v58, %v14106_v25  ;;  %v7868_v44 = vadd.f32 %v7836_v12, %v14107_v48  ;;  %v14120_v4 = vld [vmem:[#allocation27_spill] sm:$0xff]  ;;  %v14121_v12 = vld [vmem:[#allocation28_spill] sm:$0xff] }
 0x881   : > { %v7869_v46 = vadd.f32 %v7837_v61, %v14108_v41  ;;  %v7870_v11 = vadd.f32 %v7838_v1, %v14109_v14  ;;  %v7871_v5 = vadd.f32 %v7839_v13, %v14110_v39  ;;  %v7872_v56 = vadd.f32 %v7840_v30, %v14111_v7  ;;  %v14123_v13 = vld [vmem:[#allocation30_spill] sm:$0xff] }
 0x882   : > { %v7873_v20 = vadd.f32 %v7841_v53, %v14112_v63  ;;  %v7874_v42 = vadd.f32 %v7842_v2, %v14113_v28  ;;  %v7875_v34 = vadd.f32 %v7843_v32, %v14114_v0  ;;  %v7876_v24 = vadd.f32 %v7844_v51, %v14115_v22  ;;  %v14124_v53 = vld [vmem:[#allocation31_spill] sm:$0xff]  ;;  %v14125_v32 = vld [vmem:[#allocation32_spill] sm:$0xff] }
 0x883   : > { %v7877_v15 = vadd.f32 %v7845_v59, %v14116_v45  ;;  %v7878_v60 = vadd.f32 %v7846_v35, %v14117_v29  ;;  %v7879_v43 = vadd.f32 %v7847_v37, %v14118_v31  ;;  %v7880_v57 = vadd.f32 %v7848_v23, %v14119_v9  ;;  %v14126_v59 = vld [vmem:[#allocation33_spill] sm:$0xff]  ;;  %v14127_v37 = vld [vmem:[#allocation46_spill] sm:$0xff] }
 0x884   : > { %v13618_v58 = vadd.f32 %v7849_v40, %v14120_v4  ;;  %v13621_v61 = vadd.f32 %v7850_v6, %v14121_v12  ;;  %v13624_v1 = vadd.f32 %v7851_v36, %v14122_v62  ;;  %v13627_v30 = vadd.f32 %v7852_v8, %v14123_v13  ;;  %v14128_v40 = vld [vmem:[#allocation34_spill] sm:$0xff]  ;;  %v14129_v36 = vld [vmem:[#allocation35_spill] sm:$0xff]  ;;  %v14130_v8 = vld [vmem:[#allocation36_spill] sm:$0xff] }
 0x885   : > { %v13630_v2 = vadd.f32 %v7853_v47, %v14124_v53  ;;  %v13633_v51 = vadd.f32 %v7854_v27, %v14125_v32  ;;  %v13636_v35 = vadd.f32 %v7855_v21, %v14126_v59  ;;  %v13639_v23 = vadd.f32 %v7856_v3, %v14127_v37  ;;  %v14131_v47 = vld [vmem:[#allocation37_spill] sm:$0xff]  ;;  %v14132_v27 = vld [vmem:[#allocation38_spill] sm:$0xff]  ;;  %v14133_v21 = vld [vmem:[#allocation39_spill] sm:$0xff] }
 0x886   : > { %v13642_v6 = vadd.f32 %v7857_v33, %v14128_v40  ;;  %v13645_v26 = vadd.f32 %v7858_v17, %v14129_v36  ;;  %v13648_v49 = vadd.f32 %v7859_v16, %v14130_v8  ;;  %v13651_v25 = vadd.f32 %v7860_v19, %v14131_v47  ;;  %v14134_v3 = vld [vmem:[#allocation40_spill] sm:$0xff]  ;;  %v14135_v33 = vld [vmem:[#allocation47_spill] sm:$0xff] }
 0x887   : > { %v13654_v48 = vadd.f32 %v7861_v18, %v14132_v27  ;;  %v13657_v41 = vadd.f32 %v7862_v55, %v14133_v21  ;;  %v13660_v14 = vadd.f32 %v7863_v54, %v14134_v3  ;;  %v13663_v39 = vadd.f32 %v7864_v38, %v14135_v33 }
 0x888   : > { %v7897_v17 = vmax.f32 %v7865_v50, 0.0  ;;  %v7898_v7 = vmax.f32 %v7866_v10, 0.0  ;;  %v7899_v16 = vmax.f32 %v7867_v52, 0.0  ;;  %v7900_v63 = vmax.f32 %v7868_v44, 0.0 }
 0x889   : > { %v7901_v28 = vmax.f32 %v7869_v46, 0.0  ;;  %v7902_v19 = vmax.f32 %v7870_v11, 0.0  ;;  %v7903_v0 = vmax.f32 %v7871_v5, 0.0  ;;  %v7904_v22 = vmax.f32 %v7872_v56, 0.0 }
 0x88a   : > { %v7905_v18 = vmax.f32 %v7873_v20, 0.0  ;;  %v7906_v45 = vmax.f32 %v7874_v42, 0.0  ;;  %v7907_v29 = vmax.f32 %v7875_v34, 0.0  ;;  %v7908_v55 = vmax.f32 %v7876_v24, 0.0  ;;  %7929 = vst.msk [vmem:[%s13667_s29] sm:$0xff] %vm329_vm0, %v7897_v17  ;;  %7930 = vst.msk [vmem:[%s13667_s29 + $0x8] sm:$0xff] %vm329_vm0, %v7898_v7 }
 0x88b   : > { %7931 = vst.msk [vmem:[%s13667_s29 + $0x10] sm:$0xff] %vm329_vm0, %v7899_v16  ;;  %7932 = vst.msk [vmem:[%s13667_s29 + $0x18] sm:$0xff] %vm329_vm0, %v7900_v63  ;;  %v7909_v54 = vmax.f32 %v7877_v15, 0.0  ;;  %v7910_v38 = vmax.f32 %v7878_v60, 0.0  ;;  %v7911_v50 = vmax.f32 %v7879_v43, 0.0  ;;  %v7912_v10 = vmax.f32 %v7880_v57, 0.0 }
 0x88c   : > { %7933 = vst.msk [vmem:[%s13667_s29 + $0x20] sm:$0xff] %vm329_vm0, %v7901_v28  ;;  %7934 = vst.msk [vmem:[%s13667_s29 + $0x28] sm:$0xff] %vm329_vm0, %v7902_v19  ;;  %v7913_v52 = vmax.f32 %v13618_v58, 0.0  ;;  %v7914_v44 = vmax.f32 %v13621_v61, 0.0  ;;  %v7915_v46 = vmax.f32 %v13624_v1, 0.0  ;;  %v7916_v11 = vmax.f32 %v13627_v30, 0.0 }
 0x88d   : > { %7935 = vst.msk [vmem:[%s13667_s29 + $0x30] sm:$0xff] %vm329_vm0, %v7903_v0  ;;  %7936 = vst.msk [vmem:[%s13667_s29 + $0x38] sm:$0xff] %vm329_vm0, %v7904_v22  ;;  %v7917_v5 = vmax.f32 %v13630_v2, 0.0  ;;  %v7918_v56 = vmax.f32 %v13633_v51, 0.0  ;;  %v7919_v20 = vmax.f32 %v13636_v35, 0.0  ;;  %v7920_v42 = vmax.f32 %v13639_v23, 0.0 }
 0x88e   : > { %7937 = vst.msk [vmem:[%s13667_s29 + $0x40] sm:$0xff] %vm329_vm0, %v7905_v18  ;;  %7938 = vst.msk [vmem:[%s13667_s29 + $0x48] sm:$0xff] %vm329_vm0, %v7906_v45  ;;  %v7921_v34 = vmax.f32 %v13642_v6, 0.0  ;;  %v7922_v24 = vmax.f32 %v13645_v26, 0.0  ;;  %v7923_v15 = vmax.f32 %v13648_v49, 0.0  ;;  %v7924_v60 = vmax.f32 %v13651_v25, 0.0 }
 0x88f   : > { %7939 = vst.msk [vmem:[%s13667_s29 + $0x50] sm:$0xff] %vm329_vm0, %v7907_v29  ;;  %7940 = vst.msk [vmem:[%s13667_s29 + $0x58] sm:$0xff] %vm329_vm0, %v7908_v55  ;;  %v7925_v31 = vmax.f32 %v13654_v48, 0.0  ;;  %v7926_v43 = vmax.f32 %v13657_v41, 0.0  ;;  %v7927_v9 = vmax.f32 %v13660_v14, 0.0  ;;  %v7928_v57 = vmax.f32 %v13663_v39, 0.0 }
 0x890   : > { %7941 = vst.msk [vmem:[%s13667_s29 + $0x60] sm:$0xff] %vm329_vm0, %v7909_v54  ;;  %7942 = vst.msk [vmem:[%s13667_s29 + $0x68] sm:$0xff] %vm329_vm0, %v7910_v38 }
 0x891   : > { %7943 = vst.msk [vmem:[%s13667_s29 + $0x70] sm:$0xff] %vm329_vm0, %v7911_v50  ;;  %7944 = vst.msk [vmem:[%s13667_s29 + $0x78] sm:$0xff] %vm329_vm0, %v7912_v10 }
 0x892   : > { %7945 = vst.msk [vmem:[%s13667_s29 + $0x80] sm:$0xff] %vm329_vm0, %v7913_v52  ;;  %7946 = vst.msk [vmem:[%s13667_s29 + $0x88] sm:$0xff] %vm329_vm0, %v7914_v44 }
 0x893   : > { %7947 = vst.msk [vmem:[%s13667_s29 + $0x90] sm:$0xff] %vm329_vm0, %v7915_v46  ;;  %7948 = vst.msk [vmem:[%s13667_s29 + $0x98] sm:$0xff] %vm329_vm0, %v7916_v11 }
 0x894   : > { %7949 = vst.msk [vmem:[%s13667_s29 + $0xa0] sm:$0xff] %vm329_vm0, %v7917_v5  ;;  %7950 = vst.msk [vmem:[%s13667_s29 + $0xa8] sm:$0xff] %vm329_vm0, %v7918_v56 }
 0x895   : > { %7951 = vst.msk [vmem:[%s13667_s29 + $0xb0] sm:$0xff] %vm329_vm0, %v7919_v20  ;;  %7952 = vst.msk [vmem:[%s13667_s29 + $0xb8] sm:$0xff] %vm329_vm0, %v7920_v42 }
 0x896   : > { %7953 = vst.msk [vmem:[%s13667_s29 + $0xc0] sm:$0xff] %vm329_vm0, %v7921_v34  ;;  %7954 = vst.msk [vmem:[%s13667_s29 + $0xc8] sm:$0xff] %vm329_vm0, %v7922_v24 }
 0x897   : > { %7955 = vst.msk [vmem:[%s13667_s29 + $0xd0] sm:$0xff] %vm329_vm0, %v7923_v15  ;;  %7956 = vst.msk [vmem:[%s13667_s29 + $0xd8] sm:$0xff] %vm329_vm0, %v7924_v60 }
 0x898   : > { %7957 = vst.msk [vmem:[%s13667_s29 + $0xe0] sm:$0xff] %vm329_vm0, %v7925_v31  ;;  %7958 = vst.msk [vmem:[%s13667_s29 + $0xe8] sm:$0xff] %vm329_vm0, %v7926_v43 }
 0x899   : > { %7959 = vst.msk [vmem:[%s13667_s29 + $0xf0] sm:$0xff] %vm329_vm0, %v7927_v9  ;;  %7960 = vst.msk [vmem:[%s13667_s29 + $0xf8] sm:$0xff] %vm329_vm0, %v7928_v57 }
 0x89a   : > { %11193 = shalt.err (!%p11190_p1)
}
 0x89b   : > { %s11194_s13 = scalar_lea.hbm %s13726_s15, 4096  ;;  %s11198_s29 = scalar_lea.hbm %s13807_s7, 8192 }
 0x89c   : > { %p11195_p13 = scmp.ne.s32.totalorder %s13726_s15, %s11194_s13  ;;  %p11199_p4 = scmp.lt.u32.totalorder %s13726_s15, %s13807_s7 }
 0x89d   : > { %p11200_p5 = scmp.lt.u32.totalorder %s11198_s29, %s11194_s13  ;;  %p11202_p11 = scmp.lt.u32.totalorder %s11194_s13, %s13726_s15 }
 0x89e   : > { %p11196_p6 = pnand %p11195_p13, %p14136_p0 }
 0x89f   : > { %p11201_p8 = por %p11200_p5, %p11199_p4 }
 0x8a0   : > { %p11197_p10 = pneg %p11196_p6 }
 0x8a1   : > { %p11203_p2 = por %p11202_p11, %p11201_p8 }
 0x8a3   : > { %p11204_p3 = pnand %p11203_p2, %p11197_p10 }
 0x8a5   : > { %11207 = shalt.err (!%p11204_p3)
}
 0x8a6   : > { %s11262_s10 = smov 128   ;;  %s11263_s14 = smov 8  }
 0x8a7   : > { %11025 = dma.vmem_to_hbm [thread:$0]  (%p14136_p0), %s13728_s11, 4096, %s13726_s15, %s7962_s19, %s11262_s10, %s11262_s10, %s11263_s14  }
 0x8a8 PF: > { %s7991_s21 = sand.u32 1, %s11238_s24   ;;  %p14137_p7 = scmp.ne.s32.totalorder %s13945_s8, 0 }
 0x8a9   : > { %p14138_p9 = scmp.ge.s32.totalorder %s11250_s27, 2  ;;  %s7992_s23 = scalar_lea.sflag [#allocation5], %s7991_s21 }
 0x8ab   : > { %p11039_p12 = pnand %p14138_p9, %p14137_p7 }
 0x8ad   : > { %11233 = dma.done.wait (!%p11039_p12), %s7992_s23, 4096  }
 0x8ae   : > { %11235 = vsyncadd (!%p11039_p12), %s7992_s23, 4294963200  ;;  %p21_p1 = scmp.ge.s32.totalorder %s11420_s12, 4   ;;  %s14139_s24 = smov %s11242_s25 }
 0x8af   : > { %s14140_s25 = smov %s11246_s26  ;;  %s14141_s26 = smov %s11436_s17 }
 0x8b0   : > { %s14142_s27 = smov %s11420_s12  ;;  %23 = sbr.rel (!%p21_p1) target bundleno = 6 (0x6), region = 120 }
 0x8b7   :  { %7997 = vsyncpa [#allocation4], 1 }
 0x8b8   :  { %7999 = vsyncpa [#allocation4 + $0x1], 1 }
 0x8b9   :  { %8000 = vsyncpa [#allocation7], 1 }
 0x8ba   :  { %8001 = vsyncpa [#allocation5], 1 }
 0x8bb   :  { %8003 = vsyncpa [#allocation5 + $0x1], 1 }

</bundles_post_ra>
